<compile_context>
chip_gen: v7x
topology: tpu7x:2x2x1
jax: 0.10.0
libtpu: 0.0.40
codegen_flags: <defaults>
</compile_context>

<pallas_src>
import jax
import jax.numpy as jnp
import numpy as np
from jax.experimental import pallas as pl
from jax.experimental.pallas import tpu as pltpu

_TB = 8         # batch tile (rows of the stage2 matmuls / output block)
_TN_MAX = 128   # point tile -> stage1 matmul M = TB * TN = 1024 per grid step
_HIDDEN = 1024  # stage1 output width (global-max feature size)


def _round_up(v, m):
    return ((v + m - 1) // m) * m


def _meshdes_kernel(x_ref,
                    w1, b1, w2, b2, w3, b3, w4, b4,
                    w5, b5, w6, b6, w7, b7,
                    o_ref, gmax_ref):
    k = pl.program_id(1)
    tb, tn, f = x_ref.shape

    def dense(h, w_ref, b_ref):
        y = jnp.dot(h.astype(jnp.bfloat16), w_ref[...],
                    preferred_element_type=jnp.float32)
        return jnp.maximum(y + b_ref[...], 0.0)

    # ---- stage1 pointwise MLP on the flattened (TB*TN, F) slab ----
    h = x_ref[...].reshape(tb * tn, f)
    h = dense(h, w1, b1)                       # (TB*TN, 128)   (64 padded)
    h = dense(h, w2, b2)                       # (TB*TN, 128)
    h = dense(h, w3, b3)                       # (TB*TN, 512)
    h = dense(h, w4, b4)                       # (TB*TN, 1024)  f32

    # ---- running max over the point axis (torch: x.max(dim=-2)[0]) ----
    tile_max = jnp.max(h.reshape(tb, tn, h.shape[-1]), axis=1)   # (TB, 1024)

    @pl.when(k == 0)
    def _():
        gmax_ref[...] = jnp.full_like(gmax_ref, -jnp.inf)

    gmax_ref[...] = jnp.maximum(gmax_ref[...], tile_max)

    # ---- stage2 MLP once per batch block, after the last point tile ----
    @pl.when(k == pl.num_programs(1) - 1)
    def _():
        g = gmax_ref[...]                      # (TB, 1024)
        g = dense(g, w5, b5)                   # (TB, 512)
        g = dense(g, w6, b6)                   # (TB, 256)
        g = dense(g, w7, b7)                   # (TB, 128); column 0 is real
        o_ref[...] = g


def _prepare_params(params):
    """bf16 (in,out) weights / f32 (1,out) biases; narrow dims padded to 128."""
    (w1, b1), (w2, b2), (w3, b3), (w4, b4), (w5, b5), (w6, b6), (w7, b7) = params
    w1 = jnp.pad(w1, ((0, 0), (0, 128 - w1.shape[1])))          # (4, 128)
    b1 = jnp.pad(b1, ((0, 128 - b1.shape[0]),))                 # (128,)
    w2 = jnp.pad(w2, ((0, 128 - w2.shape[0]), (0, 0)))          # (128, 128)
    w7 = jnp.pad(w7, ((0, 0), (0, 128 - w7.shape[1])))          # (256, 128)
    b7 = jnp.pad(b7, ((0, 128 - b7.shape[0]),))                 # (128,)
    padded = [(w1, b1), (w2, b2), (w3, b3), (w4, b4),
              (w5, b5), (w6, b6), (w7, b7)]
    flat = []
    for w, b in padded:
        flat.append(w.astype(jnp.bfloat16))
        flat.append(b.reshape(1, -1).astype(jnp.float32))
    return flat


def _const_index_map(nd):
    def index_map(b, k):
        return (0,) * nd
    return index_map


def _const_spec(shape):
    return pl.BlockSpec(shape, _const_index_map(len(shape)))


@jax.jit
def meshdes_forward(x, params):
    """x: (B, N, 4) float32 -> (B, 1) float32."""
    B, N, F = x.shape
    tb = _TB
    tn = min(_TN_MAX, _round_up(N, 8))
    b_pad = _round_up(B, tb)
    n_pad = _round_up(N, tn)
    # Edge-replication padding: duplicated points never change the max, and
    # duplicated batch rows are sliced away below.
    x_p = jnp.pad(x, ((0, b_pad - B), (0, n_pad - N), (0, 0)), mode="edge")

    flat_params = _prepare_params(params)

    in_specs = [pl.BlockSpec((tb, tn, F), lambda b, k: (b, k, 0))]
    in_specs += [_const_spec(p.shape) for p in flat_params]

    out = pl.pallas_call(
        _meshdes_kernel,
        out_shape=jax.ShapeDtypeStruct((b_pad, 128), jnp.float32),
        grid_spec=pltpu.PrefetchScalarGridSpec(
            num_scalar_prefetch=0,
            grid=(b_pad // tb, n_pad // tn),
            in_specs=in_specs,
            out_specs=pl.BlockSpec((tb, 128), lambda b, k: (b, 0)),
            scratch_shapes=[pltpu.VMEM((tb, _HIDDEN), jnp.float32)],
        ),
        compiler_params=pltpu.CompilerParams(
            dimension_semantics=("parallel", "arbitrary"),
            # ~20 MB actual peak (1024-row f32 intermediates + ~5 MB of
            # double-buffered bf16 weights); leave headroom under v7x 64 MiB.
            vmem_limit_bytes=40 << 20,
        ),
    )(x_p, *flat_params)
    return out[:B, :1]


def init_params(key):
    """Xavier-normal (gain=1.414) weights, zero biases, stored as (in, out)."""
    dims = [(4, 64), (64, 128), (128, 512), (512, 1024),    # stage1
            (1024, 512), (512, 256), (256, 1)]              # stage2
    params = []
    for (fan_in, fan_out) in dims:
        key, sub = jax.random.split(key)
        std = 1.414 * np.sqrt(2.0 / (fan_in + fan_out))
        w = std * jax.random.normal(sub, (fan_in, fan_out), dtype=jnp.float32)
        b = jnp.zeros((fan_out,), dtype=jnp.float32)
        params.append((w, b))
    return params


def reference_forward(x, params):
    """Pure-JAX reference using the same bf16-matmul / f32-accumulate recipe."""
    def dense(h, w, b):
        y = jnp.dot(h.astype(jnp.bfloat16), w.astype(jnp.bfloat16),
                    preferred_element_type=jnp.float32) + b
        return jnp.maximum(y, 0.0)

    h = x
    for (w, b) in params[:4]:
        h = dense(h, w, b)
    h = jnp.max(h, axis=-2)
    for (w, b) in params[4:]:
        h = dense(h, w, b)
    return h


if __name__ == "__main__":
    key = jax.random.PRNGKey(0)
    pkey, xkey = jax.random.split(key)
    params = init_params(pkey)

    B, N, F = 2, 8, 4
    x = jax.random.normal(xkey, (B, N, F), dtype=jnp.float32)

    out = jax.block_until_ready(meshdes_forward(x, params))
    ref = jax.block_until_ready(reference_forward(x, params))

    assert out.shape == (B, 1), out.shape
    np.testing.assert_allclose(np.asarray(out), np.asarray(ref),
                               rtol=1e-2, atol=1e-2)

    print("KERNEL_OK")
</pallas_src>

<mosaic_0001>
module attributes {stable_mosaic.version = 11 : i64} {
  func.func @_meshdes_kernel(%arg0: i32, %arg1: i32, %arg2: memref<8x8x4xf32, #tpu.memory_space<vmem>>, %arg3: memref<4x128xbf16, #tpu.memory_space<vmem>>, %arg4: memref<1x128xf32, #tpu.memory_space<vmem>>, %arg5: memref<128x128xbf16, #tpu.memory_space<vmem>>, %arg6: memref<1x128xf32, #tpu.memory_space<vmem>>, %arg7: memref<128x512xbf16, #tpu.memory_space<vmem>>, %arg8: memref<1x512xf32, #tpu.memory_space<vmem>>, %arg9: memref<512x1024xbf16, #tpu.memory_space<vmem>>, %arg10: memref<1x1024xf32, #tpu.memory_space<vmem>>, %arg11: memref<1024x512xbf16, #tpu.memory_space<vmem>>, %arg12: memref<1x512xf32, #tpu.memory_space<vmem>>, %arg13: memref<512x256xbf16, #tpu.memory_space<vmem>>, %arg14: memref<1x256xf32, #tpu.memory_space<vmem>>, %arg15: memref<256x128xbf16, #tpu.memory_space<vmem>>, %arg16: memref<1x128xf32, #tpu.memory_space<vmem>>, %arg17: memref<8x128xf32, #tpu.memory_space<vmem>>, %arg18: memref<8x1024xf32, #tpu.memory_space<vmem>>) attributes {dimension_semantics = [#tpu.dimension_semantics<parallel>, #tpu.dimension_semantics<arbitrary>], iteration_bounds = array<i64: 1, 1>, scalar_prefetch = 0 : i64, scratch_operands = 1 : i64, tpu.core_type = #tpu.core_type<tc>, window_params = [{transform_indices = @transform_0, window_bounds = array<i64: 8, 8, 4>}, {pipeline_mode = #tpu.pipeline_mode<synchronous>, transform_indices = @transform_1, window_bounds = array<i64: 4, 128>}, {pipeline_mode = #tpu.pipeline_mode<synchronous>, transform_indices = @transform_2, window_bounds = array<i64: 1, 128>}, {pipeline_mode = #tpu.pipeline_mode<synchronous>, transform_indices = @transform_3, window_bounds = array<i64: 128, 128>}, {pipeline_mode = #tpu.pipeline_mode<synchronous>, transform_indices = @transform_4, window_bounds = array<i64: 1, 128>}, {pipeline_mode = #tpu.pipeline_mode<synchronous>, transform_indices = @transform_5, window_bounds = array<i64: 128, 512>}, {pipeline_mode = #tpu.pipeline_mode<synchronous>, transform_indices = @transform_6, window_bounds = array<i64: 1, 512>}, {pipeline_mode = #tpu.pipeline_mode<synchronous>, transform_indices = @transform_7, window_bounds = array<i64: 512, 1024>}, {pipeline_mode = #tpu.pipeline_mode<synchronous>, transform_indices = @transform_8, window_bounds = array<i64: 1, 1024>}, {pipeline_mode = #tpu.pipeline_mode<synchronous>, transform_indices = @transform_9, window_bounds = array<i64: 1024, 512>}, {pipeline_mode = #tpu.pipeline_mode<synchronous>, transform_indices = @transform_10, window_bounds = array<i64: 1, 512>}, {pipeline_mode = #tpu.pipeline_mode<synchronous>, transform_indices = @transform_11, window_bounds = array<i64: 512, 256>}, {pipeline_mode = #tpu.pipeline_mode<synchronous>, transform_indices = @transform_12, window_bounds = array<i64: 1, 256>}, {pipeline_mode = #tpu.pipeline_mode<synchronous>, transform_indices = @transform_13, window_bounds = array<i64: 256, 128>}, {pipeline_mode = #tpu.pipeline_mode<synchronous>, transform_indices = @transform_14, window_bounds = array<i64: 1, 128>}, {transform_indices = @transform_15, window_bounds = array<i64: 8, 128>}]} {
    %c0 = arith.constant 0 : index
    %c0_0 = arith.constant 0 : index
    %c0_1 = arith.constant 0 : index
    %0 = vector.load %arg2[%c0, %c0_0, %c0_1] : memref<8x8x4xf32, #tpu.memory_space<vmem>>, vector<8x8x4xf32>
    %1 = vector.shape_cast %0 : vector<8x8x4xf32> to vector<64x4xf32>
    %2 = arith.truncf %1 : vector<64x4xf32> to vector<64x4xbf16>
    %c0_2 = arith.constant 0 : index
    %c0_3 = arith.constant 0 : index
    %3 = vector.load %arg3[%c0_2, %c0_3] : memref<4x128xbf16, #tpu.memory_space<vmem>>, vector<4x128xbf16>
    %cst = arith.constant dense<0.000000e+00> : vector<64x128xf32>
    %4 = tpu.matmul %2, %3, %cst {dimension_numbers = #tpu.dot_dimension_numbers<[1], [0], [0], [1], [0, 0, 1, 1], [], []>} : vector<64x4xbf16>, vector<4x128xbf16>, vector<64x128xf32> -> vector<64x128xf32>
    %c0_4 = arith.constant 0 : index
    %c0_5 = arith.constant 0 : index
    %5 = vector.load %arg4[%c0_4, %c0_5] : memref<1x128xf32, #tpu.memory_space<vmem>>, vector<1x128xf32>
    %6 = vector.broadcast %5 : vector<1x128xf32> to vector<64x128xf32>
    %7 = arith.addf %4, %6 : vector<64x128xf32>
    %cst_6 = arith.constant 0.000000e+00 : f32
    %8 = vector.broadcast %cst_6 : f32 to vector<64x128xf32>
    %9 = arith.maximumf %7, %8 : vector<64x128xf32>
    %10 = arith.truncf %9 : vector<64x128xf32> to vector<64x128xbf16>
    %c0_7 = arith.constant 0 : index
    %c0_8 = arith.constant 0 : index
    %11 = vector.load %arg5[%c0_7, %c0_8] : memref<128x128xbf16, #tpu.memory_space<vmem>>, vector<128x128xbf16>
    %cst_9 = arith.constant dense<0.000000e+00> : vector<64x128xf32>
    %12 = tpu.matmul %10, %11, %cst_9 {dimension_numbers = #tpu.dot_dimension_numbers<[1], [0], [0], [1], [0, 0, 1, 1], [], []>} : vector<64x128xbf16>, vector<128x128xbf16>, vector<64x128xf32> -> vector<64x128xf32>
    %c0_10 = arith.constant 0 : index
    %c0_11 = arith.constant 0 : index
    %13 = vector.load %arg6[%c0_10, %c0_11] : memref<1x128xf32, #tpu.memory_space<vmem>>, vector<1x128xf32>
    %14 = vector.broadcast %13 : vector<1x128xf32> to vector<64x128xf32>
    %15 = arith.addf %12, %14 : vector<64x128xf32>
    %cst_12 = arith.constant 0.000000e+00 : f32
    %16 = vector.broadcast %cst_12 : f32 to vector<64x128xf32>
    %17 = arith.maximumf %15, %16 : vector<64x128xf32>
    %18 = arith.truncf %17 : vector<64x128xf32> to vector<64x128xbf16>
    %c0_13 = arith.constant 0 : index
    %c0_14 = arith.constant 0 : index
    %19 = vector.load %arg7[%c0_13, %c0_14] : memref<128x512xbf16, #tpu.memory_space<vmem>>, vector<128x512xbf16>
    %cst_15 = arith.constant dense<0.000000e+00> : vector<64x512xf32>
    %20 = tpu.matmul %18, %19, %cst_15 {dimension_numbers = #tpu.dot_dimension_numbers<[1], [0], [0], [1], [0, 0, 1, 1], [], []>} : vector<64x128xbf16>, vector<128x512xbf16>, vector<64x512xf32> -> vector<64x512xf32>
    %c0_16 = arith.constant 0 : index
    %c0_17 = arith.constant 0 : index
    %21 = vector.load %arg8[%c0_16, %c0_17] : memref<1x512xf32, #tpu.memory_space<vmem>>, vector<1x512xf32>
    %22 = vector.broadcast %21 : vector<1x512xf32> to vector<64x512xf32>
    %23 = arith.addf %20, %22 : vector<64x512xf32>
    %cst_18 = arith.constant 0.000000e+00 : f32
    %24 = vector.broadcast %cst_18 : f32 to vector<64x512xf32>
    %25 = arith.maximumf %23, %24 : vector<64x512xf32>
    %26 = arith.truncf %25 : vector<64x512xf32> to vector<64x512xbf16>
    %c0_19 = arith.constant 0 : index
    %c0_20 = arith.constant 0 : index
    %27 = vector.load %arg9[%c0_19, %c0_20] : memref<512x1024xbf16, #tpu.memory_space<vmem>>, vector<512x1024xbf16>
    %cst_21 = arith.constant dense<0.000000e+00> : vector<64x1024xf32>
    %28 = tpu.matmul %26, %27, %cst_21 {dimension_numbers = #tpu.dot_dimension_numbers<[1], [0], [0], [1], [0, 0, 1, 1], [], []>} : vector<64x512xbf16>, vector<512x1024xbf16>, vector<64x1024xf32> -> vector<64x1024xf32>
    %c0_22 = arith.constant 0 : index
    %c0_23 = arith.constant 0 : index
    %29 = vector.load %arg10[%c0_22, %c0_23] : memref<1x1024xf32, #tpu.memory_space<vmem>>, vector<1x1024xf32>
    %30 = vector.broadcast %29 : vector<1x1024xf32> to vector<64x1024xf32>
    %31 = arith.addf %28, %30 : vector<64x1024xf32>
    %cst_24 = arith.constant 0.000000e+00 : f32
    %32 = vector.broadcast %cst_24 : f32 to vector<64x1024xf32>
    %33 = arith.maximumf %31, %32 : vector<64x1024xf32>
    %34 = vector.shape_cast %33 : vector<64x1024xf32> to vector<8x8x1024xf32>
    %cst_25 = arith.constant dense<0xFF800000> : vector<8x1024xf32>
    %35 = vector.multi_reduction <maximumf>, %34, %cst_25 [1] : vector<8x8x1024xf32> to vector<8x1024xf32>
    %c0_i32 = arith.constant 0 : i32
    %36 = arith.cmpi eq, %arg1, %c0_i32 : i32
    %37 = arith.extui %36 : i1 to i32
    %c0_i32_26 = arith.constant 0 : i32
    %38 = arith.cmpi ne, %37, %c0_i32_26 : i32
    scf.if %38 {
      %cst_33 = arith.constant 0xFF800000 : f32
      %45 = vector.broadcast %cst_33 : f32 to vector<8x1024xf32>
      %c0_34 = arith.constant 0 : index
      %c0_35 = arith.constant 0 : index
      %46 = vector.load %arg18[%c0_34, %c0_35] : memref<8x1024xf32, #tpu.memory_space<vmem>>, vector<8x1024xf32>
      tpu.vector_store %arg18[%c0_34, %c0_35], %45 {strides = array<i32>} : memref<8x1024xf32, #tpu.memory_space<vmem>>, vector<8x1024xf32>,
    } else {
    }
    %c0_27 = arith.constant 0 : index
    %c0_28 = arith.constant 0 : index
    %39 = vector.load %arg18[%c0_27, %c0_28] : memref<8x1024xf32, #tpu.memory_space<vmem>>, vector<8x1024xf32>
    %40 = arith.maximumf %39, %35 : vector<8x1024xf32>
    %c0_29 = arith.constant 0 : index
    %c0_30 = arith.constant 0 : index
    %41 = vector.load %arg18[%c0_29, %c0_30] : memref<8x1024xf32, #tpu.memory_space<vmem>>, vector<8x1024xf32>
    tpu.vector_store %arg18[%c0_29, %c0_30], %40 {strides = array<i32>} : memref<8x1024xf32, #tpu.memory_space<vmem>>, vector<8x1024xf32>,
    %c0_i32_31 = arith.constant 0 : i32
    %42 = arith.cmpi eq, %arg1, %c0_i32_31 : i32
    %43 = arith.extui %42 : i1 to i32
    %c0_i32_32 = arith.constant 0 : i32
    %44 = arith.cmpi ne, %43, %c0_i32_32 : i32
    scf.if %44 {
      %c0_33 = arith.constant 0 : index
      %c0_34 = arith.constant 0 : index
      %45 = vector.load %arg18[%c0_33, %c0_34] : memref<8x1024xf32, #tpu.memory_space<vmem>>, vector<8x1024xf32>
      %46 = arith.truncf %45 : vector<8x1024xf32> to vector<8x1024xbf16>
      %c0_35 = arith.constant 0 : index
      %c0_36 = arith.constant 0 : index
      %47 = vector.load %arg11[%c0_35, %c0_36] : memref<1024x512xbf16, #tpu.memory_space<vmem>>, vector<1024x512xbf16>
      %cst_37 = arith.constant dense<0.000000e+00> : vector<8x512xf32>
      %48 = tpu.matmul %46, %47, %cst_37 {dimension_numbers = #tpu.dot_dimension_numbers<[1], [0], [0], [1], [0, 0, 1, 1], [], []>} : vector<8x1024xbf16>, vector<1024x512xbf16>, vector<8x512xf32> -> vector<8x512xf32>
      %c0_38 = arith.constant 0 : index
      %c0_39 = arith.constant 0 : index
      %49 = vector.load %arg12[%c0_38, %c0_39] : memref<1x512xf32, #tpu.memory_space<vmem>>, vector<1x512xf32>
      %50 = vector.broadcast %49 : vector<1x512xf32> to vector<8x512xf32>
      %51 = arith.addf %48, %50 : vector<8x512xf32>
      %cst_40 = arith.constant 0.000000e+00 : f32
      %52 = vector.broadcast %cst_40 : f32 to vector<8x512xf32>
      %53 = arith.maximumf %51, %52 : vector<8x512xf32>
      %54 = arith.truncf %53 : vector<8x512xf32> to vector<8x512xbf16>
      %c0_41 = arith.constant 0 : index
      %c0_42 = arith.constant 0 : index
      %55 = vector.load %arg13[%c0_41, %c0_42] : memref<512x256xbf16, #tpu.memory_space<vmem>>, vector<512x256xbf16>
      %cst_43 = arith.constant dense<0.000000e+00> : vector<8x256xf32>
      %56 = tpu.matmul %54, %55, %cst_43 {dimension_numbers = #tpu.dot_dimension_numbers<[1], [0], [0], [1], [0, 0, 1, 1], [], []>} : vector<8x512xbf16>, vector<512x256xbf16>, vector<8x256xf32> -> vector<8x256xf32>
      %c0_44 = arith.constant 0 : index
      %c0_45 = arith.constant 0 : index
      %57 = vector.load %arg14[%c0_44, %c0_45] : memref<1x256xf32, #tpu.memory_space<vmem>>, vector<1x256xf32>
      %58 = vector.broadcast %57 : vector<1x256xf32> to vector<8x256xf32>
      %59 = arith.addf %56, %58 : vector<8x256xf32>
      %cst_46 = arith.constant 0.000000e+00 : f32
      %60 = vector.broadcast %cst_46 : f32 to vector<8x256xf32>
      %61 = arith.maximumf %59, %60 : vector<8x256xf32>
      %62 = arith.truncf %61 : vector<8x256xf32> to vector<8x256xbf16>
      %c0_47 = arith.constant 0 : index
      %c0_48 = arith.constant 0 : index
      %63 = vector.load %arg15[%c0_47, %c0_48] : memref<256x128xbf16, #tpu.memory_space<vmem>>, vector<256x128xbf16>
      %cst_49 = arith.constant dense<0.000000e+00> : vector<8x128xf32>
      %64 = tpu.matmul %62, %63, %cst_49 {dimension_numbers = #tpu.dot_dimension_numbers<[1], [0], [0], [1], [0, 0, 1, 1], [], []>} : vector<8x256xbf16>, vector<256x128xbf16>, vector<8x128xf32> -> vector<8x128xf32>
      %c0_50 = arith.constant 0 : index
      %c0_51 = arith.constant 0 : index
      %65 = vector.load %arg16[%c0_50, %c0_51] : memref<1x128xf32, #tpu.memory_space<vmem>>, vector<1x128xf32>
      %66 = vector.broadcast %65 : vector<1x128xf32> to vector<8x128xf32>
      %67 = arith.addf %64, %66 : vector<8x128xf32>
      %cst_52 = arith.constant 0.000000e+00 : f32
      %68 = vector.broadcast %cst_52 : f32 to vector<8x128xf32>
      %69 = arith.maximumf %67, %68 : vector<8x128xf32>
      %c0_53 = arith.constant 0 : index
      %c0_54 = arith.constant 0 : index
      %70 = vector.load %arg17[%c0_53, %c0_54] : memref<8x128xf32, #tpu.memory_space<vmem>>, vector<8x128xf32>
      tpu.vector_store %arg17[%c0_53, %c0_54], %69 {strides = array<i32>} : memref<8x128xf32, #tpu.memory_space<vmem>>, vector<8x128xf32>,
    } else {
    }
    return
  }
  func.func @transform_0(%arg0: i32, %arg1: i32) -> (i32, i32, i32) {
    %c0_i32 = arith.constant 0 : i32
    %c0_i32_0 = arith.constant 0 : i32
    return %arg0, %arg1, %c0_i32 : i32, i32, i32
  }
  func.func @transform_1(%arg0: i32, %arg1: i32) -> (i32, i32) {
    %c0_i32 = arith.constant 0 : i32
    %c0_i32_0 = arith.constant 0 : i32
    %c0_i32_1 = arith.constant 0 : i32
    return %c0_i32, %c0_i32_0 : i32, i32
  }
  func.func @transform_2(%arg0: i32, %arg1: i32) -> (i32, i32) {
    %c0_i32 = arith.constant 0 : i32
    %c0_i32_0 = arith.constant 0 : i32
    %c0_i32_1 = arith.constant 0 : i32
    return %c0_i32, %c0_i32_0 : i32, i32
  }
  func.func @transform_3(%arg0: i32, %arg1: i32) -> (i32, i32) {
    %c0_i32 = arith.constant 0 : i32
    %c0_i32_0 = arith.constant 0 : i32
    %c0_i32_1 = arith.constant 0 : i32
    return %c0_i32, %c0_i32_0 : i32, i32
  }
  func.func @transform_4(%arg0: i32, %arg1: i32) -> (i32, i32) {
    %c0_i32 = arith.constant 0 : i32
    %c0_i32_0 = arith.constant 0 : i32
    %c0_i32_1 = arith.constant 0 : i32
    return %c0_i32, %c0_i32_0 : i32, i32
  }
  func.func @transform_5(%arg0: i32, %arg1: i32) -> (i32, i32) {
    %c0_i32 = arith.constant 0 : i32
    %c0_i32_0 = arith.constant 0 : i32
    %c0_i32_1 = arith.constant 0 : i32
    return %c0_i32, %c0_i32_0 : i32, i32
  }
  func.func @transform_6(%arg0: i32, %arg1: i32) -> (i32, i32) {
    %c0_i32 = arith.constant 0 : i32
    %c0_i32_0 = arith.constant 0 : i32
    %c0_i32_1 = arith.constant 0 : i32
    return %c0_i32, %c0_i32_0 : i32, i32
  }
  func.func @transform_7(%arg0: i32, %arg1: i32) -> (i32, i32) {
    %c0_i32 = arith.constant 0 : i32
    %c0_i32_0 = arith.constant 0 : i32
    %c0_i32_1 = arith.constant 0 : i32
    return %c0_i32, %c0_i32_0 : i32, i32
  }
  func.func @transform_8(%arg0: i32, %arg1: i32) -> (i32, i32) {
    %c0_i32 = arith.constant 0 : i32
    %c0_i32_0 = arith.constant 0 : i32
    %c0_i32_1 = arith.constant 0 : i32
    return %c0_i32, %c0_i32_0 : i32, i32
  }
  func.func @transform_9(%arg0: i32, %arg1: i32) -> (i32, i32) {
    %c0_i32 = arith.constant 0 : i32
    %c0_i32_0 = arith.constant 0 : i32
    %c0_i32_1 = arith.constant 0 : i32
    return %c0_i32, %c0_i32_0 : i32, i32
  }
  func.func @transform_10(%arg0: i32, %arg1: i32) -> (i32, i32) {
    %c0_i32 = arith.constant 0 : i32
    %c0_i32_0 = arith.constant 0 : i32
    %c0_i32_1 = arith.constant 0 : i32
    return %c0_i32, %c0_i32_0 : i32, i32
  }
  func.func @transform_11(%arg0: i32, %arg1: i32) -> (i32, i32) {
    %c0_i32 = arith.constant 0 : i32
    %c0_i32_0 = arith.constant 0 : i32
    %c0_i32_1 = arith.constant 0 : i32
    return %c0_i32, %c0_i32_0 : i32, i32
  }
  func.func @transform_12(%arg0: i32, %arg1: i32) -> (i32, i32) {
    %c0_i32 = arith.constant 0 : i32
    %c0_i32_0 = arith.constant 0 : i32
    %c0_i32_1 = arith.constant 0 : i32
    return %c0_i32, %c0_i32_0 : i32, i32
  }
  func.func @transform_13(%arg0: i32, %arg1: i32) -> (i32, i32) {
    %c0_i32 = arith.constant 0 : i32
    %c0_i32_0 = arith.constant 0 : i32
    %c0_i32_1 = arith.constant 0 : i32
    return %c0_i32, %c0_i32_0 : i32, i32
  }
  func.func @transform_14(%arg0: i32, %arg1: i32) -> (i32, i32) {
    %c0_i32 = arith.constant 0 : i32
    %c0_i32_0 = arith.constant 0 : i32
    %c0_i32_1 = arith.constant 0 : i32
    return %c0_i32, %c0_i32_0 : i32, i32
  }
  func.func @transform_15(%arg0: i32, %arg1: i32) -> (i32, i32) {
    %c0_i32 = arith.constant 0 : i32
    %c0_i32_0 = arith.constant 0 : i32
    return %arg0, %c0_i32 : i32, i32
  }
}

</mosaic_0001>

<bundles_post_ra>
// kernel: meshdes_forward.1
= control target key start
LH: loop header
LB: loop body
LE: loop exit
PB: predicated region body
PF: predicated region fallthrough
CT: control target
= control target key end

     0   :  { %vm84_vm0 = vcmask 1041408   ;;  %vm71_vm1 = vcmask 31744   ;;  %vm3415_vm2 = vcmask 1041409   ;;  %vm3417_vm3 = vcmask 1042434   ;;  %s10090_s1 = inlined_call_operand.vmem [shape: bf16[4,128], index: 1, kind: input, shape index: {}]   ;;  %s10091_s0 = inlined_call_operand.vmem [shape: f32[8,8,4], index: 0, kind: input, shape index: {}]   ;;  %s10092_s3 = inlined_call_operand.vmem [shape: bf16[128,128], index: 3, kind: input, shape index: {}]   ;;  %s10093_s5 = inlined_call_operand.vmem [shape: bf16[128,512], index: 5, kind: input, shape index: {}]   ;;  %s10094_s2 = inlined_call_operand.vmem [shape: f32[1,128], index: 2, kind: input, shape index: {}]   ;;  %s10095_s7 = inlined_call_operand.vmem [shape: bf16[512,1024], index: 7, kind: input, shape index: {}]   ;;  %s10096_s4 = inlined_call_operand.vmem [shape: f32[1,128], index: 4, kind: input, shape index: {}]   ;;  %s10097_s6 = inlined_call_operand.vmem [shape: f32[1,512], index: 6, kind: input, shape index: {}]   ;;  %s10098_s9 = inlined_call_operand.vmem [shape: bf16[1024,512], index: 9, kind: input, shape index: {}]   ;;  %s10099_s8 = inlined_call_operand.vmem [shape: f32[1,1024], index: 8, kind: input, shape index: {}]   ;;  %s10100_s11 = inlined_call_operand.vmem [shape: bf16[512,256], index: 11, kind: input, shape index: {}]   ;;  %s10101_s13 = inlined_call_operand.vmem [shape: bf16[256,128], index: 13, kind: input, shape index: {}]   ;;  %s10102_s10 = inlined_call_operand.vmem [shape: f32[1,512], index: 10, kind: input, shape index: {}]   ;;  %s10103_s12 = inlined_call_operand.vmem [shape: f32[1,256], index: 12, kind: input, shape index: {}]   ;;  %s10104_s14 = inlined_call_operand.vmem [shape: f32[1,128], index: 14, kind: input, shape index: {}]   ;;  %s10105_s15 = inlined_call_operand.vmem [shape: f32[8,128], index: 15, kind: output, shape index: {}]  }
   0x1   :  { %v63_v0 = vld [vmem:[%s10090_s1] sm:$0x3]  ;;  %v52_v2 = vld [vmem:[%s10091_s0 + $0x8] sm:$0xff]  ;;  %v53_v5 = vld [vmem:[%s10091_s0 + $0x10] sm:$0xff]  ;;  %vm3419_vm4 = vcmask 1043459   ;;  %vm3421_vm5 = vcmask 1044484  }
   0x2   :  { %v51_v1 = vld [vmem:[%s10091_s0] sm:$0xff]  ;;  %6952 = vmatprep.subr.msk.bf16.mxu0 %vm84_vm0, %v63_v0  ;;  %v86_v3 = vsel %vm84_vm0, %v63_v0, 0  ;;  %v54_v6 = vld [vmem:[%s10091_s0 + $0x18] sm:$0xff]  ;;  %v56_v9 = vld [vmem:[%s10091_s0 + $0x28] sm:$0xff]  ;;  %vm3423_vm6 = vcmask 1045509   ;;  %vm3425_vm7 = vcmask 1046534  }
   0x3   :  { %v59_v4 = vpack.c.bf16 %v52_v2, %v51_v1  ;;  %v55_v7 = vld [vmem:[%s10091_s0 + $0x20] sm:$0xff]  ;;  %6757 = vmatpush3.bf16.msra.mxu0 %v86_v3  ;;  %v60_v8 = vpack.c.bf16 %v54_v6, %v53_v5  ;;  %v6955_v12 = vld [vmem:[%s10092_s3 + $0x8] sm:$0xff]   ;;  %v57_v13 = vld [vmem:[%s10091_s0 + $0x30] sm:$0xff]  ;;  %vm3427_vm8 = vcmask 1047559  }
   0x4   :  { %v61_v10 = vpack.c.bf16 %v56_v9, %v55_v7  ;;  %v6954_v11 = vld [vmem:[%s10092_s3] sm:$0xff]   ;;  %v58_v14 = vld [vmem:[%s10091_s0 + $0x38] sm:$0xff]  ;;  %v6956_v15 = vld [vmem:[%s10092_s3 + $0x10] sm:$0xff]  }
   0x5   :  { %6758 = vmatprep.mubr.msk.bf16.mxu0 %vm71_vm1, %v59_v4  ;;  %6766 = vmatprep.subr.bf16.mxu1 %v6954_v11  ;;  %v62_v16 = vpack.c.bf16 %v58_v14, %v57_v13  ;;  %v6957_v17 = vld [vmem:[%s10092_s3 + $0x18] sm:$0xff]   ;;  %v6958_v18 = vld [vmem:[%s10092_s3 + $0x20] sm:$0xff]   ;;  %v6959_v19 = vld [vmem:[%s10092_s3 + $0x28] sm:$0xff]   ;;  %v7506_v4 = vmov 0  }
   0x6   :  { %6759 = vmatmul.mubr.msk.bf16.vlgmr.msra.gmra.mrb[0].mxu0 %vm71_vm1, %v60_v8  ;;  %6767 = vmatpush3.bf16.msra.mxu1 %v6954_v11  ;;  %v6960_v20 = vld [vmem:[%s10092_s3 + $0x30] sm:$0xff]   ;;  %v6961_v21 = vld [vmem:[%s10092_s3 + $0x38] sm:$0xff]   ;;  %v6078_v23 = vld [vmem:[%s10094_s2] ss:$0 sm:$0xff] }
   0x7   :  { %6762 = vmatprep.mubr.msk.bf16.mxu0 %vm71_vm1, %v61_v10  ;;  %6768 = vmatprep.subr.bf16.mxu1 %v6955_v12  ;;  %v6964_v22 = vld [vmem:[%s10093_s5 + $0x4] ss:$16 sps:$4 sm:$0xff]   ;;  %v6962_v39 = vld [vmem:[%s10093_s5] ss:$16 sps:$4 sm:$0xff]   ;;  %v6988_v3 = vld [vmem:[%s10093_s5 + $0xc] ss:$16 sps:$4 sm:$0xff]  }
   0x8   :  { %v6967_v42 = vld [vmem:[%s10093_s5 + $0x24] ss:$16 sps:$4 sm:$0xff]   ;;  %v6965_v50 = vld [vmem:[%s10093_s5 + $0x20] ss:$16 sps:$4 sm:$0xff]  }
   0x9   :  { %v6970_v52 = vld [vmem:[%s10093_s5 + $0x44] ss:$16 sps:$4 sm:$0xff]   ;;  %v6968_v56 = vld [vmem:[%s10093_s5 + $0x40] ss:$16 sps:$4 sm:$0xff]  }
   0xa   :  { %6769 = vmatpush3.bf16.msra.mxu1 %v6955_v12  ;;  %v6973_v57 = vld [vmem:[%s10093_s5 + $0x64] ss:$16 sps:$4 sm:$0xff]   ;;  %v6971_v58 = vld [vmem:[%s10093_s5 + $0x60] ss:$16 sps:$4 sm:$0xff]  }
   0xb   :  { %6770 = vmatprep.subr.bf16.mxu1 %v6956_v15  ;;  %v6976_v59 = vld [vmem:[%s10093_s5 + $0x84] ss:$16 sps:$4 sm:$0xff]   ;;  %v6974_v60 = vld [vmem:[%s10093_s5 + $0x80] ss:$16 sps:$4 sm:$0xff]  }
   0xc   :  { %v6979_v61 = vld [vmem:[%s10093_s5 + $0xa4] ss:$16 sps:$4 sm:$0xff]   ;;  %v6977_v62 = vld [vmem:[%s10093_s5 + $0xa0] ss:$16 sps:$4 sm:$0xff]  }
   0xd   :  { %v6982_v63 = vld [vmem:[%s10093_s5 + $0xc4] ss:$16 sps:$4 sm:$0xff]   ;;  %v6980_v0 = vld [vmem:[%s10093_s5 + $0xc0] ss:$16 sps:$4 sm:$0xff]  }
   0xe   :  { %6763 = vmatmul.mubr.msk.bf16.gmra.mrb[4].mxu0 %vm71_vm1, %v62_v16  ;;  %6771 = vmatpush3.bf16.msra.mxu1 %v6956_v15  ;;  %v6985_v1 = vld [vmem:[%s10093_s5 + $0xe4] ss:$16 sps:$4 sm:$0xff]   ;;  %v6983_v2 = vld [vmem:[%s10093_s5 + $0xe0] ss:$16 sps:$4 sm:$0xff]  }
   0xf   :  { %6772 = vmatprep.subr.bf16.mxu1 %v6957_v17  ;;  %v721_v5 = vld [vmem:[%s10095_s7] sm:$0xff] }
  0x10   :  { %v725_v6 = vld [vmem:[%s10095_s7 + $0x20] sm:$0xff] }
  0x11   :  { %v6124_v7 = vcombine.low %v721_v5, %v725_v6  ;;  %v6125_v8 = vcombine.high %v721_v5, %v725_v6  ;;  %v729_v9 = vld [vmem:[%s10095_s7 + $0x40] sm:$0xff] }
  0x12   :  { %6773 = vmatpush3.bf16.msra.mxu1 %v6957_v17  ;;  %v733_v10 = vld [vmem:[%s10095_s7 + $0x60] sm:$0xff] }
  0x13   :  { %6774 = vmatprep.subr.bf16.mxu1 %v6958_v18  ;;  %v6133_v11 = vcombine.high %v729_v9, %v733_v10  ;;  %v737_v12 = vld [vmem:[%s10095_s7 + $0x80] sm:$0xff]  ;;  %2299 = vmatprep.subr.bf16.mxu0 %v6125_v8  ;;  %v6132_v14 = vcombine.low %v729_v9, %v733_v10 }
  0x14   :  { %v741_v13 = vld [vmem:[%s10095_s7 + $0xa0] sm:$0xff]  ;;  %2300 = vmatpush1.bf16.msra.mxu0 %v6124_v7 }
  0x15   :  { %2301 = vmatprep.subr.bf16.mxu0 %v6133_v11  ;;  %v6141_v15 = vcombine.high %v737_v12, %v741_v13  ;;  %v745_v16 = vld [vmem:[%s10095_s7 + $0xc0] sm:$0xff] }
  0x16   :  { %6775 = vmatpush3.bf16.msra.mxu1 %v6958_v18  ;;  %v749_v17 = vld [vmem:[%s10095_s7 + $0xe0] sm:$0xff]  ;;  %v6140_v18 = vcombine.low %v737_v12, %v741_v13  ;;  %v6986_v12 = vld [vmem:[%s10093_s5 + $0x8] ss:$16 sps:$4 sm:$0xff]  }
  0x17   :  { %6776 = vmatprep.subr.bf16.mxu1 %v6959_v19 }
  0x18   :  { %2302 = vmatpush1.bf16.msra.mxu0 %v6132_v14  ;;  %v6991_v14 = vld [vmem:[%s10093_s5 + $0x2c] ss:$16 sps:$4 sm:$0xff]  }
  0x19   :  { %2303 = vmatprep.subr.bf16.mxu0 %v6141_v15 }
  0x1a   :  { %6777 = vmatpush3.bf16.msra.mxu1 %v6959_v19  ;;  %v6149_v19 = vcombine.high %v745_v16, %v749_v17 }
  0x1b   :  { %6778 = vmatprep.subr.bf16.mxu1 %v6960_v20 }
  0x1c   :  { %2304 = vmatpush1.bf16.msra.mxu0 %v6140_v18 }
  0x1d   :  { %2305 = vmatprep.subr.bf16.mxu0 %v6149_v19 }
  0x1e   :  { %6779 = vmatpush3.bf16.msra.mxu1 %v6960_v20  ;;  %v753_v20 = vld [vmem:[%s10095_s7 + $0x100] sm:$0xff] }
  0x1f   :  { %6780 = vmatprep.subr.bf16.mxu1 %v6961_v21 }
  0x22   :  { %6781 = vmatpush3.bf16.msra.mxu1 %v6961_v21  ;;  %v757_v21 = vld [vmem:[%s10095_s7 + $0x120] sm:$0xff] }
  0x23   :  { %527 = vmatprep.subr.bf16.mxu1 %v6964_v22  ;;  %v6148_v22 = vcombine.low %v745_v16, %v749_v17 }
  0x25   :  { %2306 = vmatpush1.bf16.msra.mxu0 %v6148_v22 }
  0xd9   :  { %v6760_v24 = vpop.f32.mrb[0].mxu0 }
  0xda   :  { %v131_v25 = vadd.f32 %v6760_v24, %v6078_v23  ;;  %v122_v26 = vpop.f32.mrb[1].mxu0  ;;  %v761_v24 = vld [vmem:[%s10095_s7 + $0x140] sm:$0xff] }
  0xdb   :  { %v123_v27 = vadd.f32 %v6078_v23, %v122_v26  ;;  %v6761_v28 = vpop.f32.mrb[2].mxu0  ;;  %v6156_v26 = vcombine.low %v753_v20, %v757_v21 }
  0xdc   :  { %v134_v29 = vadd.f32 %v6761_v28, %v6078_v23  ;;  %v125_v30 = vpop.f32.mrb[3].mxu0  ;;  %v155_v32 = vmax.f32 %v131_v25, 0.0  ;;  %v765_v25 = vld [vmem:[%s10095_s7 + $0x160] sm:$0xff] }
  0xdd   :  { %v126_v31 = vadd.f32 %v6078_v23, %v125_v30  ;;  %v153_v34 = vmax.f32 %v123_v27, 0.0  ;;  %v6165_v27 = vcombine.high %v761_v24, %v765_v25  ;;  %v769_v28 = vld [vmem:[%s10095_s7 + $0x180] sm:$0xff]  ;;  %v6164_v30 = vcombine.low %v761_v24, %v765_v25  ;;  %v6994_v25 = vld [vmem:[%s10093_s5 + $0x4c] ss:$16 sps:$4 sm:$0xff]  }
  0xde   :  { %v156_v33 = vmax.f32 %v134_v29, 0.0  ;;  %v773_v29 = vld [vmem:[%s10095_s7 + $0x1a0] sm:$0xff] }
  0xdf   :  { %v154_v35 = vmax.f32 %v126_v31, 0.0  ;;  %v6173_v31 = vcombine.high %v769_v28, %v773_v29 }
  0xe0   :  { %v162_v36 = vpack.c.bf16 %v156_v33, %v155_v32  ;;  %v777_v32 = vld [vmem:[%s10095_s7 + $0x1c0] sm:$0xff] }
  0xe1   :  { %v161_v37 = vpack.c.bf16 %v154_v35, %v153_v34  ;;  %v6764_v38 = vpop.f32.mrb[4].mxu0  ;;  %v781_v33 = vld [vmem:[%s10095_s7 + $0x1e0] sm:$0xff]  ;;  %v6172_v34 = vcombine.low %v769_v28, %v773_v29 }
  0xe2   :  { %v147_v40 = vadd.f32 %v6764_v38, %v6078_v23  ;;  %v138_v41 = vpop.f32.mrb[5].mxu0  ;;  %v6181_v35 = vcombine.high %v777_v32, %v781_v33  ;;  %v6180_v38 = vcombine.low %v777_v32, %v781_v33  ;;  %v6997_v32 = vld [vmem:[%s10093_s5 + $0x6c] ss:$16 sps:$4 sm:$0xff]   ;;  %v6995_v33 = vld [vmem:[%s10093_s5 + $0x68] ss:$16 sps:$4 sm:$0xff]  }
  0xe3   :  { %6782 = vmatprep.mubr.bf16.mxu1 %v161_v37  ;;  %v139_v43 = vadd.f32 %v6078_v23, %v138_v41  ;;  %v6765_v44 = vpop.f32.mrb[6].mxu0  ;;  %v789_v37 = vld [vmem:[%s10095_s7 + $0x220] sm:$0xff] }
  0xe4   :  { %6783 = vmatmul.mubr.bf16.vlgmr.msra.gmra.mrb[0].mxu1 %v162_v36  ;;  %v159_v45 = vmax.f32 %v147_v40, 0.0  ;;  %v150_v46 = vadd.f32 %v6765_v44, %v6078_v23  ;;  %v141_v47 = vpop.f32.mrb[7].mxu0  ;;  %v785_v36 = vld [vmem:[%s10095_s7 + $0x200] sm:$0xff] }
  0xe5   :  { %v157_v48 = vmax.f32 %v139_v43, 0.0  ;;  %v142_v49 = vadd.f32 %v6078_v23, %v141_v47  ;;  %528 = vmatpush1.bf16.msra.mxu1 %v6962_v39  ;;  %v6157_v23 = vcombine.high %v753_v20, %v757_v21  ;;  %v6189_v39 = vcombine.high %v785_v36, %v789_v37  ;;  %v793_v40 = vld [vmem:[%s10095_s7 + $0x240] sm:$0xff]  ;;  %v6989_v20 = vld [vmem:[%s10093_s5 + $0x28] ss:$16 sps:$4 sm:$0xff]  }
  0xe6   :  { %v160_v51 = vmax.f32 %v150_v46, 0.0  ;;  %529 = vmatprep.subr.bf16.mxu1 %v6967_v42  ;;  %v797_v41 = vld [vmem:[%s10095_s7 + $0x260] sm:$0xff]  ;;  %v6188_v42 = vcombine.low %v785_v36, %v789_v37  ;;  %v7003_v36 = vld [vmem:[%s10093_s5 + $0xac] ss:$16 sps:$4 sm:$0xff]   ;;  %v7001_v37 = vld [vmem:[%s10093_s5 + $0xa8] ss:$16 sps:$4 sm:$0xff]  }
  0xe7   :  { %v158_v53 = vmax.f32 %v142_v49, 0.0  ;;  %2307 = vmatprep.subr.bf16.mxu0 %v6157_v23  ;;  %v6197_v43 = vcombine.high %v793_v40, %v797_v41  ;;  %v801_v44 = vld [vmem:[%s10095_s7 + $0x280] sm:$0xff]  ;;  %v6196_v46 = vcombine.low %v793_v40, %v797_v41  ;;  %v7009_v40 = vld [vmem:[%s10093_s5 + $0xec] ss:$16 sps:$4 sm:$0xff]  }
  0xe8   :  { %v164_v54 = vpack.c.bf16 %v160_v51, %v159_v45  ;;  %2308 = vmatpush1.bf16.msra.mxu0 %v6156_v26  ;;  %v805_v45 = vld [vmem:[%s10095_s7 + $0x2a0] sm:$0xff]  ;;  %v722_v41 = vld [vmem:[%s10095_s7 + $0x8] sm:$0xff] }
  0xe9   :  { %v163_v55 = vpack.c.bf16 %v158_v53, %v157_v48  ;;  %530 = vmatpush1.bf16.msra.mxu1 %v6965_v50  ;;  %2309 = vmatprep.subr.bf16.mxu0 %v6165_v27  ;;  %v6205_v47 = vcombine.high %v801_v44, %v805_v45  ;;  %v809_v48 = vld [vmem:[%s10095_s7 + $0x2c0] sm:$0xff]  ;;  %v6204_v50 = vcombine.low %v801_v44, %v805_v45  ;;  %v730_v45 = vld [vmem:[%s10095_s7 + $0x48] sm:$0xff] }
  0xea   :  { %531 = vmatprep.subr.bf16.mxu1 %v6970_v52  ;;  %v813_v49 = vld [vmem:[%s10095_s7 + $0x2e0] sm:$0xff] }
  0xeb   :  { %6786 = vmatprep.mubr.bf16.mxu1 %v163_v55  ;;  %v6213_v51 = vcombine.high %v809_v48, %v813_v49  ;;  %v817_v52 = vld [vmem:[%s10095_s7 + $0x300] sm:$0xff] }
  0xec   :  { %6787 = vmatmul.mubr.bf16.gmra.mrb[4].mxu1 %v164_v54  ;;  %2310 = vmatpush1.bf16.msra.mxu0 %v6164_v30  ;;  %v821_v53 = vld [vmem:[%s10095_s7 + $0x320] sm:$0xff]  ;;  %v6212_v54 = vcombine.low %v809_v48, %v813_v49  ;;  %v6992_v30 = vld [vmem:[%s10093_s5 + $0x48] ss:$16 sps:$4 sm:$0xff]  }
  0xed   :  { %532 = vmatpush1.bf16.msra.mxu1 %v6968_v56  ;;  %559 = vmatprep.mubr.bf16.mxu1 %v7506_v4  ;;  %v6221_v55 = vcombine.high %v817_v52, %v821_v53  ;;  %v825_v56 = vld [vmem:[%s10095_s7 + $0x340] sm:$0xff]  ;;  %v738_v49 = vld [vmem:[%s10095_s7 + $0x88] sm:$0xff] }
  0xee   :  { %533 = vmatprep.subr.bf16.mxu1 %v6973_v57  ;;  %2311 = vmatprep.subr.bf16.mxu0 %v6173_v31  ;;  %v829_v57 = vld [vmem:[%s10095_s7 + $0x360] sm:$0xff] }
  0xf0   :  { %2312 = vmatpush1.bf16.msra.mxu0 %v6172_v34  ;;  %v7000_v34 = vld [vmem:[%s10093_s5 + $0x8c] ss:$16 sps:$4 sm:$0xff]  }
  0xf1   :  { %534 = vmatpush1.bf16.msra.mxu1 %v6971_v58  ;;  %2313 = vmatprep.subr.bf16.mxu0 %v6181_v35  ;;  %v6220_v58 = vcombine.low %v817_v52, %v821_v53  ;;  %v6998_v35 = vld [vmem:[%s10093_s5 + $0x88] ss:$16 sps:$4 sm:$0xff]  }
  0xf2   :  { %535 = vmatprep.subr.bf16.mxu1 %v6976_v59  ;;  %v6229_v59 = vcombine.high %v825_v56, %v829_v57  ;;  %v746_v53 = vld [vmem:[%s10095_s7 + $0xc8] sm:$0xff] }
  0xf4   :  { %2314 = vmatpush1.bf16.msra.mxu0 %v6180_v38  ;;  %v7006_v38 = vld [vmem:[%s10093_s5 + $0xcc] ss:$16 sps:$4 sm:$0xff]  }
  0xf5   :  { %536 = vmatpush1.bf16.msra.mxu1 %v6974_v60  ;;  %2315 = vmatprep.subr.bf16.mxu0 %v6189_v39  ;;  %v6228_v60 = vcombine.low %v825_v56, %v829_v57  ;;  %v7004_v39 = vld [vmem:[%s10093_s5 + $0xc8] ss:$16 sps:$4 sm:$0xff]  }
  0xf6   :  { %537 = vmatprep.subr.bf16.mxu1 %v6979_v61  ;;  %v6083_v61 = vld [vmem:[%s10096_s4] ss:$0 sm:$0xff]  ;;  %v754_v57 = vld [vmem:[%s10095_s7 + $0x108] sm:$0xff] }
  0xf8   :  { %2316 = vmatpush1.bf16.msra.mxu0 %v6188_v42  ;;  %v726_v42 = vld [vmem:[%s10095_s7 + $0x28] sm:$0xff] }
  0xf9   :  { %538 = vmatpush1.bf16.msra.mxu1 %v6977_v62  ;;  %2317 = vmatprep.subr.bf16.mxu0 %v6197_v43  ;;  %v7007_v43 = vld [vmem:[%s10093_s5 + $0xe8] ss:$16 sps:$4 sm:$0xff]   ;;  %v6127_v44 = vcombine.high %v722_v41, %v726_v42 }
  0xfa   :  { %539 = vmatprep.subr.bf16.mxu1 %v6982_v63 }
  0xfc   :  { %2318 = vmatpush1.bf16.msra.mxu0 %v6196_v46  ;;  %v734_v46 = vld [vmem:[%s10095_s7 + $0x68] sm:$0xff] }
  0xfd   :  { %540 = vmatpush1.bf16.msra.mxu1 %v6980_v0  ;;  %2319 = vmatprep.subr.bf16.mxu0 %v6205_v47  ;;  %v6126_v47 = vcombine.low %v722_v41, %v726_v42  ;;  %v6135_v48 = vcombine.high %v730_v45, %v734_v46  ;;  %v841_v42 = vld [vmem:[%s10095_s7 + $0x3c0] sm:$0xff] }
  0xfe   :  { %541 = vmatprep.subr.bf16.mxu1 %v6985_v1 }
 0x100   :  { %2320 = vmatpush1.bf16.msra.mxu0 %v6204_v50  ;;  %v742_v50 = vld [vmem:[%s10095_s7 + $0xa8] sm:$0xff] }
 0x101   :  { %542 = vmatpush1.bf16.msra.mxu1 %v6983_v2  ;;  %2321 = vmatprep.subr.bf16.mxu0 %v6213_v51  ;;  %v6134_v51 = vcombine.low %v730_v45, %v734_v46  ;;  %v6143_v52 = vcombine.high %v738_v49, %v742_v50  ;;  %v846_v46 = vld [vmem:[%s10095_s7 + $0x3e8] sm:$0xff] }
 0x102   :  { %600 = vmatprep.subr.bf16.mxu1 %v6988_v3 }
 0x104   :  { %2322 = vmatpush1.bf16.msra.mxu0 %v6212_v54  ;;  %v750_v54 = vld [vmem:[%s10095_s7 + $0xe8] sm:$0xff] }
 0x105   :  { %2323 = vmatprep.subr.bf16.mxu0 %v6221_v55  ;;  %v6142_v55 = vcombine.low %v738_v49, %v742_v50  ;;  %v6151_v56 = vcombine.high %v746_v53, %v750_v54  ;;  %v849_v50 = vld [vmem:[%s10095_s7 + $0x400] sm:$0xff] }
 0x108   :  { %2324 = vmatpush1.bf16.msra.mxu0 %v6220_v58  ;;  %v758_v58 = vld [vmem:[%s10095_s7 + $0x128] sm:$0xff] }
 0x109   :  { %2325 = vmatprep.subr.bf16.mxu0 %v6229_v59  ;;  %v6150_v59 = vcombine.low %v746_v53, %v750_v54  ;;  %v854_v54 = vld [vmem:[%s10095_s7 + $0x428] sm:$0xff] }
 0x10c   :  { %2326 = vmatpush1.bf16.msra.mxu0 %v6228_v60  ;;  %v6159_v60 = vcombine.high %v754_v57, %v758_v58 }
 0x1b7   :  { %v6784_v62 = vpop.f32.mrb[0].mxu1 }
 0x1b8   :  { %v279_v63 = vadd.f32 %v6784_v62, %v6083_v61  ;;  %v270_v0 = vpop.f32.mrb[1].mxu1  ;;  %v766_v62 = vld [vmem:[%s10095_s7 + $0x168] sm:$0xff] }
 0x1b9   :  { %v271_v1 = vadd.f32 %v6083_v61, %v270_v0  ;;  %v6785_v2 = vpop.f32.mrb[2].mxu1 }
 0x1ba   :  { %v282_v3 = vadd.f32 %v6785_v2, %v6083_v61  ;;  %v273_v5 = vpop.f32.mrb[3].mxu1  ;;  %v303_v7 = vmax.f32 %v279_v63, 0.0  ;;  %v6158_v63 = vcombine.low %v754_v57, %v758_v58  ;;  %v774_v2 = vld [vmem:[%s10095_s7 + $0x1a8] sm:$0xff]  ;;  %v347_v58 = vlaneseq }
 0x1bb   :  { %v274_v6 = vadd.f32 %v6083_v61, %v273_v5  ;;  %v301_v9 = vmax.f32 %v271_v1, 0.0  ;;  %v770_v1 = vld [vmem:[%s10095_s7 + $0x188] sm:$0xff] }
 0x1bc   :  { %v304_v8 = vmax.f32 %v282_v3, 0.0  ;;  %v6175_v5 = vcombine.high %v770_v1, %v774_v2 }
 0x1bd   :  { %v302_v10 = vmax.f32 %v274_v6, 0.0  ;;  %v778_v6 = vld [vmem:[%s10095_s7 + $0x1c8] sm:$0xff] }
 0x1be   :  { %v7784_v11 = vpack.c.bf16 %v304_v8, %v303_v7  ;;  %v782_v7 = vld [vmem:[%s10095_s7 + $0x1e8] sm:$0xff]  ;;  %v6174_v8 = vcombine.low %v770_v1, %v774_v2 }
 0x1bf   :  { %v309_v13 = vpack.c.bf16 %v302_v10, %v301_v9  ;;  %v6788_v15 = vpop.f32.mrb[4].mxu1  ;;  %v6183_v9 = vcombine.high %v778_v6, %v782_v7  ;;  %v790_v10 = vld [vmem:[%s10095_s7 + $0x228] sm:$0xff] }
 0x1c0   :  { %v295_v16 = vadd.f32 %v6788_v15, %v6083_v61  ;;  %v286_v17 = vpop.f32.mrb[5].mxu1 }
 0x1c1   :  { %560 = vmatmul.mubr.bf16.vlgmr.msra.gmra.mrb[8].mxu1 %v309_v13  ;;  %v287_v18 = vadd.f32 %v6083_v61, %v286_v17  ;;  %v6789_v19 = vpop.f32.mrb[6].mxu1  ;;  %v802_v17 = vld [vmem:[%s10095_s7 + $0x288] sm:$0xff] }
 0x1c2   :  { %601 = vmatpush1.bf16.msra.mxu1 %v6986_v12  ;;  %v307_v21 = vmax.f32 %v295_v16, 0.0  ;;  %569 = vmatprep.mubr.bf16.mxu1 %v7506_v4  ;;  %v298_v22 = vadd.f32 %v6789_v19, %v6083_v61  ;;  %v289_v23 = vpop.f32.mrb[7].mxu1 }
 0x1c3   :  { %602 = vmatprep.subr.bf16.mxu1 %v6991_v14  ;;  %v305_v24 = vmax.f32 %v287_v18, 0.0  ;;  %v290_v26 = vadd.f32 %v6083_v61, %v289_v23  ;;  %v762_v61 = vld [vmem:[%s10095_s7 + $0x148] sm:$0xff] }
 0x1c4   :  { %v308_v27 = vmax.f32 %v298_v22, 0.0  ;;  %v6167_v0 = vcombine.high %v762_v61, %v766_v62  ;;  %v6166_v3 = vcombine.low %v762_v61, %v766_v62  ;;  %v798_v14 = vld [vmem:[%s10095_s7 + $0x268] sm:$0xff]  ;;  %v7976_v61 = vld [vmem:[%s10097_s6] sm:$0xf] }
 0x1c5   :  { %v306_v28 = vmax.f32 %v290_v26, 0.0  ;;  %v806_v18 = vld [vmem:[%s10095_s7 + $0x2a8] sm:$0xff] }
 0x1c6   :  { %603 = vmatpush1.bf16.msra.mxu1 %v6989_v20  ;;  %v7799_v29 = vpack.c.bf16 %v308_v27, %v307_v21  ;;  %v6207_v20 = vcombine.high %v802_v17, %v806_v18  ;;  %v810_v21 = vld [vmem:[%s10095_s7 + $0x2c8] sm:$0xff]  ;;  %v6206_v23 = vcombine.low %v802_v17, %v806_v18 }
 0x1c7   :  { %604 = vmatprep.subr.bf16.mxu1 %v6994_v25  ;;  %v7804_v31 = vpack.c.bf16 %v306_v28, %v305_v24  ;;  %v814_v22 = vld [vmem:[%s10095_s7 + $0x2e8] sm:$0xff] }
 0x1c8   :  { %v6215_v24 = vcombine.high %v810_v21, %v814_v22  ;;  %v818_v25 = vld [vmem:[%s10095_s7 + $0x308] sm:$0xff]  ;;  %v6214_v27 = vcombine.low %v810_v21, %v814_v22 }
 0x1c9   :  { %570 = vmatmul.mubr.bf16.gmra.mrb[12].mxu1 %v7784_v11  ;;  %v822_v26 = vld [vmem:[%s10095_s7 + $0x328] sm:$0xff] }
 0x1ca   :  { %605 = vmatpush1.bf16.msra.mxu1 %v6992_v30  ;;  %579 = vmatprep.mubr.bf16.mxu1 %v7506_v4  ;;  %v6223_v28 = vcombine.high %v818_v25, %v822_v26  ;;  %v830_v30 = vld [vmem:[%s10095_s7 + $0x368] sm:$0xff] }
 0x1cb   :  { %606 = vmatprep.subr.bf16.mxu1 %v6997_v32 }
 0x1ce   :  { %607 = vmatpush1.bf16.msra.mxu1 %v6995_v33 }
 0x1cf   :  { %608 = vmatprep.subr.bf16.mxu1 %v7000_v34  ;;  %v833_v34 = vld [vmem:[%s10095_s7 + $0x380] sm:$0xff] }
 0x1d1   :  { %580 = vmatmul.mubr.bf16.gmra.mrb[16].mxu1 %v7804_v31 }
 0x1d2   :  { %609 = vmatpush1.bf16.msra.mxu1 %v6998_v35  ;;  %589 = vmatprep.mubr.bf16.mxu1 %v7506_v4  ;;  %v837_v35 = vld [vmem:[%s10095_s7 + $0x3a0] sm:$0xff] }
 0x1d3   :  { %610 = vmatprep.subr.bf16.mxu1 %v7003_v36  ;;  %v834_v36 = vld [vmem:[%s10095_s7 + $0x388] sm:$0xff] }
 0x1d6   :  { %611 = vmatpush1.bf16.msra.mxu1 %v7001_v37  ;;  %v6237_v37 = vcombine.high %v833_v34, %v837_v35 }
 0x1d7   :  { %612 = vmatprep.subr.bf16.mxu1 %v7006_v38  ;;  %v838_v38 = vld [vmem:[%s10095_s7 + $0x3a8] sm:$0xff] }
 0x1d8   :  { %2327 = vmatprep.subr.bf16.mxu0 %v6237_v37  ;;  %v6238_v41 = vcombine.low %v834_v36, %v838_v38 }
 0x1d9   :  { %590 = vmatmul.mubr.bf16.gmra.mrb[20].mxu1 %v7799_v29 }
 0x1da   :  { %613 = vmatpush1.bf16.msra.mxu1 %v7004_v39  ;;  %632 = vmatprep.mubr.bf16.mxu1 %v7506_v4  ;;  %v6236_v39 = vcombine.low %v833_v34, %v837_v35 }
 0x1db   :  { %614 = vmatprep.subr.bf16.mxu1 %v7009_v40  ;;  %v6239_v40 = vcombine.high %v834_v36, %v838_v38 }
 0x1dc   :  { %2328 = vmatpush1.bf16.msra.mxu0 %v6236_v39  ;;  %v873_v39 = vld [vmem:[%s10095_s7 + $0x4c0] sm:$0xff] }
 0x1de   :  { %615 = vmatpush1.bf16.msra.mxu1 %v7007_v43  ;;  %v845_v43 = vld [vmem:[%s10095_s7 + $0x3e0] sm:$0xff] }
 0x1df   :  { %2445 = vmatprep.subr.bf16.mxu1 %v6127_v44  ;;  %v842_v44 = vld [vmem:[%s10095_s7 + $0x3c8] sm:$0xff]  ;;  %v6245_v45 = vcombine.high %v841_v42, %v845_v43 }
 0x1e0   :  { %v6246_v49 = vcombine.low %v842_v44, %v846_v46 }
 0x1e1   :  { %633 = vmatmul.mubr.bf16.vlgmr.msra.gmra.mrb[24].mxu1 %v309_v13  ;;  %v794_v13 = vld [vmem:[%s10095_s7 + $0x248] sm:$0xff]  ;;  %2329 = vmatprep.subr.bf16.mxu0 %v6245_v45 }
 0x1e2   :  { %642 = vmatprep.mubr.bf16.mxu1 %v7506_v4  ;;  %2446 = vmatpush1.bf16.msra.mxu1 %v6126_v47  ;;  %v6199_v16 = vcombine.high %v794_v13, %v798_v14  ;;  %v6198_v19 = vcombine.low %v794_v13, %v798_v14  ;;  %v6244_v47 = vcombine.low %v841_v42, %v845_v43  ;;  %v861_v14 = vld [vmem:[%s10095_s7 + $0x460] sm:$0xff]  ;;  %v874_v43 = vld [vmem:[%s10095_s7 + $0x4c8] sm:$0xff] }
 0x1e3   :  { %2447 = vmatprep.subr.bf16.mxu1 %v6135_v48  ;;  %v6247_v48 = vcombine.high %v842_v44, %v846_v46  ;;  %v877_v42 = vld [vmem:[%s10095_s7 + $0x4e0] sm:$0xff]  ;;  %v878_v44 = vld [vmem:[%s10095_s7 + $0x4e8] sm:$0xff] }
 0x1e4   :  { %2330 = vmatpush1.bf16.msra.mxu0 %v6244_v47 }
 0x1e6   :  { %2448 = vmatpush1.bf16.msra.mxu1 %v6134_v51  ;;  %v853_v51 = vld [vmem:[%s10095_s7 + $0x420] sm:$0xff] }
 0x1e7   :  { %2449 = vmatprep.subr.bf16.mxu1 %v6143_v52  ;;  %v850_v52 = vld [vmem:[%s10095_s7 + $0x408] sm:$0xff]  ;;  %v6253_v53 = vcombine.high %v849_v50, %v853_v51 }
 0x1e8   :  { %v6255_v57 = vcombine.high %v850_v52, %v854_v54 }
 0x1e9   :  { %643 = vmatmul.mubr.bf16.gmra.mrb[28].mxu1 %v7784_v11  ;;  %v6182_v11 = vcombine.low %v778_v6, %v782_v7  ;;  %2372 = vmatprep.subr.bf16.mxu0 %v6253_v53 }
 0x1ea   :  { %652 = vmatprep.mubr.bf16.mxu1 %v7506_v4  ;;  %2450 = vmatpush1.bf16.msra.mxu1 %v6142_v55  ;;  %v6252_v55 = vcombine.low %v849_v50, %v853_v51  ;;  %v6277_v51 = vcombine.high %v873_v39, %v877_v42 }
 0x1eb   :  { %2451 = vmatprep.subr.bf16.mxu1 %v6151_v56  ;;  %v6254_v56 = vcombine.low %v850_v52, %v854_v54  ;;  %v6279_v52 = vcombine.high %v874_v43, %v878_v44  ;;  %v881_v54 = vld [vmem:[%s10095_s7 + $0x500] sm:$0xff] }
 0x1ee   :  { %2452 = vmatpush1.bf16.msra.mxu1 %v6150_v59  ;;  %v7968_v59 = vshrl.u32 %v347_v58, 7  ;;  %v882_v58 = vld [vmem:[%s10095_s7 + $0x508] sm:$0xff] }
 0x1ef   :  { %2453 = vmatprep.subr.bf16.mxu1 %v6159_v60 }
 0x1f0   :  { %v7971_v60 = vsub.s32 0, %v7968_v59  ;;  %v7979_v62 = vsub.s32 1, %v7968_v59 }
 0x1f1   :  { %653 = vmatmul.mubr.bf16.gmra.mrb[32].mxu1 %v7804_v31  ;;  %v6222_v31 = vcombine.low %v818_v25, %v822_v26 }
 0x1f2   :  { %662 = vmatprep.mubr.bf16.mxu1 %v7506_v4  ;;  %2454 = vmatpush1.bf16.msra.mxu1 %v6158_v63  ;;  %v786_v4 = vld [vmem:[%s10095_s7 + $0x208] sm:$0xff]  ;;  %v7983_v63 = vrot.slane %v7976_v61, %v7971_v60 }
 0x1f3   :  { %2455 = vmatprep.subr.bf16.mxu1 %v6167_v0  ;;  %v6191_v12 = vcombine.high %v786_v4, %v790_v10  ;;  %v6190_v15 = vcombine.low %v786_v4, %v790_v10  ;;  %v7987_v0 = vrot.slane %v7976_v61, %v7979_v62 }
 0x1f6   :  { %2456 = vmatpush1.bf16.msra.mxu1 %v6166_v3 }
 0x1f7   :  { %2457 = vmatprep.subr.bf16.mxu1 %v6175_v5 }
 0x1f9   :  { %663 = vmatmul.mubr.bf16.gmra.mrb[36].mxu1 %v7799_v29  ;;  %v826_v29 = vld [vmem:[%s10095_s7 + $0x348] sm:$0xff] }
 0x1fa   :  { %2458 = vmatpush1.bf16.msra.mxu1 %v6174_v8  ;;  %v6231_v32 = vcombine.high %v826_v29, %v830_v30  ;;  %v6230_v33 = vcombine.low %v826_v29, %v830_v30  ;;  %v870_v29 = vld [vmem:[%s10095_s7 + $0x4a8] sm:$0xff] }
 0x1fb   :  { %2459 = vmatprep.subr.bf16.mxu1 %v6183_v9 }
 0x1fe   :  { %2460 = vmatpush1.bf16.msra.mxu1 %v6182_v11  ;;  %v857_v11 = vld [vmem:[%s10095_s7 + $0x440] sm:$0xff] }
 0x1ff   :  { %2461 = vmatprep.subr.bf16.mxu1 %v6191_v12  ;;  %v6261_v22 = vcombine.high %v857_v11, %v861_v14 }
 0x202   :  { %2462 = vmatpush1.bf16.msra.mxu1 %v6190_v15  ;;  %v858_v15 = vld [vmem:[%s10095_s7 + $0x448] sm:$0xff] }
 0x203   :  { %2463 = vmatprep.subr.bf16.mxu1 %v6199_v16  ;;  %v862_v16 = vld [vmem:[%s10095_s7 + $0x468] sm:$0xff] }
 0x204   :  { %v6262_v34 = vcombine.low %v858_v15, %v862_v16 }
 0x206   :  { %2464 = vmatpush1.bf16.msra.mxu1 %v6198_v19 }
 0x207   :  { %2465 = vmatprep.subr.bf16.mxu1 %v6207_v20 }
 0x20a   :  { %2466 = vmatpush1.bf16.msra.mxu1 %v6206_v23  ;;  %v6263_v23 = vcombine.high %v858_v15, %v862_v16  ;;  %v890_v15 = vld [vmem:[%s10095_s7 + $0x548] sm:$0xff] }
 0x20b   :  { %2467 = vmatprep.subr.bf16.mxu1 %v6215_v24  ;;  %v865_v24 = vld [vmem:[%s10095_s7 + $0x480] sm:$0xff]  ;;  %v894_v16 = vld [vmem:[%s10095_s7 + $0x568] sm:$0xff] }
 0x20e   :  { %2468 = vmatpush1.bf16.msra.mxu1 %v6214_v27  ;;  %v869_v27 = vld [vmem:[%s10095_s7 + $0x4a0] sm:$0xff] }
 0x20f   :  { %2469 = vmatprep.subr.bf16.mxu1 %v6223_v28  ;;  %v866_v28 = vld [vmem:[%s10095_s7 + $0x488] sm:$0xff]  ;;  %v6269_v37 = vcombine.high %v865_v24, %v869_v27  ;;  %v6268_v47 = vcombine.low %v865_v24, %v869_v27  ;;  %v6295_v27 = vcombine.high %v890_v15, %v894_v16 }
 0x210   :  { %v6271_v38 = vcombine.high %v866_v28, %v870_v29 }
 0x212   :  { %2470 = vmatpush1.bf16.msra.mxu1 %v6222_v31 }
 0x213   :  { %2471 = vmatprep.subr.bf16.mxu1 %v6231_v32 }
 0x216   :  { %2472 = vmatpush1.bf16.msra.mxu1 %v6230_v33  ;;  %v6260_v33 = vcombine.low %v857_v11, %v861_v14  ;;  %v893_v14 = vld [vmem:[%s10095_s7 + $0x560] sm:$0xff] }
 0x217   :  { %2473 = vmatprep.subr.bf16.mxu1 %v6239_v40 }
 0x21a   :  { %2474 = vmatpush1.bf16.msra.mxu1 %v6238_v41 }
 0x21b   :  { %2475 = vmatprep.subr.bf16.mxu1 %v6247_v48  ;;  %v6270_v48 = vcombine.low %v866_v28, %v870_v29  ;;  %v8083_v28 = vsub.s32 2, %v7968_v59  ;;  %v897_v29 = vld [vmem:[%s10095_s7 + $0x580] sm:$0xff] }
 0x21e   :  { %2476 = vmatpush1.bf16.msra.mxu1 %v6246_v49 }
 0x21f   :  { %2518 = vmatprep.subr.bf16.mxu1 %v6255_v57  ;;  %v885_v57 = vld [vmem:[%s10095_s7 + $0x520] sm:$0xff] }
 0x294   :  { %v561_v1 = vpop.f32.mrb[8].mxu1 }
 0x295   :  { %v562_v2 = vadd.f32 %v561_v1, %v7983_v63  ;;  %v563_v3 = vpop.f32.mrb[9].mxu1  ;;  %v886_v1 = vld [vmem:[%s10095_s7 + $0x528] sm:$0xff] }
 0x296   :  { %v564_v5 = vadd.f32 %v563_v3, %v7987_v0  ;;  %v565_v6 = vpop.f32.mrb[10].mxu1  ;;  %v6287_v11 = vcombine.high %v882_v58, %v886_v1 }
 0x297   :  { %v566_v7 = vadd.f32 %v565_v6, %v7983_v63  ;;  %v567_v8 = vpop.f32.mrb[11].mxu1  ;;  %v673_v4 = vmax.f32 %v562_v2, 0.0  ;;  %v6276_v6 = vcombine.low %v873_v39, %v877_v42 }
 0x298   :  { %v568_v9 = vadd.f32 %v567_v8, %v7987_v0  ;;  %v674_v12 = vmax.f32 %v564_v5, 0.0 }
 0x299   :  { %v677_v10 = vmax.f32 %v566_v7, 0.0  ;;  %v6278_v7 = vcombine.low %v874_v43, %v878_v44  ;;  %v8109_v44 = vrot.slane %v7976_v61, %v8083_v28 }
 0x29a   :  { %v678_v13 = vmax.f32 %v568_v9, 0.0 }
 0x29b   :  { %v8005_v17 = vpack.c.bf16 %v677_v10, %v673_v4  ;;  %v6285_v10 = vcombine.high %v881_v54, %v885_v57 }
 0x29c   :  { %v8007_v18 = vpack.c.bf16 %v678_v13, %v674_v12  ;;  %v571_v19 = vpop.f32.mrb[12].mxu1  ;;  %v889_v12 = vld [vmem:[%s10095_s7 + $0x540] sm:$0xff] }
 0x29d   :  { %v572_v20 = vadd.f32 %v571_v19, %v7983_v63  ;;  %v573_v21 = vpop.f32.mrb[13].mxu1 }
 0x29e   :  { %v574_v25 = vadd.f32 %v573_v21, %v7987_v0  ;;  %v575_v26 = vpop.f32.mrb[14].mxu1  ;;  %2331 = vmatprep.mubr.bf16.mxu0 %v8007_v18  ;;  %2477 = vmatprep.mubr.bf16.mxu1 %v8007_v18  ;;  %v6284_v21 = vcombine.low %v881_v54, %v885_v57 }
 0x29f   :  { %v576_v30 = vadd.f32 %v575_v26, %v7983_v63  ;;  %v577_v31 = vpop.f32.mrb[15].mxu1  ;;  %2332 = vmatmul.mubr.bf16.vlgmr.msra.gmra.mrb[8].mxu0 %v8005_v17  ;;  %2478 = vmatmul.mubr.bf16.vlgmr.msra.gmra.mrb[40].mxu1 %v8005_v17  ;;  %v681_v35 = vmax.f32 %v572_v20, 0.0  ;;  %v6293_v26 = vcombine.high %v889_v12, %v893_v14 }
 0x2a0   :  { %v578_v32 = vadd.f32 %v577_v31, %v7987_v0  ;;  %2373 = vmatpush1.bf16.msra.mxu0 %v6252_v55  ;;  %2519 = vmatpush1.bf16.msra.mxu1 %v6254_v56  ;;  %v682_v40 = vmax.f32 %v574_v25, 0.0 }
 0x2a1   :  { %v685_v36 = vmax.f32 %v576_v30, 0.0  ;;  %2374 = vmatprep.subr.bf16.mxu0 %v6261_v22  ;;  %2520 = vmatprep.subr.bf16.mxu1 %v6263_v23  ;;  %v6286_v22 = vcombine.low %v882_v58, %v886_v1 }
 0x2a2   :  { %v686_v41 = vmax.f32 %v578_v32, 0.0  ;;  %v8092_v32 = vsub.s32 3, %v7968_v59 }
 0x2a3   :  { %v8041_v45 = vpack.c.bf16 %v685_v36, %v681_v35  ;;  %v902_v35 = vld [vmem:[%s10095_s7 + $0x5a8] sm:$0xff] }
 0x2a4   :  { %v8043_v46 = vpack.c.bf16 %v686_v41, %v682_v40  ;;  %2375 = vmatpush1.bf16.msra.mxu0 %v6260_v33  ;;  %2521 = vmatpush1.bf16.msra.mxu1 %v6262_v34  ;;  %v581_v49 = vpop.f32.mrb[16].mxu1  ;;  %v901_v33 = vld [vmem:[%s10095_s7 + $0x5a0] sm:$0xff]  ;;  %v898_v34 = vld [vmem:[%s10095_s7 + $0x588] sm:$0xff]  ;;  %v6292_v40 = vcombine.low %v889_v12, %v893_v14  ;;  %v6294_v41 = vcombine.low %v890_v15, %v894_v16 }
 0x2a5   :  { %2376 = vmatprep.subr.bf16.mxu0 %v6269_v37  ;;  %2522 = vmatprep.subr.bf16.mxu1 %v6271_v38  ;;  %v582_v50 = vadd.f32 %v581_v49, %v7983_v63  ;;  %v583_v53 = vpop.f32.mrb[17].mxu1 }
 0x2a6   :  { %2341 = vmatprep.mubr.bf16.mxu0 %v8043_v46  ;;  %2487 = vmatprep.mubr.bf16.mxu1 %v8043_v46  ;;  %v584_v55 = vadd.f32 %v583_v53, %v7987_v0  ;;  %v585_v56 = vpop.f32.mrb[18].mxu1 }
 0x2a7   :  { %2342 = vmatmul.mubr.bf16.gmra.mrb[12].mxu0 %v8041_v45  ;;  %2488 = vmatmul.mubr.bf16.gmra.mrb[44].mxu1 %v8041_v45  ;;  %v689_v2 = vmax.f32 %v582_v50, 0.0  ;;  %v586_v3 = vadd.f32 %v585_v56, %v7983_v63  ;;  %v587_v5 = vpop.f32.mrb[19].mxu1  ;;  %v8116_v50 = vrot.slane %v7976_v61, %v8092_v32  ;;  %v6302_v56 = vcombine.low %v898_v34, %v902_v35 }
 0x2a8   :  { %2377 = vmatpush1.bf16.msra.mxu0 %v6268_v47  ;;  %2523 = vmatpush1.bf16.msra.mxu1 %v6270_v48  ;;  %v690_v8 = vmax.f32 %v584_v55, 0.0  ;;  %v588_v9 = vadd.f32 %v587_v5, %v7987_v0  ;;  %v6303_v47 = vcombine.high %v898_v34, %v902_v35  ;;  %v905_v48 = vld [vmem:[%s10095_s7 + $0x5c0] sm:$0xff]  ;;  %v6300_v55 = vcombine.low %v897_v29, %v901_v33 }
 0x2a9   :  { %2378 = vmatprep.subr.bf16.mxu0 %v6277_v51  ;;  %2524 = vmatprep.subr.bf16.mxu1 %v6279_v52  ;;  %v693_v4 = vmax.f32 %v586_v3, 0.0  ;;  %v906_v51 = vld [vmem:[%s10095_s7 + $0x5c8] sm:$0xff]  ;;  %v913_v3 = vld [vmem:[%s10095_s7 + $0x600] sm:$0xff] }
 0x2aa   :  { %v694_v13 = vmax.f32 %v588_v9, 0.0  ;;  %v910_v52 = vld [vmem:[%s10095_s7 + $0x5e8] sm:$0xff] }
 0x2ab   :  { %v8077_v19 = vpack.c.bf16 %v693_v4, %v689_v2  ;;  %v6311_v2 = vcombine.high %v906_v51, %v910_v52  ;;  %v918_v9 = vld [vmem:[%s10095_s7 + $0x628] sm:$0xff] }
 0x2ac   :  { %2379 = vmatpush1.bf16.msra.mxu0 %v6276_v6  ;;  %2525 = vmatpush1.bf16.msra.mxu1 %v6278_v7  ;;  %v8079_v20 = vpack.c.bf16 %v694_v13, %v690_v8  ;;  %v591_v23 = vpop.f32.mrb[20].mxu1  ;;  %v917_v7 = vld [vmem:[%s10095_s7 + $0x620] sm:$0xff]  ;;  %v914_v8 = vld [vmem:[%s10095_s7 + $0x608] sm:$0xff]  ;;  %v6310_v13 = vcombine.low %v906_v51, %v910_v52 }
 0x2ad   :  { %2380 = vmatprep.subr.bf16.mxu0 %v6285_v10  ;;  %2526 = vmatprep.subr.bf16.mxu1 %v6287_v11  ;;  %v592_v24 = vadd.f32 %v591_v23, %v7983_v63  ;;  %v593_v25 = vpop.f32.mrb[21].mxu1  ;;  %v6317_v16 = vcombine.high %v913_v3, %v917_v7  ;;  %v6318_v34 = vcombine.low %v914_v8, %v918_v9 }
 0x2ae   :  { %v594_v30 = vadd.f32 %v593_v25, %v7987_v0  ;;  %v595_v31 = vpop.f32.mrb[22].mxu1  ;;  %2351 = vmatprep.mubr.bf16.mxu0 %v8079_v20  ;;  %2497 = vmatprep.mubr.bf16.mxu1 %v8079_v20  ;;  %v925_v25 = vld [vmem:[%s10095_s7 + $0x660] sm:$0xff] }
 0x2af   :  { %v697_v36 = vmax.f32 %v592_v24, 0.0  ;;  %v596_v37 = vadd.f32 %v595_v31, %v7983_v63  ;;  %v597_v38 = vpop.f32.mrb[23].mxu1  ;;  %2352 = vmatmul.mubr.bf16.gmra.mrb[16].mxu0 %v8077_v19  ;;  %2498 = vmatmul.mubr.bf16.gmra.mrb[48].mxu1 %v8077_v19  ;;  %v6301_v63 = vcombine.high %v897_v29, %v901_v33  ;;  %v6316_v33 = vcombine.low %v913_v3, %v917_v7  ;;  %v938_v3 = vld [vmem:[%s10095_s7 + $0x6c8] sm:$0xff] }
 0x2b0   :  { %2381 = vmatpush1.bf16.msra.mxu0 %v6284_v21  ;;  %2527 = vmatpush1.bf16.msra.mxu1 %v6286_v22  ;;  %v698_v39 = vmax.f32 %v594_v30, 0.0  ;;  %v598_v42 = vadd.f32 %v597_v38, %v7987_v0  ;;  %v909_v0 = vld [vmem:[%s10095_s7 + $0x5e0] sm:$0xff]  ;;  %v6319_v21 = vcombine.high %v914_v8, %v918_v9 }
 0x2b1   :  { %v701_v43 = vmax.f32 %v596_v37, 0.0  ;;  %2382 = vmatprep.subr.bf16.mxu0 %v6293_v26  ;;  %2528 = vmatprep.subr.bf16.mxu1 %v6295_v27  ;;  %v6309_v1 = vcombine.high %v905_v48, %v909_v0  ;;  %v6308_v12 = vcombine.low %v905_v48, %v909_v0  ;;  %v921_v22 = vld [vmem:[%s10095_s7 + $0x640] sm:$0xff]  ;;  %v922_v26 = vld [vmem:[%s10095_s7 + $0x648] sm:$0xff] }
 0x2b2   :  { %v702_v49 = vmax.f32 %v598_v42, 0.0  ;;  %v926_v27 = vld [vmem:[%s10095_s7 + $0x668] sm:$0xff]  ;;  %v6325_v37 = vcombine.high %v921_v22, %v925_v25  ;;  %v933_v42 = vld [vmem:[%s10095_s7 + $0x6a0] sm:$0xff]  ;;  %v6324_v0 = vcombine.low %v921_v22, %v925_v25 }
 0x2b3   :  { %v8127_v53 = vpack.c.bf16 %v701_v43, %v697_v36  ;;  %v6327_v38 = vcombine.high %v922_v26, %v926_v27  ;;  %v930_v43 = vld [vmem:[%s10095_s7 + $0x688] sm:$0xff]  ;;  %v6326_v51 = vcombine.low %v922_v26, %v926_v27 }
 0x2b4   :  { %v8129_v54 = vpack.c.bf16 %v702_v49, %v698_v39  ;;  %2383 = vmatpush1.bf16.msra.mxu0 %v6292_v40  ;;  %2529 = vmatpush1.bf16.msra.mxu1 %v6294_v41  ;;  %v634_v61 = vpop.f32.mrb[24].mxu1  ;;  %v929_v39 = vld [vmem:[%s10095_s7 + $0x680] sm:$0xff]  ;;  %v946_v22 = vld [vmem:[%s10095_s7 + $0x708] sm:$0xff] }
 0x2b5   :  { %v635_v57 = vadd.f32 %v634_v61, %v8109_v44  ;;  %v636_v58 = vpop.f32.mrb[25].mxu1  ;;  %2384 = vmatprep.subr.bf16.mxu0 %v6301_v63  ;;  %2530 = vmatprep.subr.bf16.mxu1 %v6303_v47  ;;  %v934_v63 = vld [vmem:[%s10095_s7 + $0x6a8] sm:$0xff]  ;;  %v6332_v9 = vcombine.low %v929_v39, %v933_v42 }
 0x2b6   :  { %v637_v5 = vadd.f32 %v636_v58, %v8116_v50  ;;  %v638_v6 = vpop.f32.mrb[26].mxu1  ;;  %2361 = vmatprep.mubr.bf16.mxu0 %v8129_v54  ;;  %2507 = vmatprep.mubr.bf16.mxu1 %v8129_v54 }
 0x2b7   :  { %v639_v4 = vadd.f32 %v638_v6, %v8109_v44  ;;  %v640_v10 = vpop.f32.mrb[27].mxu1  ;;  %2362 = vmatmul.mubr.bf16.gmra.mrb[20].mxu0 %v8127_v53  ;;  %2508 = vmatmul.mubr.bf16.gmra.mrb[52].mxu1 %v8127_v53  ;;  %v675_v14 = vmax.f32 %v635_v57, 0.0  ;;  %v937_v57 = vld [vmem:[%s10095_s7 + $0x6c0] sm:$0xff] }
 0x2b8   :  { %v641_v11 = vadd.f32 %v640_v10, %v8116_v50  ;;  %2385 = vmatpush1.bf16.msra.mxu0 %v6300_v55  ;;  %2531 = vmatpush1.bf16.msra.mxu1 %v6302_v56  ;;  %v676_v23 = vmax.f32 %v637_v5, 0.0  ;;  %v6333_v55 = vcombine.high %v929_v39, %v933_v42  ;;  %v6335_v56 = vcombine.high %v930_v43, %v934_v63  ;;  %v942_v5 = vld [vmem:[%s10095_s7 + $0x6e8] sm:$0xff] }
 0x2b9   :  { %v679_v15 = vmax.f32 %v639_v4, 0.0  ;;  %2386 = vmatprep.subr.bf16.mxu0 %v6309_v1  ;;  %2532 = vmatprep.subr.bf16.mxu1 %v6311_v2  ;;  %v941_v2 = vld [vmem:[%s10095_s7 + $0x6e0] sm:$0xff]  ;;  %v6334_v4 = vcombine.low %v930_v43, %v934_v63  ;;  %v958_v42 = vld [vmem:[%s10095_s7 + $0x768] sm:$0xff] }
 0x2ba   :  { %v680_v24 = vmax.f32 %v641_v11, 0.0  ;;  %v6340_v27 = vcombine.low %v937_v57, %v941_v2 }
 0x2bb   :  { %v8163_v29 = vpack.c.bf16 %v679_v15, %v675_v14  ;;  %v945_v14 = vld [vmem:[%s10095_s7 + $0x700] sm:$0xff] }
 0x2bc   :  { %v8165_v30 = vpack.c.bf16 %v680_v24, %v676_v23  ;;  %2387 = vmatpush1.bf16.msra.mxu0 %v6308_v12  ;;  %2533 = vmatpush1.bf16.msra.mxu1 %v6310_v13  ;;  %v644_v31 = vpop.f32.mrb[28].mxu1  ;;  %v6341_v12 = vcombine.high %v937_v57, %v941_v2  ;;  %v6343_v13 = vcombine.high %v938_v3, %v942_v5  ;;  %v950_v23 = vld [vmem:[%s10095_s7 + $0x728] sm:$0xff] }
 0x2bd   :  { %v645_v35 = vadd.f32 %v644_v31, %v8109_v44  ;;  %v646_v36 = vpop.f32.mrb[29].mxu1  ;;  %2388 = vmatprep.subr.bf16.mxu0 %v6317_v16  ;;  %2534 = vmatprep.subr.bf16.mxu1 %v6319_v21  ;;  %v949_v21 = vld [vmem:[%s10095_s7 + $0x720] sm:$0xff]  ;;  %v6342_v31 = vcombine.low %v938_v3, %v942_v5  ;;  %v966_v2 = vld [vmem:[%s10095_s7 + $0x7a8] sm:$0xff] }
 0x2be   :  { %v647_v40 = vadd.f32 %v646_v36, %v8116_v50  ;;  %v648_v41 = vpop.f32.mrb[30].mxu1  ;;  %2404 = vmatprep.mubr.bf16.mxu0 %v8165_v30  ;;  %2550 = vmatprep.mubr.bf16.mxu1 %v8165_v30  ;;  %v6351_v36 = vcombine.high %v946_v22, %v950_v23 }
 0x2bf   :  { %v649_v47 = vadd.f32 %v648_v41, %v8109_v44  ;;  %v650_v48 = vpop.f32.mrb[31].mxu1  ;;  %v683_v52 = vmax.f32 %v645_v35, 0.0  ;;  %v6349_v35 = vcombine.high %v945_v14, %v949_v21  ;;  %v954_v41 = vld [vmem:[%s10095_s7 + $0x748] sm:$0xff] }
 0x2c0   :  { %v651_v49 = vadd.f32 %v650_v48, %v8116_v50  ;;  %2389 = vmatpush1.bf16.msra.mxu0 %v6316_v33  ;;  %2535 = vmatpush1.bf16.msra.mxu1 %v6318_v34  ;;  %v684_v58 = vmax.f32 %v647_v40, 0.0  ;;  %v957_v40 = vld [vmem:[%s10095_s7 + $0x760] sm:$0xff]  ;;  %v6348_v48 = vcombine.low %v945_v14, %v949_v21  ;;  %v974_v21 = vld [vmem:[%s10095_s7 + $0x7e8] sm:$0xff] }
 0x2c1   :  { %v687_v61 = vmax.f32 %v649_v47, 0.0  ;;  %2390 = vmatprep.subr.bf16.mxu0 %v6325_v37  ;;  %2536 = vmatprep.subr.bf16.mxu1 %v6327_v38  ;;  %v953_v37 = vld [vmem:[%s10095_s7 + $0x740] sm:$0xff] }
 0x2c2   :  { %v688_v1 = vmax.f32 %v651_v49, 0.0  ;;  %v6350_v49 = vcombine.low %v946_v22, %v950_v23  ;;  %v969_v14 = vld [vmem:[%s10095_s7 + $0x7c0] sm:$0xff] }
 0x2c3   :  { %v8197_v6 = vpack.c.bf16 %v687_v61, %v683_v52  ;;  %v6357_v52 = vcombine.high %v953_v37, %v957_v40  ;;  %v6359_v61 = vcombine.high %v954_v41, %v958_v42 }
 0x2c4   :  { %v8199_v7 = vpack.c.bf16 %v688_v1, %v684_v58  ;;  %2391 = vmatpush1.bf16.msra.mxu0 %v6324_v0  ;;  %2537 = vmatpush1.bf16.msra.mxu1 %v6326_v51  ;;  %v654_v8 = vpop.f32.mrb[32].mxu1  ;;  %v965_v58 = vld [vmem:[%s10095_s7 + $0x7a0] sm:$0xff]  ;;  %v962_v1 = vld [vmem:[%s10095_s7 + $0x788] sm:$0xff] }
 0x2c5   :  { %v655_v10 = vadd.f32 %v654_v8, %v8109_v44  ;;  %v656_v11 = vpop.f32.mrb[33].mxu1  ;;  %2392 = vmatprep.subr.bf16.mxu0 %v6333_v55  ;;  %2538 = vmatprep.subr.bf16.mxu1 %v6335_v56  ;;  %v961_v55 = vld [vmem:[%s10095_s7 + $0x780] sm:$0xff] }
 0x2c6   :  { %v657_v15 = vadd.f32 %v656_v11, %v8116_v50  ;;  %v658_v16 = vpop.f32.mrb[34].mxu1 }
 0x2c7   :  { %v659_v24 = vadd.f32 %v658_v16, %v8109_v44  ;;  %v660_v25 = vpop.f32.mrb[35].mxu1  ;;  %v691_v33 = vmax.f32 %v655_v10, 0.0 }
 0x2c8   :  { %v661_v26 = vadd.f32 %v660_v25, %v8116_v50  ;;  %2393 = vmatpush1.bf16.msra.mxu0 %v6332_v9  ;;  %2539 = vmatpush1.bf16.msra.mxu1 %v6334_v4  ;;  %v692_v38 = vmax.f32 %v657_v15, 0.0  ;;  %v6356_v9 = vcombine.low %v953_v37, %v957_v40  ;;  %v6358_v4 = vcombine.low %v954_v41, %v958_v42  ;;  %v731_v40 = vld [vmem:[%s10095_s7 + $0x50] sm:$0xff]  ;;  %v732_v42 = vld [vmem:[%s10095_s7 + $0x58] sm:$0xff] }
 0x2c9   :  { %v695_v34 = vmax.f32 %v659_v24, 0.0  ;;  %2394 = vmatprep.subr.bf16.mxu0 %v6341_v12  ;;  %2540 = vmatprep.subr.bf16.mxu1 %v6343_v13  ;;  %v6365_v12 = vcombine.high %v961_v55, %v965_v58  ;;  %v6367_v13 = vcombine.high %v962_v1, %v966_v2  ;;  %v6364_v24 = vcombine.low %v961_v55, %v965_v58  ;;  %v735_v41 = vld [vmem:[%s10095_s7 + $0x70] sm:$0xff]  ;;  %v740_v55 = vld [vmem:[%s10095_s7 + $0x98] sm:$0xff] }
 0x2ca   :  { %v696_v39 = vmax.f32 %v661_v26, 0.0  ;;  %v6366_v25 = vcombine.low %v962_v1, %v966_v2 }
 0x2cb   :  { %v8229_v43 = vpack.c.bf16 %v695_v34, %v691_v33  ;;  %v727_v33 = vld [vmem:[%s10095_s7 + $0x30] sm:$0xff]  ;;  %v724_v34 = vld [vmem:[%s10095_s7 + $0x18] sm:$0xff] }
 0x2cc   :  { %v8231_v63 = vpack.c.bf16 %v696_v39, %v692_v38  ;;  %2395 = vmatpush1.bf16.msra.mxu0 %v6340_v27  ;;  %2541 = vmatpush1.bf16.msra.mxu1 %v6342_v31  ;;  %v664_v47 = vpop.f32.mrb[36].mxu1  ;;  %v723_v31 = vld [vmem:[%s10095_s7 + $0x10] sm:$0xff] }
 0x2cd   :  { %v665_v0 = vadd.f32 %v664_v47, %v8109_v44  ;;  %v666_v51 = vpop.f32.mrb[37].mxu1  ;;  %2396 = vmatprep.subr.bf16.mxu0 %v6349_v35  ;;  %2542 = vmatprep.subr.bf16.mxu1 %v6351_v36  ;;  %v728_v35 = vld [vmem:[%s10095_s7 + $0x38] sm:$0xff]  ;;  %v6129_v38 = vcombine.high %v723_v31, %v727_v33 }
 0x2ce   :  { %v667_v56 = vadd.f32 %v666_v51, %v8116_v50  ;;  %v668_v57 = vpop.f32.mrb[38].mxu1  ;;  %v6131_v39 = vcombine.high %v724_v34, %v728_v35  ;;  %v736_v47 = vld [vmem:[%s10095_s7 + $0x78] sm:$0xff] }
 0x2cf   :  { %v669_v3 = vadd.f32 %v668_v57, %v8109_v44  ;;  %v670_v5 = vpop.f32.mrb[39].mxu1  ;;  %v699_v10 = vmax.f32 %v665_v0, 0.0  ;;  %v973_v44 = vld [vmem:[%s10095_s7 + $0x7e0] sm:$0xff]  ;;  %v6137_v0 = vcombine.high %v731_v40, %v735_v41  ;;  %v6139_v51 = vcombine.high %v732_v42, %v736_v47 }
 0x2d0   :  { %v671_v8 = vadd.f32 %v670_v5, %v8116_v50  ;;  %2397 = vmatpush1.bf16.msra.mxu0 %v6348_v48  ;;  %2543 = vmatpush1.bf16.msra.mxu1 %v6350_v49  ;;  %v700_v15 = vmax.f32 %v667_v56, 0.0  ;;  %v970_v50 = vld [vmem:[%s10095_s7 + $0x7c8] sm:$0xff]  ;;  %v6373_v26 = vcombine.high %v969_v14, %v973_v44  ;;  %v6372_v36 = vcombine.low %v969_v14, %v973_v44  ;;  %v744_v56 = vld [vmem:[%s10095_s7 + $0xb8] sm:$0xff]  ;;  %v751_v5 = vld [vmem:[%s10095_s7 + $0xf0] sm:$0xff] }
 0x2d1   :  { %v703_v11 = vmax.f32 %v669_v3, 0.0  ;;  %2398 = vmatprep.subr.bf16.mxu0 %v6357_v52  ;;  %2544 = vmatprep.subr.bf16.mxu1 %v6359_v61  ;;  %v6375_v27 = vcombine.high %v970_v50, %v974_v21  ;;  %v6374_v37 = vcombine.low %v970_v50, %v974_v21  ;;  %v6128_v48 = vcombine.low %v723_v31, %v727_v33  ;;  %v739_v52 = vld [vmem:[%s10095_s7 + $0x90] sm:$0xff]  ;;  %v768_v31 = vld [vmem:[%s10095_s7 + $0x178] sm:$0xff] }
 0x2d2   :  { %v704_v16 = vmax.f32 %v671_v8, 0.0  ;;  %v6130_v49 = vcombine.low %v724_v34, %v728_v35  ;;  %v743_v61 = vld [vmem:[%s10095_s7 + $0xb0] sm:$0xff]  ;;  %v6136_v57 = vcombine.low %v731_v40, %v735_v41  ;;  %v6138_v58 = vcombine.low %v732_v42, %v736_v47  ;;  %v748_v8 = vld [vmem:[%s10095_s7 + $0xd8] sm:$0xff] }
 0x2d3   :  { %v8261_v22 = vpack.c.bf16 %v703_v11, %v699_v10  ;;  %v6145_v1 = vcombine.high %v739_v52, %v743_v61  ;;  %v6147_v2 = vcombine.high %v740_v55, %v744_v56  ;;  %v747_v3 = vld [vmem:[%s10095_s7 + $0xd0] sm:$0xff]  ;;  %v6146_v10 = vcombine.low %v740_v55, %v744_v56  ;;  %v776_v40 = vld [vmem:[%s10095_s7 + $0x1b8] sm:$0xff] }
 0x2d4   :  { %v8263_v23 = vpack.c.bf16 %v704_v16, %v700_v15  ;;  %2399 = vmatpush1.bf16.msra.mxu0 %v6356_v9  ;;  %2545 = vmatpush1.bf16.msra.mxu1 %v6358_v4  ;;  %v752_v9 = vld [vmem:[%s10095_s7 + $0xf8] sm:$0xff]  ;;  %v6144_v4 = vcombine.low %v739_v52, %v743_v61  ;;  %v6153_v11 = vcombine.high %v747_v3, %v751_v5  ;;  %v759_v14 = vld [vmem:[%s10095_s7 + $0x130] sm:$0xff] }
 0x2d5   :  { %2400 = vmatprep.subr.bf16.mxu0 %v6365_v12  ;;  %2546 = vmatprep.subr.bf16.mxu1 %v6367_v13  ;;  %v6155_v12 = vcombine.high %v748_v8, %v752_v9  ;;  %v755_v13 = vld [vmem:[%s10095_s7 + $0x110] sm:$0xff]  ;;  %v756_v15 = vld [vmem:[%s10095_s7 + $0x118] sm:$0xff]  ;;  %v6152_v44 = vcombine.low %v747_v3, %v751_v5  ;;  %v6154_v50 = vcombine.low %v748_v8, %v752_v9 }
 0x2d6   :  { %v760_v16 = vld [vmem:[%s10095_s7 + $0x138] sm:$0xff]  ;;  %v6161_v21 = vcombine.high %v755_v13, %v759_v14  ;;  %v6160_v33 = vcombine.low %v755_v13, %v759_v14  ;;  %v795_v9 = vld [vmem:[%s10095_s7 + $0x250] sm:$0xff] }
 0x2d7   :  { %v6162_v34 = vcombine.low %v756_v15, %v760_v16  ;;  %v784_v52 = vld [vmem:[%s10095_s7 + $0x1f8] sm:$0xff] }
 0x2d8   :  { %2401 = vmatpush1.bf16.msra.mxu0 %v6364_v24  ;;  %2547 = vmatpush1.bf16.msra.mxu1 %v6366_v25  ;;  %v6163_v24 = vcombine.high %v756_v15, %v760_v16  ;;  %v763_v25 = vld [vmem:[%s10095_s7 + $0x150] sm:$0xff]  ;;  %v792_v3 = vld [vmem:[%s10095_s7 + $0x238] sm:$0xff] }
 0x2d9   :  { %2402 = vmatprep.subr.bf16.mxu0 %v6373_v26  ;;  %2548 = vmatprep.subr.bf16.mxu1 %v6375_v27  ;;  %v767_v26 = vld [vmem:[%s10095_s7 + $0x170] sm:$0xff]  ;;  %v764_v27 = vld [vmem:[%s10095_s7 + $0x158] sm:$0xff] }
 0x2da   :  { %v6169_v35 = vcombine.high %v763_v25, %v767_v26  ;;  %v6168_v41 = vcombine.low %v763_v25, %v767_v26  ;;  %v6170_v42 = vcombine.low %v764_v27, %v768_v31  ;;  %v803_v15 = vld [vmem:[%s10095_s7 + $0x290] sm:$0xff] }
 0x2db   :  { %v807_v16 = vld [vmem:[%s10095_s7 + $0x2b0] sm:$0xff] }
 0x2dc   :  { %2403 = vmatpush1.bf16.msra.mxu0 %v6372_v36  ;;  %2549 = vmatpush1.bf16.msra.mxu1 %v6374_v37  ;;  %v6171_v36 = vcombine.high %v764_v27, %v768_v31  ;;  %v771_v37 = vld [vmem:[%s10095_s7 + $0x190] sm:$0xff] }
 0x2dd   :  { %2591 = vmatprep.subr.bf16.mxu0 %v6129_v38  ;;  %2737 = vmatprep.subr.bf16.mxu1 %v6131_v39  ;;  %v775_v38 = vld [vmem:[%s10095_s7 + $0x1b0] sm:$0xff]  ;;  %v772_v39 = vld [vmem:[%s10095_s7 + $0x198] sm:$0xff] }
 0x2de   :  { %v6177_v47 = vcombine.high %v771_v37, %v775_v38  ;;  %v6176_v61 = vcombine.low %v771_v37, %v775_v38  ;;  %v6178_v55 = vcombine.low %v772_v39, %v776_v40  ;;  %v811_v27 = vld [vmem:[%s10095_s7 + $0x2d0] sm:$0xff]  ;;  %v6208_v37 = vcombine.low %v803_v15, %v807_v16 }
 0x2df   :  { %2405 = vmatmul.mubr.bf16.vlgmr.msra.gmra.mrb[8].mxu0 %v8163_v29  ;;  %2551 = vmatmul.mubr.bf16.vlgmr.msra.gmra.mrb[40].mxu1 %v8163_v29  ;;  %v815_v31 = vld [vmem:[%s10095_s7 + $0x2f0] sm:$0xff] }
 0x2e0   :  { %2414 = vmatprep.mubr.bf16.mxu0 %v8199_v7  ;;  %2560 = vmatprep.mubr.bf16.mxu1 %v8199_v7 }
 0x2e1   :  { %2592 = vmatpush1.bf16.msra.mxu0 %v6128_v48  ;;  %2738 = vmatpush1.bf16.msra.mxu1 %v6130_v49  ;;  %v6179_v48 = vcombine.high %v772_v39, %v776_v40  ;;  %v779_v49 = vld [vmem:[%s10095_s7 + $0x1d0] sm:$0xff]  ;;  %v6217_v40 = vcombine.high %v811_v27, %v815_v31 }
 0x2e2   :  { %2593 = vmatprep.subr.bf16.mxu0 %v6137_v0  ;;  %2739 = vmatprep.subr.bf16.mxu1 %v6139_v51  ;;  %v783_v0 = vld [vmem:[%s10095_s7 + $0x1f0] sm:$0xff]  ;;  %v780_v51 = vld [vmem:[%s10095_s7 + $0x1d8] sm:$0xff] }
 0x2e3   :  { %v6185_v56 = vcombine.high %v779_v49, %v783_v0  ;;  %v6184_v5 = vcombine.low %v779_v49, %v783_v0  ;;  %v6186_v8 = vcombine.low %v780_v51, %v784_v52  ;;  %v819_v39 = vld [vmem:[%s10095_s7 + $0x310] sm:$0xff]  ;;  %v6216_v49 = vcombine.low %v811_v27, %v815_v31 }
 0x2e5   :  { %2594 = vmatpush1.bf16.msra.mxu0 %v6136_v57  ;;  %2740 = vmatpush1.bf16.msra.mxu1 %v6138_v58  ;;  %v6187_v57 = vcombine.high %v780_v51, %v784_v52  ;;  %v787_v58 = vld [vmem:[%s10095_s7 + $0x210] sm:$0xff] }
 0x2e6   :  { %2595 = vmatprep.subr.bf16.mxu0 %v6145_v1  ;;  %2741 = vmatprep.subr.bf16.mxu1 %v6147_v2  ;;  %v791_v1 = vld [vmem:[%s10095_s7 + $0x230] sm:$0xff]  ;;  %v788_v2 = vld [vmem:[%s10095_s7 + $0x218] sm:$0xff] }
 0x2e7   :  { %2415 = vmatmul.mubr.bf16.gmra.mrb[12].mxu0 %v8197_v6  ;;  %2561 = vmatmul.mubr.bf16.gmra.mrb[44].mxu1 %v8197_v6  ;;  %v6192_v13 = vcombine.low %v787_v58, %v791_v1  ;;  %v6194_v14 = vcombine.low %v788_v2, %v792_v3  ;;  %v827_v51 = vld [vmem:[%s10095_s7 + $0x350] sm:$0xff] }
 0x2e8   :  { %2424 = vmatprep.mubr.bf16.mxu0 %v8231_v63  ;;  %2570 = vmatprep.mubr.bf16.mxu1 %v8231_v63  ;;  %v831_v52 = vld [vmem:[%s10095_s7 + $0x370] sm:$0xff] }
 0x2e9   :  { %2596 = vmatpush1.bf16.msra.mxu0 %v6144_v4  ;;  %2742 = vmatpush1.bf16.msra.mxu1 %v6146_v10  ;;  %v799_v4 = vld [vmem:[%s10095_s7 + $0x270] sm:$0xff]  ;;  %v6193_v10 = vcombine.high %v787_v58, %v791_v1 }
 0x2ea   :  { %2597 = vmatprep.subr.bf16.mxu0 %v6153_v11  ;;  %2743 = vmatprep.subr.bf16.mxu1 %v6155_v12  ;;  %v6195_v11 = vcombine.high %v788_v2, %v792_v3  ;;  %v800_v12 = vld [vmem:[%s10095_s7 + $0x278] sm:$0xff]  ;;  %v6200_v25 = vcombine.low %v795_v9, %v799_v4  ;;  %v835_v2 = vld [vmem:[%s10095_s7 + $0x390] sm:$0xff] }
 0x2eb   :  { %v839_v3 = vld [vmem:[%s10095_s7 + $0x3b0] sm:$0xff] }
 0x2ed   :  { %2598 = vmatpush1.bf16.msra.mxu0 %v6152_v44  ;;  %2744 = vmatpush1.bf16.msra.mxu1 %v6154_v50  ;;  %v6201_v44 = vcombine.high %v795_v9, %v799_v4  ;;  %v6233_v9 = vcombine.high %v827_v51, %v831_v52 }
 0x2ee   :  { %2599 = vmatprep.subr.bf16.mxu0 %v6161_v21  ;;  %2745 = vmatprep.subr.bf16.mxu1 %v6163_v24  ;;  %v804_v21 = vld [vmem:[%s10095_s7 + $0x298] sm:$0xff] }
 0x2ef   :  { %2425 = vmatmul.mubr.bf16.gmra.mrb[16].mxu0 %v8229_v43  ;;  %2571 = vmatmul.mubr.bf16.gmra.mrb[48].mxu1 %v8229_v43  ;;  %v808_v24 = vld [vmem:[%s10095_s7 + $0x2b8] sm:$0xff] }
 0x2f0   :  { %2434 = vmatprep.mubr.bf16.mxu0 %v8263_v23  ;;  %2580 = vmatprep.mubr.bf16.mxu1 %v8263_v23  ;;  %v6210_v38 = vcombine.low %v804_v21, %v808_v24 }
 0x2f1   :  { %2600 = vmatpush1.bf16.msra.mxu0 %v6160_v33  ;;  %2746 = vmatpush1.bf16.msra.mxu1 %v6162_v34  ;;  %v6209_v33 = vcombine.high %v803_v15, %v807_v16  ;;  %v6211_v34 = vcombine.high %v804_v21, %v808_v24  ;;  %v6241_v15 = vcombine.high %v835_v2, %v839_v3  ;;  %v851_v21 = vld [vmem:[%s10095_s7 + $0x410] sm:$0xff] }
 0x2f2   :  { %2601 = vmatprep.subr.bf16.mxu0 %v6169_v35  ;;  %2747 = vmatprep.subr.bf16.mxu1 %v6171_v36  ;;  %v812_v35 = vld [vmem:[%s10095_s7 + $0x2d8] sm:$0xff]  ;;  %v855_v24 = vld [vmem:[%s10095_s7 + $0x430] sm:$0xff] }
 0x2f3   :  { %v816_v36 = vld [vmem:[%s10095_s7 + $0x2f8] sm:$0xff] }
 0x2f4   :  { %v6218_v0 = vcombine.low %v812_v35, %v816_v36 }
 0x2f5   :  { %2602 = vmatpush1.bf16.msra.mxu0 %v6168_v41  ;;  %2748 = vmatpush1.bf16.msra.mxu1 %v6170_v42  ;;  %v6219_v41 = vcombine.high %v812_v35, %v816_v36  ;;  %v823_v42 = vld [vmem:[%s10095_s7 + $0x330] sm:$0xff]  ;;  %v6257_v35 = vcombine.high %v851_v21, %v855_v24 }
 0x2f6   :  { %2603 = vmatprep.subr.bf16.mxu0 %v6177_v47  ;;  %2749 = vmatprep.subr.bf16.mxu1 %v6179_v48  ;;  %v820_v47 = vld [vmem:[%s10095_s7 + $0x318] sm:$0xff]  ;;  %v6224_v58 = vcombine.low %v819_v39, %v823_v42 }
 0x2f7   :  { %2435 = vmatmul.mubr.bf16.gmra.mrb[20].mxu0 %v8261_v22  ;;  %2581 = vmatmul.mubr.bf16.gmra.mrb[52].mxu1 %v8261_v22  ;;  %v824_v48 = vld [vmem:[%s10095_s7 + $0x338] sm:$0xff] }
 0x2f8   :  { %2623 = vmatprep.mubr.bf16.mxu0 %v8007_v18  ;;  %2769 = vmatprep.mubr.bf16.mxu1 %v8007_v18  ;;  %v796_v18 = vld [vmem:[%s10095_s7 + $0x258] sm:$0xff]  ;;  %v6226_v1 = vcombine.low %v820_v47, %v824_v48 }
 0x2f9   :  { %2604 = vmatpush1.bf16.msra.mxu0 %v6176_v61  ;;  %2750 = vmatpush1.bf16.msra.mxu1 %v6178_v55  ;;  %v6203_v50 = vcombine.high %v796_v18, %v800_v12  ;;  %v6202_v26 = vcombine.low %v796_v18, %v800_v12  ;;  %v828_v61 = vld [vmem:[%s10095_s7 + $0x358] sm:$0xff]  ;;  %v843_v18 = vld [vmem:[%s10095_s7 + $0x3d0] sm:$0xff] }
 0x2fa   :  { %2605 = vmatprep.subr.bf16.mxu0 %v6185_v56  ;;  %2751 = vmatprep.subr.bf16.mxu1 %v6187_v57  ;;  %v832_v55 = vld [vmem:[%s10095_s7 + $0x378] sm:$0xff]  ;;  %v6225_v56 = vcombine.high %v819_v39, %v823_v42  ;;  %v6227_v57 = vcombine.high %v820_v47, %v824_v48  ;;  %v847_v12 = vld [vmem:[%s10095_s7 + $0x3f0] sm:$0xff] }
 0x2fb   :  { %v6235_v4 = vcombine.high %v828_v61, %v832_v55  ;;  %v6249_v27 = vcombine.high %v843_v18, %v847_v12  ;;  %v860_v39 = vld [vmem:[%s10095_s7 + $0x458] sm:$0xff]  ;;  %v867_v42 = vld [vmem:[%s10095_s7 + $0x490] sm:$0xff] }
 0x2fc   :  { %v871_v47 = vld [vmem:[%s10095_s7 + $0x4b0] sm:$0xff] }
 0x2fd   :  { %2606 = vmatpush1.bf16.msra.mxu0 %v6184_v5  ;;  %2752 = vmatpush1.bf16.msra.mxu1 %v6186_v8  ;;  %v836_v5 = vld [vmem:[%s10095_s7 + $0x398] sm:$0xff] }
 0x2fe   :  { %2607 = vmatprep.subr.bf16.mxu0 %v6193_v10  ;;  %2753 = vmatprep.subr.bf16.mxu1 %v6195_v11  ;;  %v840_v8 = vld [vmem:[%s10095_s7 + $0x3b8] sm:$0xff]  ;;  %v6232_v10 = vcombine.low %v827_v51, %v831_v52  ;;  %v6234_v11 = vcombine.low %v828_v61, %v832_v55 }
 0x2ff   :  { %v6243_v16 = vcombine.high %v836_v5, %v840_v8 }
 0x301   :  { %2608 = vmatpush1.bf16.msra.mxu0 %v6192_v13  ;;  %2754 = vmatpush1.bf16.msra.mxu1 %v6194_v14  ;;  %v844_v13 = vld [vmem:[%s10095_s7 + $0x3d8] sm:$0xff] }
 0x302   :  { %2609 = vmatprep.subr.bf16.mxu0 %v6201_v44  ;;  %2755 = vmatprep.subr.bf16.mxu1 %v6203_v50  ;;  %v848_v14 = vld [vmem:[%s10095_s7 + $0x3f8] sm:$0xff]  ;;  %v6240_v44 = vcombine.low %v835_v2, %v839_v3  ;;  %v6242_v50 = vcombine.low %v836_v5, %v840_v8  ;;  %v6272_v2 = vcombine.low %v867_v42, %v871_v47  ;;  %v883_v3 = vld [vmem:[%s10095_s7 + $0x510] sm:$0xff] }
 0x303   :  { %v6251_v31 = vcombine.high %v844_v13, %v848_v14  ;;  %v887_v5 = vld [vmem:[%s10095_s7 + $0x530] sm:$0xff] }
 0x305   :  { %2610 = vmatpush1.bf16.msra.mxu0 %v6200_v25  ;;  %2756 = vmatpush1.bf16.msra.mxu1 %v6202_v26  ;;  %v852_v25 = vld [vmem:[%s10095_s7 + $0x418] sm:$0xff] }
 0x306   :  { %2611 = vmatprep.subr.bf16.mxu0 %v6209_v33  ;;  %2757 = vmatprep.subr.bf16.mxu1 %v6211_v34  ;;  %v856_v26 = vld [vmem:[%s10095_s7 + $0x438] sm:$0xff]  ;;  %v6248_v33 = vcombine.low %v843_v18, %v847_v12  ;;  %v6250_v34 = vcombine.low %v844_v13, %v848_v14  ;;  %v6289_v13 = vcombine.high %v883_v3, %v887_v5  ;;  %v891_v14 = vld [vmem:[%s10095_s7 + $0x550] sm:$0xff] }
 0x307   :  { %v6259_v36 = vcombine.high %v852_v25, %v856_v26  ;;  %v6258_v48 = vcombine.low %v852_v25, %v856_v26  ;;  %v900_v25 = vld [vmem:[%s10095_s7 + $0x598] sm:$0xff] }
 0x308   :  { %v904_v26 = vld [vmem:[%s10095_s7 + $0x5b8] sm:$0xff] }
 0x309   :  { %2612 = vmatpush1.bf16.msra.mxu0 %v6208_v37  ;;  %2758 = vmatpush1.bf16.msra.mxu1 %v6210_v38  ;;  %v859_v37 = vld [vmem:[%s10095_s7 + $0x450] sm:$0xff] }
 0x30a   :  { %2613 = vmatprep.subr.bf16.mxu0 %v6217_v40  ;;  %2759 = vmatprep.subr.bf16.mxu1 %v6219_v41  ;;  %v863_v38 = vld [vmem:[%s10095_s7 + $0x470] sm:$0xff]  ;;  %v864_v40 = vld [vmem:[%s10095_s7 + $0x478] sm:$0xff]  ;;  %v6256_v41 = vcombine.low %v851_v21, %v855_v24 }
 0x30b   :  { %v6265_v51 = vcombine.high %v859_v37, %v863_v38  ;;  %v6267_v52 = vcombine.high %v860_v39, %v864_v40  ;;  %v6264_v61 = vcombine.low %v859_v37, %v863_v38  ;;  %v6266_v55 = vcombine.low %v860_v39, %v864_v40  ;;  %v903_v21 = vld [vmem:[%s10095_s7 + $0x5b0] sm:$0xff]  ;;  %v912_v38 = vld [vmem:[%s10095_s7 + $0x5f8] sm:$0xff] }
 0x30c   :  { %v911_v37 = vld [vmem:[%s10095_s7 + $0x5f0] sm:$0xff] }
 0x30d   :  { %2614 = vmatpush1.bf16.msra.mxu0 %v6216_v49  ;;  %2760 = vmatpush1.bf16.msra.mxu1 %v6218_v0  ;;  %v868_v49 = vld [vmem:[%s10095_s7 + $0x498] sm:$0xff]  ;;  %v915_v40 = vld [vmem:[%s10095_s7 + $0x610] sm:$0xff] }
 0x30e   :  { %2615 = vmatprep.subr.bf16.mxu0 %v6225_v56  ;;  %2761 = vmatprep.subr.bf16.mxu1 %v6227_v57  ;;  %v872_v0 = vld [vmem:[%s10095_s7 + $0x4b8] sm:$0xff]  ;;  %v6273_v56 = vcombine.high %v867_v42, %v871_v47  ;;  %v875_v57 = vld [vmem:[%s10095_s7 + $0x4d0] sm:$0xff]  ;;  %v6306_v42 = vcombine.low %v900_v25, %v904_v26 }
 0x30f   :  { %v6274_v8 = vcombine.low %v868_v49, %v872_v0  ;;  %v916_v47 = vld [vmem:[%s10095_s7 + $0x618] sm:$0xff] }
 0x311   :  { %2616 = vmatpush1.bf16.msra.mxu0 %v6224_v58  ;;  %2762 = vmatpush1.bf16.msra.mxu1 %v6226_v1  ;;  %v879_v58 = vld [vmem:[%s10095_s7 + $0x4f0] sm:$0xff]  ;;  %v880_v1 = vld [vmem:[%s10095_s7 + $0x4f8] sm:$0xff] }
 0x312   :  { %2617 = vmatprep.subr.bf16.mxu0 %v6233_v9  ;;  %2763 = vmatprep.subr.bf16.mxu1 %v6235_v4  ;;  %v884_v9 = vld [vmem:[%s10095_s7 + $0x518] sm:$0xff]  ;;  %v6280_v18 = vcombine.low %v875_v57, %v879_v58 }
 0x313   :  { %v888_v4 = vld [vmem:[%s10095_s7 + $0x538] sm:$0xff] }
 0x314   :  { %v6290_v24 = vcombine.low %v884_v9, %v888_v4 }
 0x315   :  { %2618 = vmatpush1.bf16.msra.mxu0 %v6232_v10  ;;  %2764 = vmatpush1.bf16.msra.mxu1 %v6234_v11  ;;  %v6281_v10 = vcombine.high %v875_v57, %v879_v58  ;;  %v928_v57 = vld [vmem:[%s10095_s7 + $0x678] sm:$0xff] }
 0x316   :  { %2619 = vmatprep.subr.bf16.mxu0 %v6241_v15  ;;  %2765 = vmatprep.subr.bf16.mxu1 %v6243_v16  ;;  %v895_v15 = vld [vmem:[%s10095_s7 + $0x570] sm:$0xff]  ;;  %v896_v16 = vld [vmem:[%s10095_s7 + $0x578] sm:$0xff] }
 0x319   :  { %2620 = vmatpush1.bf16.msra.mxu0 %v6240_v44  ;;  %2766 = vmatpush1.bf16.msra.mxu1 %v6242_v50  ;;  %v6288_v44 = vcombine.low %v883_v3, %v887_v5  ;;  %v899_v50 = vld [vmem:[%s10095_s7 + $0x590] sm:$0xff]  ;;  %v932_v3 = vld [vmem:[%s10095_s7 + $0x698] sm:$0xff] }
 0x31a   :  { %2621 = vmatprep.subr.bf16.mxu0 %v6249_v27  ;;  %2767 = vmatprep.subr.bf16.mxu1 %v6251_v31  ;;  %v6297_v27 = vcombine.high %v891_v14, %v895_v15  ;;  %v6304_v39 = vcombine.low %v899_v50, %v903_v21  ;;  %v936_v5 = vld [vmem:[%s10095_s7 + $0x6b8] sm:$0xff] }
 0x31d   :  { %2622 = vmatpush1.bf16.msra.mxu0 %v6248_v33  ;;  %2768 = vmatpush1.bf16.msra.mxu1 %v6250_v34  ;;  %v6296_v33 = vcombine.low %v891_v14, %v895_v15  ;;  %v6339_v14 = vcombine.high %v932_v3, %v936_v5 }
 0x31e   :  { %2664 = vmatprep.subr.bf16.mxu0 %v6257_v35  ;;  %2810 = vmatprep.subr.bf16.mxu1 %v6259_v36  ;;  %v6305_v35 = vcombine.high %v899_v50, %v903_v21  ;;  %v907_v36 = vld [vmem:[%s10095_s7 + $0x5d0] sm:$0xff]  ;;  %v948_v50 = vld [vmem:[%s10095_s7 + $0x718] sm:$0xff] }
 0x31f   :  { %v952_v21 = vld [vmem:[%s10095_s7 + $0x738] sm:$0xff] }
 0x320   :  { %2624 = vmatmul.mubr.bf16.vlgmr.msra.gmra.mrb[24].mxu0 %v8005_v17  ;;  %2770 = vmatmul.mubr.bf16.vlgmr.msra.gmra.mrb[56].mxu1 %v8005_v17  ;;  %v876_v17 = vld [vmem:[%s10095_s7 + $0x4d8] sm:$0xff] }
 0x321   :  { %2633 = vmatprep.mubr.bf16.mxu0 %v8043_v46  ;;  %2665 = vmatpush1.bf16.msra.mxu0 %v6256_v41  ;;  %v6283_v11 = vcombine.high %v876_v17, %v880_v1  ;;  %v6282_v12 = vcombine.low %v876_v17, %v880_v1  ;;  %v919_v41 = vld [vmem:[%s10095_s7 + $0x630] sm:$0xff] }
 0x322   :  { %2779 = vmatprep.mubr.bf16.mxu1 %v8043_v46  ;;  %2811 = vmatpush1.bf16.msra.mxu1 %v6258_v48  ;;  %v6275_v46 = vcombine.high %v868_v49, %v872_v0  ;;  %v920_v48 = vld [vmem:[%s10095_s7 + $0x638] sm:$0xff]  ;;  %v6313_v49 = vcombine.high %v907_v36, %v911_v37  ;;  %v6320_v17 = vcombine.low %v915_v40, %v919_v41  ;;  %v931_v1 = vld [vmem:[%s10095_s7 + $0x690] sm:$0xff] }
 0x323   :  { %2666 = vmatprep.subr.bf16.mxu0 %v6265_v51  ;;  %2812 = vmatprep.subr.bf16.mxu1 %v6267_v52  ;;  %v6312_v51 = vcombine.low %v907_v36, %v911_v37  ;;  %v923_v52 = vld [vmem:[%s10095_s7 + $0x650] sm:$0xff]  ;;  %v6323_v58 = vcombine.high %v916_v47, %v920_v48  ;;  %v6355_v36 = vcombine.high %v948_v50, %v952_v21 }
 0x325   :  { %2667 = vmatpush1.bf16.msra.mxu0 %v6264_v61  ;;  %v927_v61 = vld [vmem:[%s10095_s7 + $0x670] sm:$0xff] }
 0x326   :  { %2813 = vmatpush1.bf16.msra.mxu1 %v6266_v55  ;;  %2668 = vmatprep.subr.bf16.mxu0 %v6273_v56  ;;  %v6321_v56 = vcombine.high %v915_v40, %v919_v41  ;;  %v964_v40 = vld [vmem:[%s10095_s7 + $0x798] sm:$0xff] }
 0x327   :  { %2814 = vmatprep.subr.bf16.mxu1 %v6275_v46  ;;  %v6322_v46 = vcombine.low %v916_v47, %v920_v48  ;;  %v968_v41 = vld [vmem:[%s10095_s7 + $0x7b8] sm:$0xff]  ;;  %v971_v48 = vld [vmem:[%s10095_s7 + $0x7d0] sm:$0xff] }
 0x328   :  { %2634 = vmatmul.mubr.bf16.gmra.mrb[28].mxu0 %v8041_v45  ;;  %2780 = vmatmul.mubr.bf16.gmra.mrb[60].mxu1 %v8041_v45  ;;  %v892_v45 = vld [vmem:[%s10095_s7 + $0x558] sm:$0xff] }
 0x329   :  { %2643 = vmatprep.mubr.bf16.mxu0 %v8079_v20  ;;  %2669 = vmatpush1.bf16.msra.mxu0 %v6272_v2  ;;  %v6299_v31 = vcombine.high %v892_v45, %v896_v16  ;;  %v6298_v34 = vcombine.low %v892_v45, %v896_v16  ;;  %v6329_v2 = vcombine.high %v923_v52, %v927_v61  ;;  %v947_v45 = vld [vmem:[%s10095_s7 + $0x710] sm:$0xff] }
 0x32a   :  { %2789 = vmatprep.mubr.bf16.mxu1 %v8079_v20  ;;  %2815 = vmatpush1.bf16.msra.mxu1 %v6274_v8  ;;  %v6291_v20 = vcombine.high %v884_v9, %v888_v4  ;;  %v6328_v9 = vcombine.low %v923_v52, %v927_v61  ;;  %v939_v4 = vld [vmem:[%s10095_s7 + $0x6d0] sm:$0xff]  ;;  %v972_v52 = vld [vmem:[%s10095_s7 + $0x7d8] sm:$0xff] }
 0x32b   :  { %2670 = vmatprep.subr.bf16.mxu0 %v6281_v10  ;;  %2816 = vmatprep.subr.bf16.mxu1 %v6283_v11  ;;  %v943_v10 = vld [vmem:[%s10095_s7 + $0x6f0] sm:$0xff]  ;;  %v976_v61 = vld [vmem:[%s10095_s7 + $0x7f8] sm:$0xff] }
 0x32c   :  { %v951_v16 = vld [vmem:[%s10095_s7 + $0x730] sm:$0xff] }
 0x32d   :  { %2671 = vmatpush1.bf16.msra.mxu0 %v6280_v18  ;;  %v6352_v37 = vcombine.low %v947_v45, %v951_v16 }
 0x32e   :  { %2817 = vmatpush1.bf16.msra.mxu1 %v6282_v12  ;;  %2672 = vmatprep.subr.bf16.mxu0 %v6289_v13  ;;  %v940_v12 = vld [vmem:[%s10095_s7 + $0x6d8] sm:$0xff] }
 0x32f   :  { %2818 = vmatprep.subr.bf16.mxu1 %v6291_v20  ;;  %v944_v13 = vld [vmem:[%s10095_s7 + $0x6f8] sm:$0xff]  ;;  %v6338_v20 = vcombine.low %v932_v3, %v936_v5  ;;  %v7018_v5 = vld [vmem:[%s10098_s9 + $0x24] ss:$16 sps:$4 sm:$0xff]  }
 0x330   :  { %2644 = vmatmul.mubr.bf16.gmra.mrb[32].mxu0 %v8077_v19  ;;  %2790 = vmatmul.mubr.bf16.gmra.mrb[64].mxu1 %v8077_v19  ;;  %v908_v19 = vld [vmem:[%s10095_s7 + $0x5d8] sm:$0xff] }
 0x331   :  { %2653 = vmatprep.mubr.bf16.mxu0 %v8129_v54  ;;  %2673 = vmatpush1.bf16.msra.mxu0 %v6288_v44  ;;  %v6315_v0 = vcombine.high %v908_v19, %v912_v38  ;;  %v6314_v55 = vcombine.low %v908_v19, %v912_v38  ;;  %v6345_v44 = vcombine.high %v939_v4, %v943_v10  ;;  %v963_v19 = vld [vmem:[%s10095_s7 + $0x790] sm:$0xff]  ;;  %v7013_v3 = vld [vmem:[%s10098_s9 + $0x8] ss:$16 sps:$4 sm:$0xff]  }
 0x332   :  { %2799 = vmatprep.mubr.bf16.mxu1 %v8129_v54  ;;  %2819 = vmatpush1.bf16.msra.mxu1 %v6290_v24  ;;  %v6307_v54 = vcombine.high %v900_v25, %v904_v26  ;;  %v6347_v24 = vcombine.high %v940_v12, %v944_v13  ;;  %v6344_v25 = vcombine.low %v939_v4, %v943_v10  ;;  %v955_v26 = vld [vmem:[%s10095_s7 + $0x750] sm:$0xff]  ;;  %v7019_v4 = vld [vmem:[%s10098_s9 + $0x28] ss:$16 sps:$4 sm:$0xff]  }
 0x333   :  { %2674 = vmatprep.subr.bf16.mxu0 %v6297_v27  ;;  %2820 = vmatprep.subr.bf16.mxu1 %v6299_v31  ;;  %v959_v27 = vld [vmem:[%s10095_s7 + $0x770] sm:$0xff]  ;;  %v6346_v31 = vcombine.low %v940_v12, %v944_v13  ;;  %v7033_v12 = vld [vmem:[%s10098_s9 + $0x6c] ss:$16 sps:$4 sm:$0xff]  }
 0x334   :  { %v967_v38 = vld [vmem:[%s10095_s7 + $0x7b0] sm:$0xff]  ;;  %v6360_v47 = vcombine.low %v955_v26, %v959_v27 }
 0x335   :  { %2675 = vmatpush1.bf16.msra.mxu0 %v6296_v33  ;;  %v6353_v33 = vcombine.high %v947_v45, %v951_v16  ;;  %v7024_v10 = vld [vmem:[%s10098_s9 + $0x44] ss:$16 sps:$4 sm:$0xff]   ;;  %v7028_v13 = vld [vmem:[%s10098_s9 + $0x60] ss:$16 sps:$4 sm:$0xff]   ;;  %v7037_v45 = vld [vmem:[%s10098_s9 + $0x88] ss:$16 sps:$4 sm:$0xff]  }
 0x336   :  { %2821 = vmatpush1.bf16.msra.mxu1 %v6298_v34  ;;  %2676 = vmatprep.subr.bf16.mxu0 %v6305_v35  ;;  %v956_v34 = vld [vmem:[%s10095_s7 + $0x758] sm:$0xff]  ;;  %v7042_v16 = vld [vmem:[%s10098_s9 + $0xa4] ss:$16 sps:$4 sm:$0xff]  }
 0x337   :  { %2822 = vmatprep.subr.bf16.mxu1 %v6307_v54  ;;  %v960_v35 = vld [vmem:[%s10095_s7 + $0x778] sm:$0xff]  ;;  %v6354_v54 = vcombine.low %v948_v50, %v952_v21  ;;  %v7048_v21 = vld [vmem:[%s10098_s9 + $0xc4] ss:$16 sps:$4 sm:$0xff]  }
 0x338   :  { %2654 = vmatmul.mubr.bf16.gmra.mrb[36].mxu0 %v8127_v53  ;;  %2800 = vmatmul.mubr.bf16.gmra.mrb[68].mxu1 %v8127_v53  ;;  %v924_v53 = vld [vmem:[%s10095_s7 + $0x658] sm:$0xff] }
 0x339   :  { %2677 = vmatpush1.bf16.msra.mxu0 %v6304_v39  ;;  %2696 = vmatprep.mubr.bf16.mxu0 %v8165_v30  ;;  %v6331_v8 = vcombine.high %v924_v53, %v928_v57  ;;  %v6330_v11 = vcombine.low %v924_v53, %v928_v57  ;;  %v6361_v39 = vcombine.high %v955_v26, %v959_v27  ;;  %v7043_v50 = vld [vmem:[%s10098_s9 + $0xa8] ss:$16 sps:$4 sm:$0xff]   ;;  %v7057_v26 = vld [vmem:[%s10098_s9 + $0xec] ss:$16 sps:$4 sm:$0xff]   ;;  %v7052_v27 = vld [vmem:[%s10098_s9 + $0xe0] ss:$16 sps:$4 sm:$0xff]  }
 0x33a   :  { %2823 = vmatpush1.bf16.msra.mxu1 %v6306_v42  ;;  %2842 = vmatprep.mubr.bf16.mxu1 %v8165_v30  ;;  %v935_v30 = vld [vmem:[%s10095_s7 + $0x6b0] sm:$0xff]  ;;  %v6363_v42 = vcombine.high %v956_v34, %v960_v35  ;;  %v6370_v53 = vcombine.low %v964_v40, %v968_v41 }
 0x33b   :  { %2678 = vmatprep.subr.bf16.mxu0 %v6313_v49  ;;  %2824 = vmatprep.subr.bf16.mxu1 %v6315_v0  ;;  %v6337_v18 = vcombine.high %v931_v1, %v935_v30  ;;  %v6336_v15 = vcombine.low %v931_v1, %v935_v30  ;;  %v975_v49 = vld [vmem:[%s10095_s7 + $0x7f0] sm:$0xff]  ;;  %v6362_v0 = vcombine.low %v956_v34, %v960_v35  ;;  %v7061_v35 = vld [vmem:[%s10098_s9 + $0x108] ss:$16 sps:$4 sm:$0xff]  }
 0x33c   :  { %v6377_v57 = vcombine.high %v971_v48, %v975_v49  ;;  %v6376_v1 = vcombine.low %v971_v48, %v975_v49  ;;  %v6378_v30 = vcombine.low %v972_v52, %v976_v61  ;;  %v7058_v34 = vld [vmem:[%s10098_s9 + $0x100] ss:$16 sps:$4 sm:$0xff]   ;;  %v7079_v49 = vld [vmem:[%s10098_s9 + $0x168] ss:$16 sps:$4 sm:$0xff]  }
 0x33d   :  { %2679 = vmatpush1.bf16.msra.mxu0 %v6312_v51  ;;  %v6369_v51 = vcombine.high %v963_v19, %v967_v38  ;;  %v7076_v48 = vld [vmem:[%s10098_s9 + $0x160] ss:$16 sps:$4 sm:$0xff]  }
 0x33e   :  { %2825 = vmatpush1.bf16.msra.mxu1 %v6314_v55  ;;  %2680 = vmatprep.subr.bf16.mxu0 %v6321_v56  ;;  %v6371_v55 = vcombine.high %v964_v40, %v968_v41  ;;  %v6368_v56 = vcombine.low %v963_v19, %v967_v38  ;;  %v7064_v19 = vld [vmem:[%s10098_s9 + $0x120] ss:$16 sps:$4 sm:$0xff]   ;;  %v7067_v38 = vld [vmem:[%s10098_s9 + $0x128] ss:$16 sps:$4 sm:$0xff]  }
 0x33f   :  { %2826 = vmatprep.subr.bf16.mxu1 %v6323_v58  ;;  %v6379_v58 = vcombine.high %v972_v52, %v976_v61  ;;  %v7070_v40 = vld [vmem:[%s10098_s9 + $0x140] ss:$16 sps:$4 sm:$0xff]   ;;  %v7073_v41 = vld [vmem:[%s10098_s9 + $0x148] ss:$16 sps:$4 sm:$0xff]  }
 0x340   :  { %v7082_v52 = vld [vmem:[%s10098_s9 + $0x180] ss:$16 sps:$4 sm:$0xff]   ;;  %v7085_v61 = vld [vmem:[%s10098_s9 + $0x188] ss:$16 sps:$4 sm:$0xff]  }
 0x341   :  { %2681 = vmatpush1.bf16.msra.mxu0 %v6320_v17  ;;  %v7012_v17 = vld [vmem:[%s10098_s9 + $0x4] ss:$16 sps:$4 sm:$0xff]  }
 0x342   :  { %2827 = vmatpush1.bf16.msra.mxu1 %v6322_v46  ;;  %2682 = vmatprep.subr.bf16.mxu0 %v6329_v2  ;;  %v7015_v46 = vld [vmem:[%s10098_s9 + $0xc] ss:$16 sps:$4 sm:$0xff]   ;;  %v7010_v2 = vld [vmem:[%s10098_s9] ss:$16 sps:$4 sm:$0xff]  }
 0x343   :  { %2828 = vmatprep.subr.bf16.mxu1 %v6331_v8  ;;  %v7021_v8 = vld [vmem:[%s10098_s9 + $0x2c] ss:$16 sps:$4 sm:$0xff]  }
 0x345   :  { %2683 = vmatpush1.bf16.msra.mxu0 %v6328_v9  ;;  %v7016_v9 = vld [vmem:[%s10098_s9 + $0x20] ss:$16 sps:$4 sm:$0xff]  }
 0x346   :  { %2829 = vmatpush1.bf16.msra.mxu1 %v6330_v11  ;;  %2684 = vmatprep.subr.bf16.mxu0 %v6337_v18  ;;  %v7025_v11 = vld [vmem:[%s10098_s9 + $0x48] ss:$16 sps:$4 sm:$0xff]   ;;  %v7030_v18 = vld [vmem:[%s10098_s9 + $0x64] ss:$16 sps:$4 sm:$0xff]  }
 0x347   :  { %2830 = vmatprep.subr.bf16.mxu1 %v6339_v14  ;;  %v7031_v14 = vld [vmem:[%s10098_s9 + $0x68] ss:$16 sps:$4 sm:$0xff]  }
 0x349   :  { %2685 = vmatpush1.bf16.msra.mxu0 %v6336_v15  ;;  %v7036_v15 = vld [vmem:[%s10098_s9 + $0x84] ss:$16 sps:$4 sm:$0xff]  }
 0x34a   :  { %2831 = vmatpush1.bf16.msra.mxu1 %v6338_v20  ;;  %2686 = vmatprep.subr.bf16.mxu0 %v6345_v44  ;;  %v7045_v20 = vld [vmem:[%s10098_s9 + $0xac] ss:$16 sps:$4 sm:$0xff]   ;;  %v7040_v44 = vld [vmem:[%s10098_s9 + $0xa0] ss:$16 sps:$4 sm:$0xff]  }
 0x34b   :  { %2832 = vmatprep.subr.bf16.mxu1 %v6347_v24  ;;  %v7049_v24 = vld [vmem:[%s10098_s9 + $0xc8] ss:$16 sps:$4 sm:$0xff]  }
 0x34d   :  { %2687 = vmatpush1.bf16.msra.mxu0 %v6344_v25  ;;  %v7054_v25 = vld [vmem:[%s10098_s9 + $0xe4] ss:$16 sps:$4 sm:$0xff]  }
 0x34e   :  { %2833 = vmatpush1.bf16.msra.mxu1 %v6346_v31  ;;  %2688 = vmatprep.subr.bf16.mxu0 %v6353_v33  ;;  %v7055_v31 = vld [vmem:[%s10098_s9 + $0xe8] ss:$16 sps:$4 sm:$0xff]   ;;  %v7060_v33 = vld [vmem:[%s10098_s9 + $0x104] ss:$16 sps:$4 sm:$0xff]  }
 0x34f   :  { %2834 = vmatprep.subr.bf16.mxu1 %v6355_v36  ;;  %v7066_v36 = vld [vmem:[%s10098_s9 + $0x124] ss:$16 sps:$4 sm:$0xff]  }
 0x351   :  { %2689 = vmatpush1.bf16.msra.mxu0 %v6352_v37  ;;  %v7069_v37 = vld [vmem:[%s10098_s9 + $0x12c] ss:$16 sps:$4 sm:$0xff]  }
 0x352   :  { %2835 = vmatpush1.bf16.msra.mxu1 %v6354_v54  ;;  %2690 = vmatprep.subr.bf16.mxu0 %v6361_v39  ;;  %v7072_v54 = vld [vmem:[%s10098_s9 + $0x144] ss:$16 sps:$4 sm:$0xff]   ;;  %v7075_v39 = vld [vmem:[%s10098_s9 + $0x14c] ss:$16 sps:$4 sm:$0xff]  }
 0x353   :  { %2836 = vmatprep.subr.bf16.mxu1 %v6363_v42  ;;  %v7078_v42 = vld [vmem:[%s10098_s9 + $0x164] ss:$16 sps:$4 sm:$0xff]  }
 0x355   :  { %2691 = vmatpush1.bf16.msra.mxu0 %v6360_v47  ;;  %v7081_v47 = vld [vmem:[%s10098_s9 + $0x16c] ss:$16 sps:$4 sm:$0xff]  }
 0x356   :  { %2837 = vmatpush1.bf16.msra.mxu1 %v6362_v0  ;;  %2692 = vmatprep.subr.bf16.mxu0 %v6369_v51  ;;  %v7084_v0 = vld [vmem:[%s10098_s9 + $0x184] ss:$16 sps:$4 sm:$0xff]   ;;  %v7087_v51 = vld [vmem:[%s10098_s9 + $0x18c] ss:$16 sps:$4 sm:$0xff]  }
 0x357   :  { %2838 = vmatprep.subr.bf16.mxu1 %v6371_v55  ;;  %v7090_v55 = vld [vmem:[%s10098_s9 + $0x1a4] ss:$16 sps:$4 sm:$0xff]  }
 0x359   :  { %2693 = vmatpush1.bf16.msra.mxu0 %v6368_v56  ;;  %v7093_v56 = vld [vmem:[%s10098_s9 + $0x1ac] ss:$16 sps:$4 sm:$0xff]  }
 0x35a   :  { %2839 = vmatpush1.bf16.msra.mxu1 %v6370_v53  ;;  %2694 = vmatprep.subr.bf16.mxu0 %v6377_v57  ;;  %v7088_v53 = vld [vmem:[%s10098_s9 + $0x1a0] ss:$16 sps:$4 sm:$0xff]   ;;  %v7091_v57 = vld [vmem:[%s10098_s9 + $0x1a8] ss:$16 sps:$4 sm:$0xff]  }
 0x35b   :  { %2840 = vmatprep.subr.bf16.mxu1 %v6379_v58  ;;  %v7096_v58 = vld [vmem:[%s10098_s9 + $0x1c4] ss:$16 sps:$4 sm:$0xff]  }
 0x35d   :  { %2695 = vmatpush1.bf16.msra.mxu0 %v6376_v1  ;;  %v7094_v1 = vld [vmem:[%s10098_s9 + $0x1c0] ss:$16 sps:$4 sm:$0xff]  }
 0x35e   :  { %2841 = vmatpush1.bf16.msra.mxu1 %v6378_v30  ;;  %5079 = vmatprep.subr.bf16.mxu0 %v7012_v17  ;;  %v7099_v17 = vld [vmem:[%s10098_s9 + $0x1cc] ss:$16 sps:$4 sm:$0xff]   ;;  %v7097_v30 = vld [vmem:[%s10098_s9 + $0x1c8] ss:$16 sps:$4 sm:$0xff]  }
 0x35f   :  { %5243 = vmatprep.subr.bf16.mxu1 %v7015_v46  ;;  %v7102_v46 = vld [vmem:[%s10098_s9 + $0x1e4] ss:$16 sps:$4 sm:$0xff]  }
 0x360   :  { %2697 = vmatmul.mubr.bf16.vlgmr.msra.gmra.mrb[24].mxu0 %v8163_v29 }
 0x361   :  { %2843 = vmatmul.mubr.bf16.vlgmr.msra.gmra.mrb[56].mxu1 %v8163_v29  ;;  %2706 = vmatprep.mubr.bf16.mxu0 %v8199_v7  ;;  %v7027_v29 = vld [vmem:[%s10098_s9 + $0x4c] ss:$16 sps:$4 sm:$0xff]  }
 0x362   :  { %2852 = vmatprep.mubr.bf16.mxu1 %v8199_v7  ;;  %5080 = vmatpush1.bf16.msra.mxu0 %v7010_v2  ;;  %v7022_v7 = vld [vmem:[%s10098_s9 + $0x40] ss:$16 sps:$4 sm:$0xff]   ;;  %v7105_v2 = vld [vmem:[%s10098_s9 + $0x1ec] ss:$16 sps:$4 sm:$0xff]  }
 0x363   :  { %5244 = vmatpush1.bf16.msra.mxu1 %v7013_v3  ;;  %5081 = vmatprep.subr.bf16.mxu0 %v7018_v5  ;;  %v7100_v3 = vld [vmem:[%s10098_s9 + $0x1e0] ss:$16 sps:$4 sm:$0xff]   ;;  %v7103_v5 = vld [vmem:[%s10098_s9 + $0x1e8] ss:$16 sps:$4 sm:$0xff]  }
 0x364   :  { %5245 = vmatprep.subr.bf16.mxu1 %v7021_v8  ;;  %v7108_v8 = vld [vmem:[%s10098_s9 + $0x204] ss:$16 sps:$4 sm:$0xff]  }
 0x366   :  { %5082 = vmatpush1.bf16.msra.mxu0 %v7016_v9  ;;  %v7111_v9 = vld [vmem:[%s10098_s9 + $0x20c] ss:$16 sps:$4 sm:$0xff]  }
 0x367   :  { %5246 = vmatpush1.bf16.msra.mxu1 %v7019_v4  ;;  %5083 = vmatprep.subr.bf16.mxu0 %v7024_v10  ;;  %v8896_v4 = vld [vmem:[%s10099_s8] sm:$0xff] }
 0x368   :  { %2707 = vmatmul.mubr.bf16.gmra.mrb[28].mxu0 %v8197_v6  ;;  %5247 = vmatprep.subr.bf16.mxu1 %v7027_v29  ;;  %v8900_v10 = vrot.slane %v8896_v4, %v7971_v60  ;;  %v8904_v29 = vrot.slane %v8896_v4, %v8083_v28 }
 0x369   :  { %2853 = vmatmul.mubr.bf16.gmra.mrb[60].mxu1 %v8197_v6  ;;  %2716 = vmatprep.mubr.bf16.mxu0 %v8231_v63  ;;  %v7039_v6 = vld [vmem:[%s10098_s9 + $0x8c] ss:$16 sps:$4 sm:$0xff]  }
 0x36a   :  { %2862 = vmatprep.mubr.bf16.mxu1 %v8231_v63  ;;  %5084 = vmatpush1.bf16.msra.mxu0 %v7022_v7  ;;  %v7034_v63 = vld [vmem:[%s10098_s9 + $0x80] ss:$16 sps:$4 sm:$0xff]   ;;  %v8908_v7 = vrot.slane %v8896_v4, %v7979_v62 }
 0x36b   :  { %5248 = vmatpush1.bf16.msra.mxu1 %v7025_v11  ;;  %5085 = vmatprep.subr.bf16.mxu0 %v7030_v18  ;;  %v8912_v11 = vrot.slane %v8896_v4, %v8092_v32 }
 0x36c   :  { %5249 = vmatprep.subr.bf16.mxu1 %v7033_v12 }
 0x36e   :  { %5086 = vmatpush1.bf16.msra.mxu0 %v7028_v13 }
 0x36f   :  { %5250 = vmatpush1.bf16.msra.mxu1 %v7031_v14  ;;  %5087 = vmatprep.subr.bf16.mxu0 %v7036_v15 }
 0x370   :  { %2717 = vmatmul.mubr.bf16.gmra.mrb[32].mxu0 %v8229_v43  ;;  %5251 = vmatprep.subr.bf16.mxu1 %v7039_v6 }
 0x371   :  { %2863 = vmatmul.mubr.bf16.gmra.mrb[64].mxu1 %v8229_v43  ;;  %2726 = vmatprep.mubr.bf16.mxu0 %v8263_v23  ;;  %v7051_v43 = vld [vmem:[%s10098_s9 + $0xcc] ss:$16 sps:$4 sm:$0xff]  }
 0x372   :  { %2872 = vmatprep.mubr.bf16.mxu1 %v8263_v23  ;;  %5088 = vmatpush1.bf16.msra.mxu0 %v7034_v63  ;;  %v7046_v23 = vld [vmem:[%s10098_s9 + $0xc0] ss:$16 sps:$4 sm:$0xff]  }
 0x373   :  { %5252 = vmatpush1.bf16.msra.mxu1 %v7037_v45  ;;  %5089 = vmatprep.subr.bf16.mxu0 %v7042_v16 }
 0x374   :  { %5253 = vmatprep.subr.bf16.mxu1 %v7045_v20 }
 0x376   :  { %5090 = vmatpush1.bf16.msra.mxu0 %v7040_v44 }
 0x377   :  { %5254 = vmatpush1.bf16.msra.mxu1 %v7043_v50  ;;  %5091 = vmatprep.subr.bf16.mxu0 %v7048_v21 }
 0x378   :  { %2727 = vmatmul.mubr.bf16.gmra.mrb[36].mxu0 %v8261_v22  ;;  %5255 = vmatprep.subr.bf16.mxu1 %v7051_v43 }
 0x379   :  { %2873 = vmatmul.mubr.bf16.gmra.mrb[68].mxu1 %v8261_v22  ;;  %v7063_v22 = vld [vmem:[%s10098_s9 + $0x10c] ss:$16 sps:$4 sm:$0xff]  }
 0x37a   :  { %5092 = vmatpush1.bf16.msra.mxu0 %v7046_v23 }
 0x37b   :  { %5256 = vmatpush1.bf16.msra.mxu1 %v7049_v24  ;;  %5093 = vmatprep.subr.bf16.mxu0 %v7054_v25 }
 0x37c   :  { %5257 = vmatprep.subr.bf16.mxu1 %v7057_v26 }
 0x37e   :  { %5094 = vmatpush1.bf16.msra.mxu0 %v7052_v27 }
 0x37f   :  { %5258 = vmatpush1.bf16.msra.mxu1 %v7055_v31  ;;  %5095 = vmatprep.subr.bf16.mxu0 %v7060_v33 }
 0x380   :  { %5259 = vmatprep.subr.bf16.mxu1 %v7063_v22 }
 0x382   :  { %5096 = vmatpush1.bf16.msra.mxu0 %v7058_v34 }
 0x383   :  { %5260 = vmatpush1.bf16.msra.mxu1 %v7061_v35  ;;  %5097 = vmatprep.subr.bf16.mxu0 %v7066_v36 }
 0x384   :  { %5261 = vmatprep.subr.bf16.mxu1 %v7069_v37 }
 0x386   :  { %5098 = vmatpush1.bf16.msra.mxu0 %v7064_v19 }
 0x387   :  { %5262 = vmatpush1.bf16.msra.mxu1 %v7067_v38  ;;  %5099 = vmatprep.subr.bf16.mxu0 %v7072_v54 }
 0x388   :  { %5263 = vmatprep.subr.bf16.mxu1 %v7075_v39 }
 0x38a   :  { %5100 = vmatpush1.bf16.msra.mxu0 %v7070_v40 }
 0x38b   :  { %5264 = vmatpush1.bf16.msra.mxu1 %v7073_v41  ;;  %5101 = vmatprep.subr.bf16.mxu0 %v7078_v42 }
 0x38c   :  { %5265 = vmatprep.subr.bf16.mxu1 %v7081_v47 }
 0x38e   :  { %5102 = vmatpush1.bf16.msra.mxu0 %v7076_v48 }
 0x38f   :  { %5266 = vmatpush1.bf16.msra.mxu1 %v7079_v49  ;;  %5103 = vmatprep.subr.bf16.mxu0 %v7084_v0 }
 0x390   :  { %5267 = vmatprep.subr.bf16.mxu1 %v7087_v51 }
 0x392   :  { %5104 = vmatpush1.bf16.msra.mxu0 %v7082_v52 }
 0x393   :  { %5268 = vmatpush1.bf16.msra.mxu1 %v7085_v61  ;;  %5105 = vmatprep.subr.bf16.mxu0 %v7090_v55 }
 0x394   :  { %5269 = vmatprep.subr.bf16.mxu1 %v7093_v56 }
 0x396   :  { %5106 = vmatpush1.bf16.msra.mxu0 %v7088_v53 }
 0x397   :  { %5270 = vmatpush1.bf16.msra.mxu1 %v7091_v57  ;;  %5107 = vmatprep.subr.bf16.mxu0 %v7096_v58 }
 0x398   :  { %5271 = vmatprep.subr.bf16.mxu1 %v7099_v17 }
 0x39a   :  { %5108 = vmatpush1.bf16.msra.mxu0 %v7094_v1 }
 0x39b   :  { %5272 = vmatpush1.bf16.msra.mxu1 %v7097_v30  ;;  %5109 = vmatprep.subr.bf16.mxu0 %v7102_v46 }
 0x39c   :  { %5273 = vmatprep.subr.bf16.mxu1 %v7105_v2 }
 0x39e   :  { %5110 = vmatpush1.bf16.msra.mxu0 %v7100_v3 }
 0x39f   :  { %5274 = vmatpush1.bf16.msra.mxu1 %v7103_v5  ;;  %5120 = vmatprep.subr.bf16.mxu0 %v7108_v8 }
 0x3a0   :  { %5284 = vmatprep.subr.bf16.mxu1 %v7111_v9 }
 0x3b2   :  { %v2406_v18 = vpop.f32.mrb[8].mxu0  ;;  %v2552_v12 = vpop.f32.mrb[40].mxu1 }
 0x3b3   :  { %v6790_v13 = vadd.f32 %v2406_v18, %v8900_v10  ;;  %v6806_v14 = vadd.f32 %v2552_v12, %v8904_v29  ;;  %v2408_v15 = vpop.f32.mrb[9].mxu0  ;;  %v2554_v6 = vpop.f32.mrb[41].mxu1 }
 0x3b4   :  { %v6791_v63 = vadd.f32 %v2408_v15, %v8908_v7  ;;  %v6807_v45 = vadd.f32 %v2554_v6, %v8912_v11  ;;  %v2410_v16 = vpop.f32.mrb[10].mxu0  ;;  %v2556_v20 = vpop.f32.mrb[42].mxu1 }
 0x3b5   :  { %v2883_v44 = vmax.f32 %v6790_v13, 0.0  ;;  %v2885_v50 = vmax.f32 %v6806_v14, 0.0  ;;  %v6792_v21 = vadd.f32 %v2410_v16, %v8900_v10  ;;  %v6808_v43 = vadd.f32 %v2556_v20, %v8904_v29  ;;  %v2412_v23 = vpop.f32.mrb[11].mxu0  ;;  %v2558_v24 = vpop.f32.mrb[43].mxu1 }
 0x3b6   :  { %v2884_v25 = vmax.f32 %v6791_v63, 0.0  ;;  %v2886_v26 = vmax.f32 %v6807_v45, 0.0  ;;  %v6793_v27 = vadd.f32 %v2412_v23, %v8908_v7  ;;  %v6809_v31 = vadd.f32 %v2558_v24, %v8912_v11 }
 0x3b7   :  { %v2947_v33 = vrot.slane %v2883_v44, 4  ;;  %v2959_v22 = vrot.slane %v2885_v50, 4  ;;  %v2891_v34 = vmax.f32 %v6792_v21, 0.0  ;;  %v2893_v35 = vmax.f32 %v6808_v43, 0.0 }
 0x3b8   :  { %v2953_v36 = vrot.slane %v2884_v25, 4  ;;  %v2965_v37 = vrot.slane %v2886_v26, 4  ;;  %v2892_v19 = vmax.f32 %v6793_v27, 0.0  ;;  %v2894_v38 = vmax.f32 %v6809_v31, 0.0 }
 0x3b9   :  { %v2948_v54 = vmax.f32 %v2883_v44, %v2947_v33  ;;  %v2960_v39 = vmax.f32 %v2885_v50, %v2959_v22  ;;  %v2995_v40 = vrot.slane %v2891_v34, 4  ;;  %v3007_v41 = vrot.slane %v2893_v35, 4 }
 0x3ba   :  { %v2954_v42 = vmax.f32 %v2884_v25, %v2953_v36  ;;  %v2966_v47 = vmax.f32 %v2886_v26, %v2965_v37  ;;  %v3001_v48 = vrot.slane %v2892_v19, 4  ;;  %v3013_v49 = vrot.slane %v2894_v38, 4  ;;  %v2416_v0 = vpop.f32.mrb[12].mxu0  ;;  %v2562_v51 = vpop.f32.mrb[44].mxu1 }
 0x3bb   :  { %v2949_v52 = vrot.slane %v2948_v54, 2  ;;  %v2961_v61 = vrot.slane %v2960_v39, 2  ;;  %v2996_v55 = vmax.f32 %v2891_v34, %v2995_v40  ;;  %v3008_v56 = vmax.f32 %v2893_v35, %v3007_v41  ;;  %v2418_v53 = vpop.f32.mrb[13].mxu0  ;;  %v2564_v57 = vpop.f32.mrb[45].mxu1 }
 0x3bc   :  { %v2955_v58 = vrot.slane %v2954_v42, 2  ;;  %v2967_v17 = vrot.slane %v2966_v47, 2  ;;  %v3002_v1 = vmax.f32 %v2892_v19, %v3001_v48  ;;  %v3014_v30 = vmax.f32 %v2894_v38, %v3013_v49  ;;  %v2420_v46 = vpop.f32.mrb[14].mxu0  ;;  %v2566_v2 = vpop.f32.mrb[46].mxu1 }
 0x3bd   :  { %v2950_v3 = vmax.f32 %v2948_v54, %v2949_v52  ;;  %v2962_v5 = vmax.f32 %v2960_v39, %v2961_v61  ;;  %v2997_v8 = vrot.slane %v2996_v55, 2  ;;  %v3009_v9 = vrot.slane %v3008_v56, 2  ;;  %v2422_v18 = vpop.f32.mrb[15].mxu0  ;;  %v2568_v12 = vpop.f32.mrb[47].mxu1 }
 0x3be   :  { %v2956_v13 = vmax.f32 %v2954_v42, %v2955_v58  ;;  %v2968_v14 = vmax.f32 %v2966_v47, %v2967_v17  ;;  %v3003_v15 = vrot.slane %v3002_v1, 2  ;;  %v3015_v6 = vrot.slane %v3014_v30, 2 }
 0x3bf   :  { %v2951_v63 = vrot.slane %v2950_v3, 1  ;;  %v2963_v45 = vrot.slane %v2962_v5, 1  ;;  %v2998_v16 = vmax.f32 %v2996_v55, %v2997_v8  ;;  %v3010_v20 = vmax.f32 %v3008_v56, %v3009_v9 }
 0x3c0   :  { %v2957_v44 = vrot.slane %v2956_v13, 1  ;;  %v2969_v50 = vrot.slane %v2968_v14, 1  ;;  %v3004_v21 = vmax.f32 %v3002_v1, %v3003_v15  ;;  %v3016_v43 = vmax.f32 %v3014_v30, %v3015_v6 }
 0x3c1   :  { %v2952_v23 = vmax.f32 %v2950_v3, %v2951_v63  ;;  %v2964_v24 = vmax.f32 %v2962_v5, %v2963_v45  ;;  %v2999_v25 = vrot.slane %v2998_v16, 1  ;;  %v3011_v26 = vrot.slane %v3010_v20, 1 }
 0x3c2   :  { %v2958_v27 = vmax.f32 %v2956_v13, %v2957_v44  ;;  %v2970_v31 = vmax.f32 %v2968_v14, %v2969_v50  ;;  %v3005_v33 = vrot.slane %v3004_v21, 1  ;;  %v3017_v22 = vrot.slane %v3016_v43, 1  ;;  %v8922_v34 = vpop.f32.mrb[16].mxu0  ;;  %v8924_v35 = vpop.f32.mrb[48].mxu1 }
 0x3c3   :  { %v3000_v36 = vmax.f32 %v2998_v16, %v2999_v25  ;;  %v3012_v37 = vmax.f32 %v3010_v20, %v3011_v26  ;;  %v6794_v19 = vadd.f32 %v2416_v0, %v8900_v10  ;;  %v6810_v38 = vadd.f32 %v2562_v51, %v8904_v29  ;;  %v8928_v54 = vpop.f32.mrb[17].mxu0  ;;  %v8930_v39 = vpop.f32.mrb[49].mxu1 }
 0x3c4   :  { %v3006_v40 = vmax.f32 %v3004_v21, %v3005_v33  ;;  %v3018_v41 = vmax.f32 %v3016_v43, %v3017_v22  ;;  %v6795_v42 = vadd.f32 %v2418_v53, %v8908_v7  ;;  %v6811_v47 = vadd.f32 %v2564_v57, %v8912_v11  ;;  %v8934_v48 = vpop.f32.mrb[18].mxu0  ;;  %v8936_v49 = vpop.f32.mrb[50].mxu1 }
 0x3c5   :  { %v8939_v52 = vsel %vm3415_vm2, %v3000_v36, %v2952_v23  ;;  %v8942_v0 = vsel %vm3415_vm2, %v3012_v37, %v2964_v24  ;;  %v2899_v51 = vmax.f32 %v6794_v19, 0.0  ;;  %v2901_v61 = vmax.f32 %v6810_v38, 0.0  ;;  %v8944_v55 = vpop.f32.mrb[19].mxu0  ;;  %v8946_v56 = vpop.f32.mrb[51].mxu1 }
 0x3c6   :  { %v8949_v53 = vsel %vm3415_vm2, %v3006_v40, %v2958_v27  ;;  %v8952_v57 = vsel %vm3415_vm2, %v3018_v41, %v2970_v31  ;;  %v2900_v58 = vmax.f32 %v6795_v42, 0.0  ;;  %v2902_v17 = vmax.f32 %v6811_v47, 0.0 }
 0x3c7   :  { %v3043_v1 = vrot.slane %v2899_v51, 4  ;;  %v3055_v30 = vrot.slane %v2901_v61, 4  ;;  %v6796_v3 = vadd.f32 %v2420_v46, %v8900_v10  ;;  %v6812_v5 = vadd.f32 %v2566_v2, %v8904_v29 }
 0x3c8   :  { %v3049_v8 = vrot.slane %v2900_v58, 4  ;;  %v3061_v9 = vrot.slane %v2902_v17, 4  ;;  %v6797_v13 = vadd.f32 %v2422_v18, %v8908_v7  ;;  %v6813_v14 = vadd.f32 %v2568_v12, %v8912_v11 }
 0x3c9   :  { %v3044_v15 = vmax.f32 %v2899_v51, %v3043_v1  ;;  %v3056_v6 = vmax.f32 %v2901_v61, %v3055_v30  ;;  %v2907_v63 = vmax.f32 %v6796_v3, 0.0  ;;  %v2909_v45 = vmax.f32 %v6812_v5, 0.0 }
 0x3ca   :  { %v3050_v16 = vmax.f32 %v2900_v58, %v3049_v8  ;;  %v3062_v20 = vmax.f32 %v2902_v17, %v3061_v9  ;;  %v2908_v44 = vmax.f32 %v6797_v13, 0.0  ;;  %v2910_v50 = vmax.f32 %v6813_v14, 0.0  ;;  %v8958_v21 = vpop.f32.mrb[20].mxu0  ;;  %v8960_v46 = vpop.f32.mrb[52].mxu1 }
 0x3cb   :  { %v3045_v2 = vrot.slane %v3044_v15, 2  ;;  %v3057_v43 = vrot.slane %v3056_v6, 2  ;;  %v3091_v23 = vrot.slane %v2907_v63, 4  ;;  %v3103_v24 = vrot.slane %v2909_v45, 4  ;;  %v8962_v25 = vpop.f32.mrb[21].mxu0  ;;  %v8964_v18 = vpop.f32.mrb[53].mxu1 }
 0x3cc   :  { %v3051_v12 = vrot.slane %v3050_v16, 2  ;;  %v3063_v26 = vrot.slane %v3062_v20, 2  ;;  %v3097_v27 = vrot.slane %v2908_v44, 4  ;;  %v3109_v31 = vrot.slane %v2910_v50, 4  ;;  %v8966_v33 = vpop.f32.mrb[22].mxu0  ;;  %v8968_v22 = vpop.f32.mrb[54].mxu1 }
 0x3cd   :  { %v3046_v36 = vmax.f32 %v3044_v15, %v3045_v2  ;;  %v3058_v37 = vmax.f32 %v3056_v6, %v3057_v43  ;;  %v3092_v19 = vmax.f32 %v2907_v63, %v3091_v23  ;;  %v3104_v38 = vmax.f32 %v2909_v45, %v3103_v24  ;;  %v8970_v40 = vpop.f32.mrb[23].mxu0  ;;  %v8972_v41 = vpop.f32.mrb[55].mxu1 }
 0x3ce   :  { %v3052_v42 = vmax.f32 %v3050_v16, %v3051_v12  ;;  %v3064_v47 = vmax.f32 %v3062_v20, %v3063_v26  ;;  %v3098_v51 = vmax.f32 %v2908_v44, %v3097_v27  ;;  %v3110_v61 = vmax.f32 %v2910_v50, %v3109_v31 }
 0x3cf   :  { %v3047_v58 = vrot.slane %v3046_v36, 1  ;;  %v3059_v17 = vrot.slane %v3058_v37, 1  ;;  %v3093_v1 = vrot.slane %v3092_v19, 2  ;;  %v3105_v30 = vrot.slane %v3104_v38, 2 }
 0x3d0   :  { %v3053_v3 = vrot.slane %v3052_v42, 1  ;;  %v3065_v5 = vrot.slane %v3064_v47, 1  ;;  %v3099_v8 = vrot.slane %v3098_v51, 2  ;;  %v3111_v9 = vrot.slane %v3110_v61, 2 }
 0x3d1   :  { %v3048_v13 = vmax.f32 %v3046_v36, %v3047_v58  ;;  %v3060_v14 = vmax.f32 %v3058_v37, %v3059_v17  ;;  %v3094_v15 = vmax.f32 %v3092_v19, %v3093_v1  ;;  %v3106_v6 = vmax.f32 %v3104_v38, %v3105_v30 }
 0x3d2   :  { %v3054_v63 = vmax.f32 %v3052_v42, %v3053_v3  ;;  %v3066_v45 = vmax.f32 %v3064_v47, %v3065_v5  ;;  %v3100_v2 = vmax.f32 %v3098_v51, %v3099_v8  ;;  %v3112_v43 = vmax.f32 %v3110_v61, %v3111_v9 }
 0x3d3   :  { %v3418_v16 = vsel %vm3417_vm3, %v3048_v13, %v8939_v52  ;;  %v3437_v20 = vsel %vm3417_vm3, %v3060_v14, %v8942_v0  ;;  %v3095_v44 = vrot.slane %v3094_v15, 1  ;;  %v3107_v50 = vrot.slane %v3106_v6, 1 }
 0x3d4   :  { %v3430_v23 = vsel %vm3417_vm3, %v3054_v63, %v8949_v53  ;;  %v3444_v24 = vsel %vm3417_vm3, %v3066_v45, %v8952_v57  ;;  %v3101_v12 = vrot.slane %v3100_v2, 1  ;;  %v3113_v26 = vrot.slane %v3112_v43, 1 }
 0x3d5   :  { %v3096_v27 = vmax.f32 %v3094_v15, %v3095_v44  ;;  %v3108_v31 = vmax.f32 %v3106_v6, %v3107_v50  ;;  %v6798_v36 = vadd.f32 %v8922_v34, %v8900_v10  ;;  %v6814_v52 = vadd.f32 %v8924_v35, %v8904_v29 }
 0x3d6   :  { %v3102_v37 = vmax.f32 %v3100_v2, %v3101_v12  ;;  %v3114_v0 = vmax.f32 %v3112_v43, %v3113_v26  ;;  %v6799_v19 = vadd.f32 %v8928_v54, %v8908_v7  ;;  %v6815_v53 = vadd.f32 %v8930_v39, %v8912_v11 }
 0x3d7   :  { %v3420_v57 = vsel %vm3419_vm4, %v3096_v27, %v3418_v16  ;;  %v3438_v38 = vsel %vm3419_vm4, %v3108_v31, %v3437_v20  ;;  %v2915_v42 = vmax.f32 %v6798_v36, 0.0  ;;  %v2917_v47 = vmax.f32 %v6814_v52, 0.0 }
 0x3d8   :  { %v8993_v51 = vsel %vm3419_vm4, %v3102_v37, %v3430_v23  ;;  %v8996_v34 = vsel %vm3419_vm4, %v3114_v0, %v3444_v24  ;;  %v2916_v35 = vmax.f32 %v6799_v19, 0.0  ;;  %v2918_v61 = vmax.f32 %v6815_v53, 0.0 }
 0x3d9   :  { %v3139_v58 = vrot.slane %v2915_v42, 4  ;;  %v3151_v17 = vrot.slane %v2917_v47, 4  ;;  %v6800_v54 = vadd.f32 %v8934_v48, %v8900_v10  ;;  %v6816_v39 = vadd.f32 %v8936_v49, %v8904_v29 }
 0x3da   :  { %v3145_v1 = vrot.slane %v2916_v35, 4  ;;  %v3157_v30 = vrot.slane %v2918_v61, 4  ;;  %v6801_v3 = vadd.f32 %v8944_v55, %v8908_v7  ;;  %v6817_v5 = vadd.f32 %v8946_v56, %v8912_v11 }
 0x3db   :  { %v3140_v8 = vmax.f32 %v2915_v42, %v3139_v58  ;;  %v3152_v9 = vmax.f32 %v2917_v47, %v3151_v17  ;;  %v2923_v13 = vmax.f32 %v6800_v54, 0.0  ;;  %v2925_v14 = vmax.f32 %v6816_v39, 0.0 }
 0x3dc   :  { %v3146_v15 = vmax.f32 %v2916_v35, %v3145_v1  ;;  %v3158_v6 = vmax.f32 %v2918_v61, %v3157_v30  ;;  %v2924_v63 = vmax.f32 %v6801_v3, 0.0  ;;  %v2926_v48 = vmax.f32 %v6817_v5, 0.0 }
 0x3dd   :  { %v3141_v45 = vrot.slane %v3140_v8, 2  ;;  %v3153_v2 = vrot.slane %v3152_v9, 2  ;;  %v3187_v49 = vrot.slane %v2923_v13, 4  ;;  %v3199_v43 = vrot.slane %v2925_v14, 4 }
 0x3de   :  { %v3147_v16 = vrot.slane %v3146_v15, 2  ;;  %v3159_v20 = vrot.slane %v3158_v6, 2  ;;  %v3193_v44 = vrot.slane %v2924_v63, 4  ;;  %v3205_v55 = vrot.slane %v2926_v48, 4 }
 0x3df   :  { %v3142_v50 = vmax.f32 %v3140_v8, %v3141_v45  ;;  %v3154_v23 = vmax.f32 %v3152_v9, %v3153_v2  ;;  %v3188_v56 = vmax.f32 %v2923_v13, %v3187_v49  ;;  %v3200_v24 = vmax.f32 %v2925_v14, %v3199_v43 }
 0x3e0   :  { %v3148_v12 = vmax.f32 %v3146_v15, %v3147_v16  ;;  %v3160_v26 = vmax.f32 %v3158_v6, %v3159_v20  ;;  %v3194_v27 = vmax.f32 %v2924_v63, %v3193_v44  ;;  %v3206_v31 = vmax.f32 %v2926_v48, %v3205_v55 }
 0x3e1   :  { %v3143_v36 = vrot.slane %v3142_v50, 1  ;;  %v3155_v52 = vrot.slane %v3154_v23, 1  ;;  %v3189_v37 = vrot.slane %v3188_v56, 2  ;;  %v3201_v0 = vrot.slane %v3200_v24, 2 }
 0x3e2   :  { %v3149_v19 = vrot.slane %v3148_v12, 1  ;;  %v3161_v53 = vrot.slane %v3160_v26, 1  ;;  %v3195_v42 = vrot.slane %v3194_v27, 2  ;;  %v3207_v47 = vrot.slane %v3206_v31, 2 }
 0x3e3   :  { %v3144_v35 = vmax.f32 %v3142_v50, %v3143_v36  ;;  %v3156_v61 = vmax.f32 %v3154_v23, %v3155_v52  ;;  %v3190_v58 = vmax.f32 %v3188_v56, %v3189_v37  ;;  %v3202_v17 = vmax.f32 %v3200_v24, %v3201_v0 }
 0x3e4   :  { %v9006_v54 = vmax.f32 %v3148_v12, %v3149_v19  ;;  %v9008_v39 = vmax.f32 %v3160_v26, %v3161_v53  ;;  %v3196_v1 = vmax.f32 %v3194_v27, %v3195_v42  ;;  %v3208_v30 = vmax.f32 %v3206_v31, %v3207_v47 }
 0x3e5   :  { %v3422_v3 = vsel %vm3421_vm5, %v3144_v35, %v3420_v57  ;;  %v3439_v5 = vsel %vm3421_vm5, %v3156_v61, %v3438_v38  ;;  %v3191_v8 = vrot.slane %v3190_v58, 1  ;;  %v3203_v9 = vrot.slane %v3202_v17, 1 }
 0x3e6   :  { %v3197_v13 = vrot.slane %v3196_v1, 1  ;;  %v3209_v14 = vrot.slane %v3208_v30, 1  ;;  %v6802_v15 = vadd.f32 %v8958_v21, %v8900_v10  ;;  %v6818_v6 = vadd.f32 %v8960_v46, %v8904_v29 }
 0x3e7   :  { %v3192_v63 = vmax.f32 %v3190_v58, %v3191_v8  ;;  %v3204_v48 = vmax.f32 %v3202_v17, %v3203_v9  ;;  %v6803_v45 = vadd.f32 %v8962_v25, %v8908_v7  ;;  %v6819_v57 = vadd.f32 %v8964_v18, %v8912_v11 }
 0x3e8   :  { %v9020_v2 = vmax.f32 %v3196_v1, %v3197_v13  ;;  %v9022_v38 = vmax.f32 %v3208_v30, %v3209_v14  ;;  %v2931_v49 = vmax.f32 %v6802_v15, 0.0  ;;  %v2933_v43 = vmax.f32 %v6818_v6, 0.0 }
 0x3e9   :  { %v3424_v16 = vsel %vm3423_vm6, %v3192_v63, %v3422_v3  ;;  %v9026_v21 = vsel %vm3423_vm6, %v3204_v48, %v3439_v5  ;;  %v2932_v46 = vmax.f32 %v6803_v45, 0.0  ;;  %v2934_v20 = vmax.f32 %v6819_v57, 0.0 }
 0x3ea   :  { %v3235_v44 = vrot.slane %v2931_v49, 4  ;;  %v3247_v55 = vrot.slane %v2933_v43, 4  ;;  %v6804_v25 = vadd.f32 %v8966_v33, %v8900_v10  ;;  %v6820_v18 = vadd.f32 %v8968_v22, %v8904_v29 }
 0x3eb   :  { %v3241_v50 = vrot.slane %v2932_v46, 4  ;;  %v3253_v23 = vrot.slane %v2934_v20, 4  ;;  %v6805_v56 = vadd.f32 %v8970_v40, %v8908_v7  ;;  %v6821_v24 = vadd.f32 %v8972_v41, %v8912_v11 }
 0x3ec   :  { %v3236_v12 = vmax.f32 %v2931_v49, %v3235_v44  ;;  %v3248_v26 = vmax.f32 %v2933_v43, %v3247_v55  ;;  %v2939_v27 = vmax.f32 %v6804_v25, 0.0  ;;  %v2941_v31 = vmax.f32 %v6820_v18, 0.0 }
 0x3ed   :  { %v3242_v36 = vmax.f32 %v2932_v46, %v3241_v50  ;;  %v3254_v52 = vmax.f32 %v2934_v20, %v3253_v23  ;;  %v2940_v37 = vmax.f32 %v6805_v56, 0.0  ;;  %v2942_v10 = vmax.f32 %v6821_v24, 0.0 }
 0x3ee   :  { %v3237_v33 = vrot.slane %v3236_v12, 2  ;;  %v3249_v0 = vrot.slane %v3248_v26, 2  ;;  %v3283_v29 = vrot.slane %v2939_v27, 4  ;;  %v3295_v22 = vrot.slane %v2941_v31, 4 }
 0x3ef   :  { %v3243_v19 = vrot.slane %v3242_v36, 2  ;;  %v3255_v53 = vrot.slane %v3254_v52, 2  ;;  %v3289_v42 = vrot.slane %v2940_v37, 4  ;;  %v3301_v7 = vrot.slane %v2942_v10, 4 }
 0x3f0   :  { %v3238_v40 = vmax.f32 %v3236_v12, %v3237_v33  ;;  %v3250_v47 = vmax.f32 %v3248_v26, %v3249_v0  ;;  %v3284_v11 = vmax.f32 %v2939_v27, %v3283_v29  ;;  %v3296_v41 = vmax.f32 %v2941_v31, %v3295_v22  ;;  %v7112_v0 = vld [vmem:[%s10098_s9 + $0x220] ss:$16 sps:$4 sm:$0xff]   ;;  %v7115_v29 = vld [vmem:[%s10098_s9 + $0x228] ss:$16 sps:$4 sm:$0xff]   ;;  %v7120_v22 = vld [vmem:[%s10098_s9 + $0x244] ss:$16 sps:$4 sm:$0xff]  }
 0x3f1   :  { %v3244_v35 = vmax.f32 %v3242_v36, %v3243_v19  ;;  %v3256_v61 = vmax.f32 %v3254_v52, %v3255_v53  ;;  %v3290_v58 = vmax.f32 %v2940_v37, %v3289_v42  ;;  %v3302_v17 = vmax.f32 %v2942_v10, %v3301_v7  ;;  %v7109_v52 = vld [vmem:[%s10098_s9 + $0x208] ss:$16 sps:$4 sm:$0xff]   ;;  %v7117_v10 = vld [vmem:[%s10098_s9 + $0x22c] ss:$16 sps:$4 sm:$0xff]   ;;  %v7118_v53 = vld [vmem:[%s10098_s9 + $0x240] ss:$16 sps:$4 sm:$0xff]  }
 0x3f2   :  { %v3239_v1 = vrot.slane %v3238_v40, 1  ;;  %v3251_v30 = vrot.slane %v3250_v47, 1  ;;  %v3285_v3 = vrot.slane %v3284_v11, 2  ;;  %v3297_v5 = vrot.slane %v3296_v41, 2  ;;  %v7123_v19 = vld [vmem:[%s10098_s9 + $0x24c] ss:$16 sps:$4 sm:$0xff]  }
 0x3f3   :  { %v3245_v8 = vrot.slane %v3244_v35, 1  ;;  %v3257_v9 = vrot.slane %v3256_v61, 1  ;;  %v3291_v13 = vrot.slane %v3290_v58, 2  ;;  %v3303_v14 = vrot.slane %v3302_v17, 2  ;;  %v7121_v42 = vld [vmem:[%s10098_s9 + $0x248] ss:$16 sps:$4 sm:$0xff]  }
 0x3f4   :  { %v3240_v15 = vmax.f32 %v3238_v40, %v3239_v1  ;;  %v3252_v6 = vmax.f32 %v3250_v47, %v3251_v30  ;;  %v3286_v63 = vmax.f32 %v3284_v11, %v3285_v3  ;;  %v3298_v48 = vmax.f32 %v3296_v41, %v3297_v5  ;;  %v7126_v7 = vld [vmem:[%s10098_s9 + $0x264] ss:$16 sps:$4 sm:$0xff]   ;;  %v7129_v40 = vld [vmem:[%s10098_s9 + $0x26c] ss:$16 sps:$4 sm:$0xff]   ;;  %v7124_v47 = vld [vmem:[%s10098_s9 + $0x260] ss:$16 sps:$4 sm:$0xff]  }
 0x3f5   :  { %v3246_v45 = vmax.f32 %v3244_v35, %v3245_v8  ;;  %v3258_v57 = vmax.f32 %v3256_v61, %v3257_v9  ;;  %v3292_v49 = vmax.f32 %v3290_v58, %v3291_v13  ;;  %v3304_v43 = vmax.f32 %v3302_v17, %v3303_v14  ;;  %v7127_v11 = vld [vmem:[%s10098_s9 + $0x268] ss:$16 sps:$4 sm:$0xff]   ;;  %v7132_v41 = vld [vmem:[%s10098_s9 + $0x284] ss:$16 sps:$4 sm:$0xff]   ;;  %v7135_v35 = vld [vmem:[%s10098_s9 + $0x28c] ss:$16 sps:$4 sm:$0xff]  }
 0x3f6   :  { %v3426_v46 = vsel %vm3425_vm7, %v3240_v15, %v3424_v16  ;;  %v3287_v20 = vrot.slane %v3286_v63, 1  ;;  %v3299_v44 = vrot.slane %v3298_v48, 1  ;;  %v3432_v55 = vsel %vm3421_vm5, %v9006_v54, %v8993_v51  ;;  %v7130_v61 = vld [vmem:[%s10098_s9 + $0x280] ss:$16 sps:$4 sm:$0xff]   ;;  %v7133_v58 = vld [vmem:[%s10098_s9 + $0x288] ss:$16 sps:$4 sm:$0xff]  }
 0x3f7   :  { %v3293_v25 = vrot.slane %v3292_v49, 1  ;;  %v3305_v18 = vrot.slane %v3304_v43, 1  ;;  %v3433_v50 = vsel %vm3423_vm6, %v9020_v2, %v3432_v55  ;;  %v3446_v23 = vsel %vm3421_vm5, %v9008_v39, %v8996_v34  ;;  %v7138_v17 = vld [vmem:[%s10098_s9 + $0x2a4] ss:$16 sps:$4 sm:$0xff]   ;;  %v7141_v1 = vld [vmem:[%s10098_s9 + $0x2ac] ss:$16 sps:$4 sm:$0xff]  }
 0x3f8   :  { %v3288_v56 = vmax.f32 %v3286_v63, %v3287_v20  ;;  %v3300_v24 = vmax.f32 %v3298_v48, %v3299_v44  ;;  %v3434_v12 = vsel %vm3425_vm7, %v3246_v45, %v3433_v50  ;;  %v3447_v16 = vsel %vm3423_vm6, %v9022_v38, %v3446_v23  ;;  %v7106_v38 = vld [vmem:[%s10098_s9 + $0x200] ss:$16 sps:$4 sm:$0xff]   ;;  %v7139_v3 = vld [vmem:[%s10098_s9 + $0x2a8] ss:$16 sps:$4 sm:$0xff]   ;;  %v7144_v5 = vld [vmem:[%s10098_s9 + $0x2c4] ss:$16 sps:$4 sm:$0xff]  }
 0x3f9   :  { %v3294_v26 = vmax.f32 %v3292_v49, %v3293_v25  ;;  %v3306_v27 = vmax.f32 %v3304_v43, %v3305_v18  ;;  %v3448_v51 = vsel %vm3425_vm7, %v3258_v57, %v3447_v16  ;;  %v3441_v54 = vsel %vm3425_vm7, %v3252_v6, %v9026_v21  ;;  %v7114_v21 = vld [vmem:[%s10098_s9 + $0x224] ss:$16 sps:$4 sm:$0xff]   ;;  %v7136_v30 = vld [vmem:[%s10098_s9 + $0x2a0] ss:$16 sps:$4 sm:$0xff]   ;;  %v7147_v8 = vld [vmem:[%s10098_s9 + $0x2cc] ss:$16 sps:$4 sm:$0xff]  }
 0x3fa   :  { %v3428_v2 = vsel %vm3427_vm8, %v3288_v56, %v3426_v46  ;;  %v9053_v31 = vsel %vm3427_vm8, %v3300_v24, %v3441_v54  ;;  %v7142_v9 = vld [vmem:[%s10098_s9 + $0x2c0] ss:$16 sps:$4 sm:$0xff]   ;;  %v7145_v13 = vld [vmem:[%s10098_s9 + $0x2c8] ss:$16 sps:$4 sm:$0xff]   ;;  %v7150_v14 = vld [vmem:[%s10098_s9 + $0x2e4] ss:$16 sps:$4 sm:$0xff]  }
 0x3fb   :  { %v3435_v34 = vsel %vm3427_vm8, %v3294_v26, %v3434_v12  ;;  %v3449_v39 = vsel %vm3427_vm8, %v3306_v27, %v3448_v51  ;;  %v3513_v37 = vpack.c.bf16 %v3428_v2, %v3428_v2  ;;  %v7153_v15 = vld [vmem:[%s10098_s9 + $0x2ec] ss:$16 sps:$4 sm:$0xff]   ;;  %v7148_v6 = vld [vmem:[%s10098_s9 + $0x2e0] ss:$16 sps:$4 sm:$0xff]   ;;  %v7151_v63 = vld [vmem:[%s10098_s9 + $0x2e8] ss:$16 sps:$4 sm:$0xff]  }
 0x3fc   :  { %v3514_v36 = vpack.c.bf16 %v3435_v34, %v3435_v34  ;;  %v3516_v33 = vpack.c.bf16 %v3449_v39, %v3449_v39  ;;  %v7156_v48 = vld [vmem:[%s10098_s9 + $0x304] ss:$16 sps:$4 sm:$0xff]   ;;  %v7159_v45 = vld [vmem:[%s10098_s9 + $0x30c] ss:$16 sps:$4 sm:$0xff]   ;;  %v7154_v57 = vld [vmem:[%s10098_s9 + $0x300] ss:$16 sps:$4 sm:$0xff]  }
 0x3fd   :  { %v7157_v49 = vld [vmem:[%s10098_s9 + $0x308] ss:$16 sps:$4 sm:$0xff]   ;;  %v7162_v43 = vld [vmem:[%s10098_s9 + $0x324] ss:$16 sps:$4 sm:$0xff]   ;;  %v7165_v46 = vld [vmem:[%s10098_s9 + $0x32c] ss:$16 sps:$4 sm:$0xff]  }
 0x3fe   :  { %5111 = vmatprep.mubr.bf16.mxu0 %v3514_v36  ;;  %5275 = vmatprep.mubr.bf16.mxu1 %v3514_v36  ;;  %v7160_v20 = vld [vmem:[%s10098_s9 + $0x320] ss:$16 sps:$4 sm:$0xff]   ;;  %v7163_v44 = vld [vmem:[%s10098_s9 + $0x328] ss:$16 sps:$4 sm:$0xff]   ;;  %v7168_v55 = vld [vmem:[%s10098_s9 + $0x344] ss:$16 sps:$4 sm:$0xff]  }
 0x3ff   :  { %5112 = vmatmul.mubr.bf16.vlgmr.msra.gmra.mrb[40].mxu0 %v3513_v37  ;;  %5276 = vmatmul.mubr.bf16.vlgmr.msra.gmra.mrb[72].mxu1 %v3513_v37  ;;  %v7171_v25 = vld [vmem:[%s10098_s9 + $0x34c] ss:$16 sps:$4 sm:$0xff]   ;;  %v7166_v18 = vld [vmem:[%s10098_s9 + $0x340] ss:$16 sps:$4 sm:$0xff]   ;;  %v7169_v50 = vld [vmem:[%s10098_s9 + $0x348] ss:$16 sps:$4 sm:$0xff]  }
 0x400   :  { %5121 = vmatpush1.bf16.msra.mxu0 %v7106_v38  ;;  %5285 = vmatpush1.bf16.msra.mxu1 %v7109_v52  ;;  %v7174_v23 = vld [vmem:[%s10098_s9 + $0x364] ss:$16 sps:$4 sm:$0xff]   ;;  %v7177_v56 = vld [vmem:[%s10098_s9 + $0x36c] ss:$16 sps:$4 sm:$0xff]   ;;  %v7172_v24 = vld [vmem:[%s10098_s9 + $0x360] ss:$16 sps:$4 sm:$0xff]  }
 0x401   :  { %5152 = vmatprep.mubr.bf16.mxu0 %v3516_v33  ;;  %5316 = vmatprep.mubr.bf16.mxu1 %v3516_v33  ;;  %v7175_v12 = vld [vmem:[%s10098_s9 + $0x368] ss:$16 sps:$4 sm:$0xff]   ;;  %v7180_v16 = vld [vmem:[%s10098_s9 + $0x384] ss:$16 sps:$4 sm:$0xff]   ;;  %v7183_v26 = vld [vmem:[%s10098_s9 + $0x38c] ss:$16 sps:$4 sm:$0xff]  }
 0x402   :  { %5122 = vmatprep.subr.bf16.mxu0 %v7114_v21  ;;  %5286 = vmatprep.subr.bf16.mxu1 %v7117_v10  ;;  %v7178_v27 = vld [vmem:[%s10098_s9 + $0x380] ss:$16 sps:$4 sm:$0xff]   ;;  %v7181_v51 = vld [vmem:[%s10098_s9 + $0x388] ss:$16 sps:$4 sm:$0xff]   ;;  %v997_v54 = vsub.s32 4, %v7968_v59  ;;  %v1005_v39 = vsub.s32 6, %v7968_v59 }
 0x403   :  { %v7186_v2 = vld [vmem:[%s10098_s9 + $0x3a4] ss:$16 sps:$4 sm:$0xff]   ;;  %v7189_v34 = vld [vmem:[%s10098_s9 + $0x3ac] ss:$16 sps:$4 sm:$0xff]   ;;  %v1001_v36 = vsub.s32 5, %v7968_v59  ;;  %v1009_v38 = vsub.s32 7, %v7968_v59 }
 0x404   :  { %5123 = vmatpush1.bf16.msra.mxu0 %v7112_v0  ;;  %5287 = vmatpush1.bf16.msra.mxu1 %v7115_v29  ;;  %v7184_v52 = vld [vmem:[%s10098_s9 + $0x3a0] ss:$16 sps:$4 sm:$0xff]   ;;  %v7187_v37 = vld [vmem:[%s10098_s9 + $0x3a8] ss:$16 sps:$4 sm:$0xff]   ;;  %v9224_v21 = vrot.slane %v8896_v4, %v997_v54  ;;  %v7192_v10 = vld [vmem:[%s10098_s9 + $0x3c4] ss:$16 sps:$4 sm:$0xff]   ;;  %v9233_v33 = vrot.slane %v8896_v4, %v1005_v39 }
 0x405   :  { %5124 = vmatprep.subr.bf16.mxu0 %v7120_v22  ;;  %5288 = vmatprep.subr.bf16.mxu1 %v7123_v19  ;;  %v7195_v59 = vld [vmem:[%s10098_s9 + $0x3cc] ss:$16 sps:$4 sm:$0xff]   ;;  %v9236_v0 = vrot.slane %v8896_v4, %v1001_v36  ;;  %v9239_v29 = vrot.slane %v8896_v4, %v1009_v38  ;;  %v7190_v19 = vld [vmem:[%s10098_s9 + $0x3c0] ss:$16 sps:$4 sm:$0xff]   ;;  %v7198_v4 = vld [vmem:[%s10098_s9 + $0x3e4] ss:$16 sps:$4 sm:$0xff]  }
 0x406   :  { %v7210_v54 = vld [vmem:[%s10098_s9 + $0x424] ss:$16 sps:$4 sm:$0xff]  }
 0x408   :  { %5125 = vmatpush1.bf16.msra.mxu0 %v7118_v53  ;;  %5289 = vmatpush1.bf16.msra.mxu1 %v7121_v42  ;;  %v7193_v53 = vld [vmem:[%s10098_s9 + $0x3c8] ss:$16 sps:$4 sm:$0xff]  }
 0x409   :  { %5126 = vmatprep.subr.bf16.mxu0 %v7126_v7  ;;  %5290 = vmatprep.subr.bf16.mxu1 %v7129_v40 }
 0x40c   :  { %5127 = vmatpush1.bf16.msra.mxu0 %v7124_v47  ;;  %5291 = vmatpush1.bf16.msra.mxu1 %v7127_v11  ;;  %v7201_v47 = vld [vmem:[%s10098_s9 + $0x3ec] ss:$16 sps:$4 sm:$0xff]  }
 0x40d   :  { %5128 = vmatprep.subr.bf16.mxu0 %v7132_v41  ;;  %5292 = vmatprep.subr.bf16.mxu1 %v7135_v35 }
 0x410   :  { %5129 = vmatpush1.bf16.msra.mxu0 %v7130_v61  ;;  %5293 = vmatpush1.bf16.msra.mxu1 %v7133_v58  ;;  %v7196_v58 = vld [vmem:[%s10098_s9 + $0x3e0] ss:$16 sps:$4 sm:$0xff]  }
 0x411   :  { %5130 = vmatprep.subr.bf16.mxu0 %v7138_v17  ;;  %5294 = vmatprep.subr.bf16.mxu1 %v7141_v1  ;;  %v3515_v17 = vpack.c.bf16 %v9053_v31, %v9053_v31  ;;  %v7204_v31 = vld [vmem:[%s10098_s9 + $0x404] ss:$16 sps:$4 sm:$0xff]  }
 0x414   :  { %5131 = vmatpush1.bf16.msra.mxu0 %v7136_v30  ;;  %5295 = vmatpush1.bf16.msra.mxu1 %v7139_v3 }
 0x415   :  { %5132 = vmatprep.subr.bf16.mxu0 %v7144_v5  ;;  %5296 = vmatprep.subr.bf16.mxu1 %v7147_v8 }
 0x418   :  { %5133 = vmatpush1.bf16.msra.mxu0 %v7142_v9  ;;  %5297 = vmatpush1.bf16.msra.mxu1 %v7145_v13  ;;  %v7199_v9 = vld [vmem:[%s10098_s9 + $0x3e8] ss:$16 sps:$4 sm:$0xff]  }
 0x419   :  { %5134 = vmatprep.subr.bf16.mxu0 %v7150_v14  ;;  %5298 = vmatprep.subr.bf16.mxu1 %v7153_v15 }
 0x41c   :  { %5135 = vmatpush1.bf16.msra.mxu0 %v7148_v6  ;;  %5299 = vmatpush1.bf16.msra.mxu1 %v7151_v63 }
 0x41d   :  { %5136 = vmatprep.subr.bf16.mxu0 %v7156_v48  ;;  %5300 = vmatprep.subr.bf16.mxu1 %v7159_v45 }
 0x420   :  { %5137 = vmatpush1.bf16.msra.mxu0 %v7154_v57  ;;  %5301 = vmatpush1.bf16.msra.mxu1 %v7157_v49 }
 0x421   :  { %5138 = vmatprep.subr.bf16.mxu0 %v7162_v43  ;;  %5302 = vmatprep.subr.bf16.mxu1 %v7165_v46  ;;  %v7207_v43 = vld [vmem:[%s10098_s9 + $0x40c] ss:$16 sps:$4 sm:$0xff]  }
 0x424   :  { %5139 = vmatpush1.bf16.msra.mxu0 %v7160_v20  ;;  %5303 = vmatpush1.bf16.msra.mxu1 %v7163_v44 }
 0x425   :  { %5140 = vmatprep.subr.bf16.mxu0 %v7168_v55  ;;  %5304 = vmatprep.subr.bf16.mxu1 %v7171_v25  ;;  %v7202_v25 = vld [vmem:[%s10098_s9 + $0x400] ss:$16 sps:$4 sm:$0xff]  }
 0x428   :  { %5141 = vmatpush1.bf16.msra.mxu0 %v7166_v18  ;;  %5305 = vmatpush1.bf16.msra.mxu1 %v7169_v50 }
 0x429   :  { %5142 = vmatprep.subr.bf16.mxu0 %v7174_v23  ;;  %5306 = vmatprep.subr.bf16.mxu1 %v7177_v56 }
 0x42c   :  { %5143 = vmatpush1.bf16.msra.mxu0 %v7172_v24  ;;  %5307 = vmatpush1.bf16.msra.mxu1 %v7175_v12  ;;  %v7205_v24 = vld [vmem:[%s10098_s9 + $0x408] ss:$16 sps:$4 sm:$0xff]  }
 0x42d   :  { %5144 = vmatprep.subr.bf16.mxu0 %v7180_v16  ;;  %5308 = vmatprep.subr.bf16.mxu1 %v7183_v26 }
 0x430   :  { %5145 = vmatpush1.bf16.msra.mxu0 %v7178_v27  ;;  %5309 = vmatpush1.bf16.msra.mxu1 %v7181_v51 }
 0x431   :  { %5146 = vmatprep.subr.bf16.mxu0 %v7186_v2  ;;  %5310 = vmatprep.subr.bf16.mxu1 %v7189_v34 }
 0x433   :  { %v2698_v22 = vpop.f32.mrb[24].mxu0 }
 0x434   :  { %5147 = vmatpush1.bf16.msra.mxu0 %v7184_v52  ;;  %5311 = vmatpush1.bf16.msra.mxu1 %v7187_v37  ;;  %v6822_v42 = vadd.f32 %v2698_v22, %v9224_v21  ;;  %v2844_v7 = vpop.f32.mrb[56].mxu1  ;;  %v2700_v40 = vpop.f32.mrb[25].mxu0  ;;  %v7213_v37 = vld [vmem:[%s10098_s9 + $0x42c] ss:$16 sps:$4 sm:$0xff]  }
 0x435   :  { %5148 = vmatprep.subr.bf16.mxu0 %v7192_v10  ;;  %5312 = vmatprep.subr.bf16.mxu1 %v7195_v59  ;;  %v6838_v11 = vadd.f32 %v2844_v7, %v9233_v33  ;;  %v6823_v41 = vadd.f32 %v2700_v40, %v9236_v0  ;;  %v2846_v35 = vpop.f32.mrb[57].mxu1  ;;  %v2702_v61 = vpop.f32.mrb[26].mxu0 }
 0x436   :  { %v2887_v1 = vmax.f32 %v6822_v42, 0.0  ;;  %v6839_v30 = vadd.f32 %v2846_v35, %v9239_v29  ;;  %v6824_v3 = vadd.f32 %v2702_v61, %v9224_v21  ;;  %v2848_v5 = vpop.f32.mrb[58].mxu1  ;;  %v2704_v8 = vpop.f32.mrb[27].mxu0  ;;  %v7208_v35 = vld [vmem:[%s10098_s9 + $0x420] ss:$16 sps:$4 sm:$0xff]  }
 0x437   :  { %v2889_v13 = vmax.f32 %v6838_v11, 0.0  ;;  %v2888_v14 = vmax.f32 %v6823_v41, 0.0  ;;  %v6840_v15 = vadd.f32 %v2848_v5, %v9233_v33  ;;  %v6825_v6 = vadd.f32 %v2704_v8, %v9236_v0  ;;  %v2850_v63 = vpop.f32.mrb[59].mxu1  ;;  %v7211_v5 = vld [vmem:[%s10098_s9 + $0x428] ss:$16 sps:$4 sm:$0xff]  }
 0x438   :  { %5149 = vmatpush1.bf16.msra.mxu0 %v7190_v19  ;;  %5313 = vmatpush1.bf16.msra.mxu1 %v7193_v53  ;;  %v2971_v48 = vrot.slane %v2887_v1, 4  ;;  %v2890_v45 = vmax.f32 %v6839_v30, 0.0  ;;  %v2895_v57 = vmax.f32 %v6824_v3, 0.0  ;;  %v6841_v49 = vadd.f32 %v2850_v63, %v9239_v29 }
 0x439   :  { %5150 = vmatprep.subr.bf16.mxu0 %v7198_v4  ;;  %5314 = vmatprep.subr.bf16.mxu1 %v7201_v47  ;;  %v2983_v46 = vrot.slane %v2889_v13, 4  ;;  %v2977_v20 = vrot.slane %v2888_v14, 4  ;;  %v2897_v44 = vmax.f32 %v6840_v15, 0.0  ;;  %v2896_v55 = vmax.f32 %v6825_v6, 0.0  ;;  %v7219_v15 = vld [vmem:[%s10098_s9 + $0x44c] ss:$16 sps:$4 sm:$0xff]  }
 0x43a   :  { %v2972_v18 = vmax.f32 %v2887_v1, %v2971_v48  ;;  %v2989_v50 = vrot.slane %v2890_v45, 4  ;;  %v3019_v23 = vrot.slane %v2895_v57, 4  ;;  %v2898_v56 = vmax.f32 %v6841_v49, 0.0 }
 0x43b   :  { %v2984_v12 = vmax.f32 %v2889_v13, %v2983_v46  ;;  %v2978_v16 = vmax.f32 %v2888_v14, %v2977_v20  ;;  %v3031_v26 = vrot.slane %v2897_v44, 4  ;;  %v3025_v27 = vrot.slane %v2896_v55, 4  ;;  %v9281_v51 = vpop.f32.mrb[28].mxu0  ;;  %v7214_v46 = vld [vmem:[%s10098_s9 + $0x440] ss:$16 sps:$4 sm:$0xff]  }
 0x43c   :  { %5151 = vmatpush1.bf16.msra.mxu0 %v7196_v58  ;;  %5315 = vmatpush1.bf16.msra.mxu1 %v7199_v9  ;;  %v2973_v2 = vrot.slane %v2972_v18, 2  ;;  %v2990_v34 = vmax.f32 %v2890_v45, %v2989_v50  ;;  %v3020_v39 = vmax.f32 %v2895_v57, %v3019_v23  ;;  %v3037_v36 = vrot.slane %v2898_v56, 4  ;;  %v9286_v38 = vpop.f32.mrb[60].mxu1  ;;  %v9288_v52 = vpop.f32.mrb[29].mxu0  ;;  %v7217_v50 = vld [vmem:[%s10098_s9 + $0x448] ss:$16 sps:$4 sm:$0xff]  }
 0x43d   :  { %5161 = vmatprep.subr.bf16.mxu0 %v7204_v31  ;;  %5325 = vmatprep.subr.bf16.mxu1 %v7207_v43  ;;  %v2985_v10 = vrot.slane %v2984_v12, 2  ;;  %v2979_v59 = vrot.slane %v2978_v16, 2  ;;  %v3032_v22 = vmax.f32 %v2897_v44, %v3031_v26  ;;  %v3026_v19 = vmax.f32 %v2896_v55, %v3025_v27  ;;  %v9293_v53 = vpop.f32.mrb[61].mxu1  ;;  %v9295_v42 = vpop.f32.mrb[30].mxu0  ;;  %v7222_v27 = vld [vmem:[%s10098_s9 + $0x464] ss:$16 sps:$4 sm:$0xff]  }
 0x43e   :  { %v2974_v7 = vmax.f32 %v2972_v18, %v2973_v2  ;;  %v2991_v40 = vrot.slane %v2990_v34, 2  ;;  %v3021_v4 = vrot.slane %v3020_v39, 2  ;;  %v3038_v47 = vmax.f32 %v2898_v56, %v3037_v36  ;;  %v9297_v11 = vpop.f32.mrb[62].mxu1  ;;  %v9299_v41 = vpop.f32.mrb[31].mxu0 }
 0x43f   :  { %5153 = vmatmul.mubr.bf16.vlgmr.msra.gmra.mrb[40].mxu0 %v3515_v17  ;;  %5317 = vmatmul.mubr.bf16.vlgmr.msra.gmra.mrb[72].mxu1 %v3515_v17  ;;  %v2986_v61 = vmax.f32 %v2984_v12, %v2985_v10  ;;  %v2980_v58 = vmax.f32 %v2978_v16, %v2979_v59  ;;  %v3033_v1 = vrot.slane %v3032_v22, 2  ;;  %v3027_v30 = vrot.slane %v3026_v19, 2  ;;  %v9304_v3 = vpop.f32.mrb[63].mxu1  ;;  %v7216_v17 = vld [vmem:[%s10098_s9 + $0x444] ss:$16 sps:$4 sm:$0xff]  }
 0x440   :  { %5162 = vmatpush1.bf16.msra.mxu0 %v7202_v25  ;;  %5326 = vmatpush1.bf16.msra.mxu1 %v7205_v24  ;;  %v2975_v8 = vrot.slane %v2974_v7, 1  ;;  %v2992_v9 = vmax.f32 %v2990_v34, %v2991_v40  ;;  %v3022_v13 = vmax.f32 %v3020_v39, %v3021_v4  ;;  %v3039_v14 = vrot.slane %v3038_v47, 2  ;;  %v7223_v10 = vld [vmem:[%s10098_s9 + $0x468] ss:$16 sps:$4 sm:$0xff]  }
 0x441   :  { %5163 = vmatprep.subr.bf16.mxu0 %v7210_v54  ;;  %5327 = vmatprep.subr.bf16.mxu1 %v7213_v37  ;;  %v2987_v6 = vrot.slane %v2986_v61, 1  ;;  %v2981_v63 = vrot.slane %v2980_v58, 1  ;;  %v3034_v31 = vmax.f32 %v3032_v22, %v3033_v1  ;;  %v3028_v48 = vmax.f32 %v3026_v19, %v3027_v30  ;;  %v7225_v54 = vld [vmem:[%s10098_s9 + $0x46c] ss:$16 sps:$4 sm:$0xff]   ;;  %v7220_v37 = vld [vmem:[%s10098_s9 + $0x460] ss:$16 sps:$4 sm:$0xff]  }
 0x442   :  { %v2976_v45 = vmax.f32 %v2974_v7, %v2975_v8  ;;  %v2993_v57 = vrot.slane %v2992_v9, 1  ;;  %v3023_v49 = vrot.slane %v3022_v13, 1  ;;  %v3040_v43 = vmax.f32 %v3038_v47, %v3039_v14 }
 0x443   :  { %v2988_v20 = vmax.f32 %v2986_v61, %v2987_v6  ;;  %v2982_v44 = vmax.f32 %v2980_v58, %v2981_v63  ;;  %v3035_v55 = vrot.slane %v3034_v31, 1  ;;  %v3029_v25 = vrot.slane %v3028_v48, 1  ;;  %v9318_v18 = vpop.f32.mrb[32].mxu0 }
 0x444   :  { %5164 = vmatpush1.bf16.msra.mxu0 %v7208_v35  ;;  %5328 = vmatpush1.bf16.msra.mxu1 %v7211_v5  ;;  %v2994_v23 = vmax.f32 %v2992_v9, %v2993_v57  ;;  %v3024_v56 = vmax.f32 %v3022_v13, %v3023_v49  ;;  %v3041_v24 = vrot.slane %v3040_v43, 1  ;;  %v6826_v12 = vadd.f32 %v9281_v51, %v9224_v21  ;;  %v9325_v16 = vpop.f32.mrb[64].mxu1  ;;  %v9327_v26 = vpop.f32.mrb[33].mxu0 }
 0x445   :  { %5165 = vmatprep.subr.bf16.mxu0 %v7216_v17  ;;  %5329 = vmatprep.subr.bf16.mxu1 %v7219_v15  ;;  %v3036_v2 = vmax.f32 %v3034_v31, %v3035_v55  ;;  %v3030_v34 = vmax.f32 %v3028_v48, %v3029_v25  ;;  %v6842_v39 = vadd.f32 %v9286_v38, %v9233_v33  ;;  %v9337_v51 = vpop.f32.mrb[65].mxu1  ;;  %v9339_v36 = vpop.f32.mrb[34].mxu0  ;;  %v7228_v17 = vld [vmem:[%s10098_s9 + $0x484] ss:$16 sps:$4 sm:$0xff]   ;;  %v7229_v15 = vld [vmem:[%s10098_s9 + $0x488] ss:$16 sps:$4 sm:$0xff]  }
 0x446   :  { %v9348_v59 = vsel %vm3415_vm2, %v3024_v56, %v2976_v45  ;;  %v3042_v22 = vmax.f32 %v3040_v43, %v3041_v24  ;;  %v2903_v19 = vmax.f32 %v6826_v12, 0.0  ;;  %v6827_v38 = vadd.f32 %v9288_v52, %v9236_v0  ;;  %v9352_v7 = vpop.f32.mrb[66].mxu1  ;;  %v9354_v40 = vpop.f32.mrb[35].mxu0 }
 0x447   :  { %v9357_v4 = vsel %vm3415_vm2, %v3036_v2, %v2988_v20  ;;  %v9360_v47 = vsel %vm3415_vm2, %v3030_v34, %v2982_v44  ;;  %v2905_v35 = vmax.f32 %v6842_v39, 0.0  ;;  %v6843_v61 = vadd.f32 %v9293_v53, %v9239_v29  ;;  %v9364_v58 = vpop.f32.mrb[67].mxu1  ;;  %v7231_v53 = vld [vmem:[%s10098_s9 + $0x48c] ss:$16 sps:$4 sm:$0xff]   ;;  %v7232_v2 = vld [vmem:[%s10098_s9 + $0x4a0] ss:$16 sps:$4 sm:$0xff]  }
 0x448   :  { %5166 = vmatpush1.bf16.msra.mxu0 %v7214_v46  ;;  %5330 = vmatpush1.bf16.msra.mxu1 %v7217_v50  ;;  %v9367_v52 = vsel %vm3415_vm2, %v3042_v22, %v2994_v23  ;;  %v3067_v1 = vrot.slane %v2903_v19, 4  ;;  %v2904_v30 = vmax.f32 %v6827_v38, 0.0  ;;  %v6828_v5 = vadd.f32 %v9295_v42, %v9224_v21  ;;  %v7226_v42 = vld [vmem:[%s10098_s9 + $0x480] ss:$16 sps:$4 sm:$0xff]   ;;  %v7235_v34 = vld [vmem:[%s10098_s9 + $0x4a8] ss:$16 sps:$4 sm:$0xff]  }
 0x449   :  { %5167 = vmatprep.subr.bf16.mxu0 %v7222_v27  ;;  %5331 = vmatprep.subr.bf16.mxu1 %v7225_v54  ;;  %v3079_v8 = vrot.slane %v2905_v35, 4  ;;  %v2906_v9 = vmax.f32 %v6843_v61, 0.0  ;;  %v6844_v13 = vadd.f32 %v9297_v11, %v9233_v33  ;;  %v6829_v14 = vadd.f32 %v9299_v41, %v9236_v0  ;;  %v7234_v11 = vld [vmem:[%s10098_s9 + $0x4a4] ss:$16 sps:$4 sm:$0xff]   ;;  %v7237_v41 = vld [vmem:[%s10098_s9 + $0x4ac] ss:$16 sps:$4 sm:$0xff]  }
 0x44a   :  { %v3068_v6 = vmax.f32 %v2903_v19, %v3067_v1  ;;  %v3073_v63 = vrot.slane %v2904_v30, 4  ;;  %v2911_v31 = vmax.f32 %v6828_v5, 0.0  ;;  %v6845_v48 = vadd.f32 %v9304_v3, %v9239_v29 }
 0x44b   :  { %v3080_v45 = vmax.f32 %v2905_v35, %v3079_v8  ;;  %v3085_v57 = vrot.slane %v2906_v9, 4  ;;  %v2913_v49 = vmax.f32 %v6844_v13, 0.0  ;;  %v2912_v43 = vmax.f32 %v6829_v14, 0.0  ;;  %v9395_v46 = vpop.f32.mrb[36].mxu0  ;;  %v7240_v35 = vld [vmem:[%s10098_s9 + $0x4c4] ss:$16 sps:$4 sm:$0xff]  }
 0x44c   :  { %5168 = vmatpush1.bf16.msra.mxu0 %v7220_v37  ;;  %5332 = vmatpush1.bf16.msra.mxu1 %v7223_v10  ;;  %v3069_v20 = vrot.slane %v3068_v6, 2  ;;  %v3074_v44 = vmax.f32 %v2904_v30, %v3073_v63  ;;  %v3115_v55 = vrot.slane %v2911_v31, 4  ;;  %v2914_v3 = vmax.f32 %v6845_v48, 0.0  ;;  %v9397_v25 = vpop.f32.mrb[68].mxu1  ;;  %v9399_v50 = vpop.f32.mrb[37].mxu0 }
 0x44d   :  { %5169 = vmatprep.subr.bf16.mxu0 %v7228_v17  ;;  %5333 = vmatprep.subr.bf16.mxu1 %v7231_v53  ;;  %v3081_v23 = vrot.slane %v3080_v45, 2  ;;  %v3086_v56 = vmax.f32 %v2906_v9, %v3085_v57  ;;  %v3127_v24 = vrot.slane %v2913_v49, 4  ;;  %v3121_v12 = vrot.slane %v2912_v43, 4  ;;  %v9401_v27 = vpop.f32.mrb[69].mxu1  ;;  %v9403_v54 = vpop.f32.mrb[38].mxu0 }
 0x44e   :  { %v3070_v39 = vmax.f32 %v3068_v6, %v3069_v20  ;;  %v3075_v37 = vrot.slane %v3074_v44, 2  ;;  %v3116_v10 = vmax.f32 %v2911_v31, %v3115_v55  ;;  %v3133_v22 = vrot.slane %v2914_v3, 4  ;;  %v9411_v19 = vpop.f32.mrb[70].mxu1  ;;  %v9413_v38 = vpop.f32.mrb[39].mxu0  ;;  %v7243_v14 = vld [vmem:[%s10098_s9 + $0x4cc] ss:$16 sps:$4 sm:$0xff]  }
 0x44f   :  { %v3082_v61 = vmax.f32 %v3080_v45, %v3081_v23  ;;  %v3087_v1 = vrot.slane %v3086_v56, 2  ;;  %v3128_v30 = vmax.f32 %v2913_v49, %v3127_v24  ;;  %v3122_v5 = vmax.f32 %v2912_v43, %v3121_v12  ;;  %v9418_v17 = vpop.f32.mrb[71].mxu1  ;;  %v7238_v45 = vld [vmem:[%s10098_s9 + $0x4c0] ss:$16 sps:$4 sm:$0xff]  }
 0x450   :  { %5170 = vmatpush1.bf16.msra.mxu0 %v7226_v42  ;;  %5334 = vmatpush1.bf16.msra.mxu1 %v7229_v15  ;;  %v3071_v53 = vrot.slane %v3070_v39, 1  ;;  %v3076_v8 = vmax.f32 %v3074_v44, %v3075_v37  ;;  %v3117_v9 = vrot.slane %v3116_v10, 2  ;;  %v3134_v13 = vmax.f32 %v2914_v3, %v3133_v22  ;;  %v7241_v42 = vld [vmem:[%s10098_s9 + $0x4c8] ss:$16 sps:$4 sm:$0xff]  }
 0x451   :  { %5171 = vmatprep.subr.bf16.mxu0 %v7234_v11  ;;  %5335 = vmatprep.subr.bf16.mxu1 %v7237_v41  ;;  %v3083_v6 = vrot.slane %v3082_v61, 1  ;;  %v3088_v63 = vmax.f32 %v3086_v56, %v3087_v1  ;;  %v3129_v31 = vrot.slane %v3128_v30, 2  ;;  %v3123_v48 = vrot.slane %v3122_v5, 2 }
 0x452   :  { %v3072_v15 = vmax.f32 %v3070_v39, %v3071_v53  ;;  %v3077_v57 = vrot.slane %v3076_v8, 1  ;;  %v3118_v11 = vmax.f32 %v3116_v10, %v3117_v9  ;;  %v3135_v41 = vrot.slane %v3134_v13, 2  ;;  %v7246_v10 = vld [vmem:[%s10098_s9 + $0x4e4] ss:$16 sps:$4 sm:$0xff]  }
 0x453   :  { %v3084_v49 = vmax.f32 %v3082_v61, %v3083_v6  ;;  %v3089_v43 = vrot.slane %v3088_v63, 1  ;;  %v3130_v20 = vmax.f32 %v3128_v30, %v3129_v31  ;;  %v3124_v44 = vmax.f32 %v3122_v5, %v3123_v48  ;;  %v7250_v31 = vld [vmem:[%s10098_s9 + $0x500] ss:$16 sps:$4 sm:$0xff]   ;;  %v7253_v48 = vld [vmem:[%s10098_s9 + $0x508] ss:$16 sps:$4 sm:$0xff]  }
 0x454   :  { %5172 = vmatpush1.bf16.msra.mxu0 %v7232_v2  ;;  %5336 = vmatpush1.bf16.msra.mxu1 %v7235_v34  ;;  %v3451_v55 = vsel %vm3417_vm3, %v3072_v15, %v9348_v59  ;;  %v3078_v3 = vmax.f32 %v3076_v8, %v3077_v57  ;;  %v3119_v23 = vrot.slane %v3118_v11, 1  ;;  %v3136_v56 = vmax.f32 %v3134_v13, %v3135_v41  ;;  %v7249_v2 = vld [vmem:[%s10098_s9 + $0x4ec] ss:$16 sps:$4 sm:$0xff]  }
 0x455   :  { %5173 = vmatprep.subr.bf16.mxu0 %v7240_v35  ;;  %5337 = vmatprep.subr.bf16.mxu1 %v7243_v14  ;;  %v3465_v24 = vsel %vm3417_vm3, %v3084_v49, %v9357_v4  ;;  %v3090_v12 = vmax.f32 %v3088_v63, %v3089_v43  ;;  %v3131_v39 = vrot.slane %v3130_v20, 1  ;;  %v3125_v37 = vrot.slane %v3124_v44, 1  ;;  %v7244_v4 = vld [vmem:[%s10098_s9 + $0x4e0] ss:$16 sps:$4 sm:$0xff]   ;;  %v7247_v35 = vld [vmem:[%s10098_s9 + $0x4e8] ss:$16 sps:$4 sm:$0xff]  }
 0x456   :  { %v3458_v59 = vsel %vm3417_vm3, %v3078_v3, %v9360_v47  ;;  %v3120_v34 = vmax.f32 %v3118_v11, %v3119_v23  ;;  %v3137_v22 = vrot.slane %v3136_v56, 1  ;;  %v6830_v61 = vadd.f32 %v9318_v18, %v9224_v21  ;;  %v7255_v14 = vld [vmem:[%s10098_s9 + $0x50c] ss:$16 sps:$4 sm:$0xff]   ;;  %v7258_v49 = vld [vmem:[%s10098_s9 + $0x524] ss:$16 sps:$4 sm:$0xff]  }
 0x457   :  { %v3472_v1 = vsel %vm3417_vm3, %v3090_v12, %v9367_v52  ;;  %v3132_v30 = vmax.f32 %v3130_v20, %v3131_v39  ;;  %v3126_v5 = vmax.f32 %v3124_v44, %v3125_v37  ;;  %v6846_v47 = vadd.f32 %v9325_v16, %v9233_v33  ;;  %v7252_v16 = vld [vmem:[%s10098_s9 + $0x504] ss:$16 sps:$4 sm:$0xff]   ;;  %v7256_v37 = vld [vmem:[%s10098_s9 + $0x520] ss:$16 sps:$4 sm:$0xff]  }
 0x458   :  { %5174 = vmatpush1.bf16.msra.mxu0 %v7238_v45  ;;  %5338 = vmatpush1.bf16.msra.mxu1 %v7241_v42  ;;  %v9454_v53 = vsel %vm3419_vm4, %v3120_v34, %v3451_v55  ;;  %v3138_v8 = vmax.f32 %v3136_v56, %v3137_v22  ;;  %v2919_v9 = vmax.f32 %v6830_v61, 0.0  ;;  %v6831_v13 = vadd.f32 %v9327_v26, %v9236_v0 }
 0x459   :  { %v9459_v18 = vsel %vm3419_vm4, %v3132_v30, %v3465_v24  ;;  %v9462_v52 = vsel %vm3419_vm4, %v3126_v5, %v3458_v59  ;;  %5175 = vmatprep.subr.bf16.mxu0 %v7246_v10  ;;  %5339 = vmatprep.subr.bf16.mxu1 %v7249_v2  ;;  %v2921_v6 = vmax.f32 %v6846_v47, 0.0  ;;  %v6847_v26 = vadd.f32 %v9337_v51, %v9239_v29 }
 0x45a   :  { %v9473_v63 = vsel %vm3419_vm4, %v3138_v8, %v3472_v1  ;;  %v3163_v45 = vrot.slane %v2919_v9, 4  ;;  %v2920_v42 = vmax.f32 %v6831_v13, 0.0  ;;  %v6832_v15 = vadd.f32 %v9339_v36, %v9224_v21  ;;  %v7264_v8 = vld [vmem:[%s10098_s9 + $0x544] ss:$16 sps:$4 sm:$0xff]  }
 0x45b   :  { %v3175_v57 = vrot.slane %v2921_v6, 4  ;;  %v2922_v11 = vmax.f32 %v6847_v26, 0.0  ;;  %v6848_v51 = vadd.f32 %v9352_v7, %v9233_v33  ;;  %v6833_v41 = vadd.f32 %v9354_v40, %v9236_v0  ;;  %v7261_v40 = vld [vmem:[%s10098_s9 + $0x52c] ss:$16 sps:$4 sm:$0xff]  }
 0x45c   :  { %5176 = vmatpush1.bf16.msra.mxu0 %v7244_v4  ;;  %5340 = vmatpush1.bf16.msra.mxu1 %v7247_v35  ;;  %v3164_v43 = vmax.f32 %v2919_v9, %v3163_v45  ;;  %v3169_v20 = vrot.slane %v2920_v42, 4  ;;  %v2927_v44 = vmax.f32 %v6832_v15, 0.0  ;;  %v6849_v36 = vadd.f32 %v9364_v58, %v9239_v29  ;;  %v7259_v58 = vld [vmem:[%s10098_s9 + $0x528] ss:$16 sps:$4 sm:$0xff]   ;;  %v7267_v9 = vld [vmem:[%s10098_s9 + $0x54c] ss:$16 sps:$4 sm:$0xff]  }
 0x45d   :  { %5177 = vmatprep.subr.bf16.mxu0 %v7252_v16  ;;  %5341 = vmatprep.subr.bf16.mxu1 %v7255_v14  ;;  %v3176_v55 = vmax.f32 %v2921_v6, %v3175_v57  ;;  %v3181_v3 = vrot.slane %v2922_v11, 4  ;;  %v2929_v7 = vmax.f32 %v6848_v51, 0.0  ;;  %v2928_v23 = vmax.f32 %v6833_v41, 0.0  ;;  %v7262_v51 = vld [vmem:[%s10098_s9 + $0x540] ss:$16 sps:$4 sm:$0xff]  }
 0x45e   :  { %v3165_v56 = vrot.slane %v3164_v43, 2  ;;  %v3170_v24 = vmax.f32 %v2920_v42, %v3169_v20  ;;  %v3211_v12 = vrot.slane %v2927_v44, 4  ;;  %v2930_v39 = vmax.f32 %v6849_v36, 0.0  ;;  %v7265_v41 = vld [vmem:[%s10098_s9 + $0x548] ss:$16 sps:$4 sm:$0xff]  }
 0x45f   :  { %v3177_v10 = vrot.slane %v3176_v55, 2  ;;  %v3182_v2 = vmax.f32 %v2922_v11, %v3181_v3  ;;  %v3223_v59 = vrot.slane %v2929_v7, 4  ;;  %v3217_v34 = vrot.slane %v2928_v23, 4  ;;  %v7270_v36 = vld [vmem:[%s10098_s9 + $0x564] ss:$16 sps:$4 sm:$0xff]  }
 0x460   :  { %v3166_v22 = vmax.f32 %v3164_v43, %v3165_v56  ;;  %5178 = vmatpush1.bf16.msra.mxu0 %v7250_v31  ;;  %5342 = vmatpush1.bf16.msra.mxu1 %v7253_v48  ;;  %v3171_v4 = vrot.slane %v3170_v24, 2  ;;  %v3212_v35 = vmax.f32 %v2927_v44, %v3211_v12  ;;  %v3229_v61 = vrot.slane %v2930_v39, 4 }
 0x461   :  { %v3178_v1 = vmax.f32 %v3176_v55, %v3177_v10  ;;  %v3183_v30 = vrot.slane %v3182_v2, 2  ;;  %v3224_v5 = vmax.f32 %v2929_v7, %v3223_v59  ;;  %v3218_v47 = vmax.f32 %v2928_v23, %v3217_v34  ;;  %5179 = vmatprep.subr.bf16.mxu0 %v7258_v49  ;;  %5343 = vmatprep.subr.bf16.mxu1 %v7261_v40  ;;  %v7273_v40 = vld [vmem:[%s10098_s9 + $0x56c] ss:$16 sps:$4 sm:$0xff]  }
 0x462   :  { %v3167_v13 = vrot.slane %v3166_v22, 1  ;;  %v3172_v16 = vmax.f32 %v3170_v24, %v3171_v4  ;;  %v3213_v14 = vrot.slane %v3212_v35, 2  ;;  %v3230_v6 = vmax.f32 %v2930_v39, %v3229_v61  ;;  %v7279_v4 = vld [vmem:[%s10098_s9 + $0x58c] ss:$16 sps:$4 sm:$0xff]  }
 0x463   :  { %v3179_v26 = vrot.slane %v3178_v1, 1  ;;  %v3184_v31 = vmax.f32 %v3182_v2, %v3183_v30  ;;  %v3225_v48 = vrot.slane %v3224_v5, 2  ;;  %v3219_v45 = vrot.slane %v3218_v47, 2  ;;  %v7268_v2 = vld [vmem:[%s10098_s9 + $0x560] ss:$16 sps:$4 sm:$0xff]  }
 0x464   :  { %v3168_v42 = vmax.f32 %v3166_v22, %v3167_v13  ;;  %v3173_v15 = vrot.slane %v3172_v16, 1  ;;  %v3214_v57 = vmax.f32 %v3212_v35, %v3213_v14  ;;  %v3231_v11 = vrot.slane %v3230_v6, 2  ;;  %5180 = vmatpush1.bf16.msra.mxu0 %v7256_v37  ;;  %5344 = vmatpush1.bf16.msra.mxu1 %v7259_v58 }
 0x465   :  { %v3180_v49 = vmax.f32 %v3178_v1, %v3179_v26  ;;  %v3185_v43 = vrot.slane %v3184_v31, 1  ;;  %v3226_v20 = vmax.f32 %v3224_v5, %v3225_v48  ;;  %v3220_v44 = vmax.f32 %v3218_v47, %v3219_v45  ;;  %5181 = vmatprep.subr.bf16.mxu0 %v7264_v8  ;;  %5345 = vmatprep.subr.bf16.mxu1 %v7267_v9  ;;  %v7274_v8 = vld [vmem:[%s10098_s9 + $0x580] ss:$16 sps:$4 sm:$0xff]  }
 0x466   :  { %v3453_v55 = vsel %vm3421_vm5, %v3168_v42, %v9454_v53  ;;  %v9518_v3 = vmax.f32 %v3172_v16, %v3173_v15  ;;  %v3215_v7 = vrot.slane %v3214_v57, 1  ;;  %v3232_v23 = vmax.f32 %v3230_v6, %v3231_v11  ;;  %v7277_v6 = vld [vmem:[%s10098_s9 + $0x588] ss:$16 sps:$4 sm:$0xff]  }
 0x467   :  { %v3467_v56 = vsel %vm3421_vm5, %v3180_v49, %v9459_v18  ;;  %v9525_v24 = vmax.f32 %v3184_v31, %v3185_v43  ;;  %v3227_v12 = vrot.slane %v3226_v20, 1  ;;  %v3221_v39 = vrot.slane %v3220_v44, 1  ;;  %v7271_v18 = vld [vmem:[%s10098_s9 + $0x568] ss:$16 sps:$4 sm:$0xff]  }
 0x468   :  { %v3216_v37 = vmax.f32 %v3214_v57, %v3215_v7  ;;  %v3233_v58 = vrot.slane %v3232_v23, 1  ;;  %v6834_v53 = vadd.f32 %v9395_v46, %v9224_v21  ;;  %v6850_v10 = vadd.f32 %v9397_v25, %v9233_v33  ;;  %5182 = vmatpush1.bf16.msra.mxu0 %v7262_v51  ;;  %5346 = vmatpush1.bf16.msra.mxu1 %v7265_v41  ;;  %v7276_v25 = vld [vmem:[%s10098_s9 + $0x584] ss:$16 sps:$4 sm:$0xff]   ;;  %v7280_v51 = vld [vmem:[%s10098_s9 + $0x5a0] ss:$16 sps:$4 sm:$0xff]  }
 0x469   :  { %v3228_v59 = vmax.f32 %v3226_v20, %v3227_v12  ;;  %v9537_v34 = vmax.f32 %v3220_v44, %v3221_v39  ;;  %v6835_v22 = vadd.f32 %v9399_v50, %v9236_v0  ;;  %v6851_v46 = vadd.f32 %v9401_v27, %v9239_v29  ;;  %5183 = vmatprep.subr.bf16.mxu0 %v7270_v36  ;;  %v7288_v20 = vld [vmem:[%s10098_s9 + $0x5c4] ss:$16 sps:$4 sm:$0xff]  }
 0x46a   :  { %v9550_v35 = vsel %vm3423_vm6, %v3216_v37, %v3453_v55  ;;  %v9552_v61 = vmax.f32 %v3232_v23, %v3233_v58  ;;  %v2935_v1 = vmax.f32 %v6834_v53, 0.0  ;;  %v2937_v30 = vmax.f32 %v6850_v10, 0.0  ;;  %5347 = vmatprep.subr.bf16.mxu1 %v7273_v40  ;;  %v7291_v23 = vld [vmem:[%s10098_s9 + $0x5cc] ss:$16 sps:$4 sm:$0xff]  }
 0x46b   :  { %v9555_v50 = vsel %vm3423_vm6, %v3228_v59, %v3467_v56  ;;  %v2936_v27 = vmax.f32 %v6835_v22, 0.0  ;;  %v2938_v5 = vmax.f32 %v6851_v46, 0.0  ;;  %v6836_v47 = vadd.f32 %v9403_v54, %v9224_v21  ;;  %v7282_v21 = vld [vmem:[%s10098_s9 + $0x5a4] ss:$16 sps:$4 sm:$0xff]  }
 0x46c   :  { %v3259_v9 = vrot.slane %v2935_v1, 4  ;;  %v3271_v13 = vrot.slane %v2937_v30, 4  ;;  %v6852_v16 = vadd.f32 %v9411_v19, %v9233_v33  ;;  %v6837_v14 = vadd.f32 %v9413_v38, %v9236_v0  ;;  %5184 = vmatpush1.bf16.msra.mxu0 %v7268_v2  ;;  %5348 = vmatpush1.bf16.msra.mxu1 %v7271_v18  ;;  %v7285_v33 = vld [vmem:[%s10098_s9 + $0x5ac] ss:$16 sps:$4 sm:$0xff]   ;;  %v7286_v2 = vld [vmem:[%s10098_s9 + $0x5c0] ss:$16 sps:$4 sm:$0xff]  }
 0x46d   :  { %v3265_v54 = vrot.slane %v2936_v27, 4  ;;  %v3277_v26 = vrot.slane %v2938_v5, 4  ;;  %v2943_v31 = vmax.f32 %v6836_v47, 0.0  ;;  %v6853_v48 = vadd.f32 %v9418_v17, %v9239_v29  ;;  %5185 = vmatprep.subr.bf16.mxu0 %v7276_v25  ;;  %5349 = vmatprep.subr.bf16.mxu1 %v7279_v4  ;;  %v7283_v29 = vld [vmem:[%s10098_s9 + $0x5a8] ss:$16 sps:$4 sm:$0xff]  }
 0x46e   :  { %v3260_v0 = vmax.f32 %v2935_v1, %v3259_v9  ;;  %v3272_v19 = vmax.f32 %v2937_v30, %v3271_v13  ;;  %v2945_v38 = vmax.f32 %v6852_v16, 0.0  ;;  %v2944_v45 = vmax.f32 %v6837_v14, 0.0  ;;  %v7289_v18 = vld [vmem:[%s10098_s9 + $0x5c8] ss:$16 sps:$4 sm:$0xff]   ;;  %v7294_v4 = vld [vmem:[%s10098_s9 + $0x5e4] ss:$16 sps:$4 sm:$0xff]  }
 0x46f   :  { %v3266_v42 = vmax.f32 %v2936_v27, %v3265_v54  ;;  %v3278_v15 = vmax.f32 %v2938_v5, %v3277_v26  ;;  %v3307_v57 = vrot.slane %v2943_v31, 4  ;;  %v2946_v11 = vmax.f32 %v6853_v48, 0.0  ;;  %v7297_v47 = vld [vmem:[%s10098_s9 + $0x5ec] ss:$16 sps:$4 sm:$0xff]   ;;  %v7292_v48 = vld [vmem:[%s10098_s9 + $0x5e0] ss:$16 sps:$4 sm:$0xff]  }
 0x470   :  { %v3261_v17 = vrot.slane %v3260_v0, 2  ;;  %v3273_v41 = vrot.slane %v3272_v19, 2  ;;  %v3319_v49 = vrot.slane %v2945_v38, 4  ;;  %v3313_v43 = vrot.slane %v2944_v45, 4  ;;  %5186 = vmatpush1.bf16.msra.mxu0 %v7274_v8  ;;  %5350 = vmatpush1.bf16.msra.mxu1 %v7277_v6 }
 0x471   :  { %v3267_v44 = vrot.slane %v3266_v42, 2  ;;  %v3279_v36 = vrot.slane %v3278_v15, 2  ;;  %v3308_v55 = vmax.f32 %v2943_v31, %v3307_v57  ;;  %v3325_v7 = vrot.slane %v2946_v11, 4  ;;  %5187 = vmatprep.subr.bf16.mxu0 %v7282_v21  ;;  %5351 = vmatprep.subr.bf16.mxu1 %v7285_v33  ;;  %v7295_v33 = vld [vmem:[%s10098_s9 + $0x5e8] ss:$16 sps:$4 sm:$0xff]  }
 0x472   :  { %v3262_v40 = vmax.f32 %v3260_v0, %v3261_v17  ;;  %v3274_v56 = vmax.f32 %v3272_v19, %v3273_v41  ;;  %v3320_v12 = vmax.f32 %v2945_v38, %v3319_v49  ;;  %v3314_v39 = vmax.f32 %v2944_v45, %v3313_v43  ;;  %v7303_v57 = vld [vmem:[%s10098_s9 + $0x60c] ss:$16 sps:$4 sm:$0xff]   ;;  %v7301_v43 = vld [vmem:[%s10098_s9 + $0x608] ss:$16 sps:$4 sm:$0xff]  }
 0x473   :  { %v3268_v37 = vmax.f32 %v3266_v42, %v3267_v44  ;;  %v3280_v58 = vmax.f32 %v3278_v15, %v3279_v36  ;;  %v3309_v53 = vrot.slane %v3308_v55, 2  ;;  %v3326_v10 = vmax.f32 %v2946_v11, %v3325_v7  ;;  %v7300_v15 = vld [vmem:[%s10098_s9 + $0x604] ss:$16 sps:$4 sm:$0xff]   ;;  %v7309_v36 = vld [vmem:[%s10098_s9 + $0x62c] ss:$16 sps:$4 sm:$0xff]  }
 0x474   :  { %v3263_v59 = vrot.slane %v3262_v40, 1  ;;  %v3275_v22 = vrot.slane %v3274_v56, 1  ;;  %v3321_v46 = vrot.slane %v3320_v12, 2  ;;  %v3315_v25 = vrot.slane %v3314_v39, 2  ;;  %5188 = vmatpush1.bf16.msra.mxu0 %v7280_v51  ;;  %5352 = vmatpush1.bf16.msra.mxu1 %v7283_v29  ;;  %v7306_v44 = vld [vmem:[%s10098_s9 + $0x624] ss:$16 sps:$4 sm:$0xff]  }
 0x475   :  { %v3269_v1 = vrot.slane %v3268_v37, 1  ;;  %v3281_v30 = vrot.slane %v3280_v58, 1  ;;  %v3310_v27 = vmax.f32 %v3308_v55, %v3309_v53  ;;  %v3327_v5 = vrot.slane %v3326_v10, 2  ;;  %5189 = vmatprep.subr.bf16.mxu0 %v7288_v20  ;;  %5353 = vmatprep.subr.bf16.mxu1 %v7291_v23  ;;  %v7304_v7 = vld [vmem:[%s10098_s9 + $0x620] ss:$16 sps:$4 sm:$0xff]  }
 0x476   :  { %v3264_v8 = vmax.f32 %v3262_v40, %v3263_v59  ;;  %v3276_v9 = vmax.f32 %v3274_v56, %v3275_v22  ;;  %v3322_v13 = vmax.f32 %v3320_v12, %v3321_v46  ;;  %v3316_v16 = vmax.f32 %v3314_v39, %v3315_v25  ;;  %v7307_v23 = vld [vmem:[%s10098_s9 + $0x628] ss:$16 sps:$4 sm:$0xff]   ;;  %v7312_v40 = vld [vmem:[%s10098_s9 + $0x644] ss:$16 sps:$4 sm:$0xff]   ;;  %v7315_v56 = vld [vmem:[%s10098_s9 + $0x64c] ss:$16 sps:$4 sm:$0xff]  }
 0x477   :  { %v3270_v14 = vmax.f32 %v3268_v37, %v3269_v1  ;;  %v3282_v6 = vmax.f32 %v3280_v58, %v3281_v30  ;;  %v3311_v21 = vrot.slane %v3310_v27, 1  ;;  %v3328_v54 = vmax.f32 %v3326_v10, %v3327_v5  ;;  %v7310_v12 = vld [vmem:[%s10098_s9 + $0x640] ss:$16 sps:$4 sm:$0xff]   ;;  %v7313_v39 = vld [vmem:[%s10098_s9 + $0x648] ss:$16 sps:$4 sm:$0xff]  }
 0x478   :  { %v3323_v26 = vrot.slane %v3322_v13, 1  ;;  %v3317_v31 = vrot.slane %v3316_v16, 1  ;;  %5190 = vmatpush1.bf16.msra.mxu0 %v7286_v2  ;;  %5354 = vmatpush1.bf16.msra.mxu1 %v7289_v18  ;;  %v3460_v0 = vsel %vm3421_vm5, %v9518_v3, %v9462_v52  ;;  %v3455_v19 = vsel %vm3425_vm7, %v3264_v8, %v9550_v35  ;;  %v7318_v37 = vld [vmem:[%s10098_s9 + $0x664] ss:$16 sps:$4 sm:$0xff]   ;;  %v7321_v58 = vld [vmem:[%s10098_s9 + $0x66c] ss:$16 sps:$4 sm:$0xff]  }
 0x479   :  { %v3312_v38 = vmax.f32 %v3310_v27, %v3311_v21  ;;  %v3329_v45 = vrot.slane %v3328_v54, 1  ;;  %5191 = vmatprep.subr.bf16.mxu0 %v7294_v4  ;;  %5355 = vmatprep.subr.bf16.mxu1 %v7297_v47  ;;  %v3461_v42 = vsel %vm3423_vm6, %v9537_v34, %v3460_v0  ;;  %v3474_v52 = vsel %vm3421_vm5, %v9525_v24, %v9473_v63  ;;  %v7316_v53 = vld [vmem:[%s10098_s9 + $0x660] ss:$16 sps:$4 sm:$0xff]   ;;  %v7319_v10 = vld [vmem:[%s10098_s9 + $0x668] ss:$16 sps:$4 sm:$0xff]  }
 0x47a   :  { %v3324_v3 = vmax.f32 %v3322_v13, %v3323_v26  ;;  %v3318_v35 = vmax.f32 %v3316_v16, %v3317_v31  ;;  %v3462_v11 = vsel %vm3425_vm7, %v3270_v14, %v3461_v42  ;;  %v3475_v51 = vsel %vm3423_vm6, %v9552_v61, %v3474_v52  ;;  %v7298_v61 = vld [vmem:[%s10098_s9 + $0x600] ss:$16 sps:$4 sm:$0xff]   ;;  %v7324_v2 = vld [vmem:[%s10098_s9 + $0x684] ss:$16 sps:$4 sm:$0xff]   ;;  %v7327_v18 = vld [vmem:[%s10098_s9 + $0x68c] ss:$16 sps:$4 sm:$0xff]  }
 0x47b   :  { %v3330_v34 = vmax.f32 %v3328_v54, %v3329_v45  ;;  %v3456_v29 = vsel %vm3427_vm8, %v3312_v38, %v3455_v19  ;;  %v3476_v17 = vsel %vm3425_vm7, %v3282_v6, %v3475_v51  ;;  %v3469_v41 = vsel %vm3425_vm7, %v3276_v9, %v9555_v50  ;;  %v7322_v59 = vld [vmem:[%s10098_s9 + $0x680] ss:$16 sps:$4 sm:$0xff]   ;;  %v7325_v22 = vld [vmem:[%s10098_s9 + $0x688] ss:$16 sps:$4 sm:$0xff]   ;;  %v7330_v46 = vld [vmem:[%s10098_s9 + $0x6a4] ss:$16 sps:$4 sm:$0xff]  }
 0x47c   :  { %5192 = vmatpush1.bf16.msra.mxu0 %v7292_v48  ;;  %5356 = vmatpush1.bf16.msra.mxu1 %v7295_v33  ;;  %v3463_v49 = vsel %vm3427_vm8, %v3318_v35, %v3462_v11  ;;  %v9632_v63 = vsel %vm3427_vm8, %v3324_v3, %v3469_v41  ;;  %v3517_v20 = vpack.c.bf16 %v3456_v29, %v3456_v29  ;;  %v7333_v25 = vld [vmem:[%s10098_s9 + $0x6ac] ss:$16 sps:$4 sm:$0xff]   ;;  %v7328_v4 = vld [vmem:[%s10098_s9 + $0x6a0] ss:$16 sps:$4 sm:$0xff]   ;;  %v7331_v1 = vld [vmem:[%s10098_s9 + $0x6a8] ss:$16 sps:$4 sm:$0xff]  }
 0x47d   :  { %v3518_v24 = vpack.c.bf16 %v3463_v49, %v3463_v49  ;;  %5202 = vmatprep.subr.bf16.mxu0 %v7300_v15  ;;  %5366 = vmatprep.subr.bf16.mxu1 %v7303_v57  ;;  %v3477_v50 = vsel %vm3427_vm8, %v3330_v34, %v3476_v17  ;;  %v7336_v30 = vld [vmem:[%s10098_s9 + $0x6c4] ss:$16 sps:$4 sm:$0xff]   ;;  %v7339_v27 = vld [vmem:[%s10098_s9 + $0x6cc] ss:$16 sps:$4 sm:$0xff]   ;;  %v7334_v5 = vld [vmem:[%s10098_s9 + $0x6c0] ss:$16 sps:$4 sm:$0xff]  }
 0x47e   :  { %v3520_v55 = vpack.c.bf16 %v3477_v50, %v3477_v50  ;;  %v7337_v47 = vld [vmem:[%s10098_s9 + $0x6c8] ss:$16 sps:$4 sm:$0xff]   ;;  %v7342_v8 = vld [vmem:[%s10098_s9 + $0x6e4] ss:$16 sps:$4 sm:$0xff]   ;;  %v7345_v9 = vld [vmem:[%s10098_s9 + $0x6ec] ss:$16 sps:$4 sm:$0xff]  }
 0x47f   :  { %5193 = vmatprep.mubr.bf16.mxu0 %v3518_v24  ;;  %5357 = vmatprep.mubr.bf16.mxu1 %v3518_v24  ;;  %v7340_v13 = vld [vmem:[%s10098_s9 + $0x6e0] ss:$16 sps:$4 sm:$0xff]   ;;  %v7343_v16 = vld [vmem:[%s10098_s9 + $0x6e8] ss:$16 sps:$4 sm:$0xff]   ;;  %v7348_v14 = vld [vmem:[%s10098_s9 + $0x704] ss:$16 sps:$4 sm:$0xff]  }
 0x480   :  { %5194 = vmatmul.mubr.bf16.vlgmr.msra.gmra.mrb[40].mxu0 %v3517_v20  ;;  %5358 = vmatmul.mubr.bf16.vlgmr.msra.gmra.mrb[72].mxu1 %v3517_v20  ;;  %v7351_v6 = vld [vmem:[%s10098_s9 + $0x70c] ss:$16 sps:$4 sm:$0xff]   ;;  %v7346_v21 = vld [vmem:[%s10098_s9 + $0x700] ss:$16 sps:$4 sm:$0xff]   ;;  %v7349_v54 = vld [vmem:[%s10098_s9 + $0x708] ss:$16 sps:$4 sm:$0xff]  }
 0x481   :  { %5203 = vmatpush1.bf16.msra.mxu0 %v7298_v61  ;;  %5367 = vmatpush1.bf16.msra.mxu1 %v7301_v43  ;;  %v7354_v26 = vld [vmem:[%s10098_s9 + $0x724] ss:$16 sps:$4 sm:$0xff]   ;;  %v7357_v31 = vld [vmem:[%s10098_s9 + $0x72c] ss:$16 sps:$4 sm:$0xff]   ;;  %v7352_v48 = vld [vmem:[%s10098_s9 + $0x720] ss:$16 sps:$4 sm:$0xff]  }
 0x482   :  { %5234 = vmatprep.mubr.bf16.mxu0 %v3520_v55  ;;  %5398 = vmatprep.mubr.bf16.mxu1 %v3520_v55  ;;  %v7355_v33 = vld [vmem:[%s10098_s9 + $0x728] ss:$16 sps:$4 sm:$0xff]   ;;  %v7360_v0 = vld [vmem:[%s10098_s9 + $0x744] ss:$16 sps:$4 sm:$0xff]   ;;  %v7363_v19 = vld [vmem:[%s10098_s9 + $0x74c] ss:$16 sps:$4 sm:$0xff]  }
 0x483   :  { %5204 = vmatprep.subr.bf16.mxu0 %v7306_v44  ;;  %5368 = vmatprep.subr.bf16.mxu1 %v7309_v36  ;;  %v7358_v38 = vld [vmem:[%s10098_s9 + $0x740] ss:$16 sps:$4 sm:$0xff]   ;;  %v7361_v45 = vld [vmem:[%s10098_s9 + $0x748] ss:$16 sps:$4 sm:$0xff]   ;;  %v7366_v42 = vld [vmem:[%s10098_s9 + $0x764] ss:$16 sps:$4 sm:$0xff]  }
 0x484   :  { %v7369_v15 = vld [vmem:[%s10098_s9 + $0x76c] ss:$16 sps:$4 sm:$0xff]   ;;  %v7364_v57 = vld [vmem:[%s10098_s9 + $0x760] ss:$16 sps:$4 sm:$0xff]   ;;  %v7367_v52 = vld [vmem:[%s10098_s9 + $0x768] ss:$16 sps:$4 sm:$0xff]  }
 0x485   :  { %5205 = vmatpush1.bf16.msra.mxu0 %v7304_v7  ;;  %5369 = vmatpush1.bf16.msra.mxu1 %v7307_v23  ;;  %v7372_v3 = vld [vmem:[%s10098_s9 + $0x784] ss:$16 sps:$4 sm:$0xff]   ;;  %v7375_v35 = vld [vmem:[%s10098_s9 + $0x78c] ss:$16 sps:$4 sm:$0xff]   ;;  %v7370_v11 = vld [vmem:[%s10098_s9 + $0x780] ss:$16 sps:$4 sm:$0xff]   ;;  %v3519_v23 = vpack.c.bf16 %v9632_v63, %v9632_v63 }
 0x486   :  { %5206 = vmatprep.subr.bf16.mxu0 %v7312_v40  ;;  %5370 = vmatprep.subr.bf16.mxu1 %v7315_v56  ;;  %v7373_v51 = vld [vmem:[%s10098_s9 + $0x788] ss:$16 sps:$4 sm:$0xff]   ;;  %v7378_v34 = vld [vmem:[%s10098_s9 + $0x7a4] ss:$16 sps:$4 sm:$0xff]   ;;  %v7381_v29 = vld [vmem:[%s10098_s9 + $0x7ac] ss:$16 sps:$4 sm:$0xff]  }
 0x487   :  { %v7376_v17 = vld [vmem:[%s10098_s9 + $0x7a0] ss:$16 sps:$4 sm:$0xff]   ;;  %v7379_v41 = vld [vmem:[%s10098_s9 + $0x7a8] ss:$16 sps:$4 sm:$0xff]   ;;  %v7384_v49 = vld [vmem:[%s10098_s9 + $0x7c4] ss:$16 sps:$4 sm:$0xff]  }
 0x488   :  { %v7387_v24 = vld [vmem:[%s10098_s9 + $0x7cc] ss:$16 sps:$4 sm:$0xff]   ;;  %v7382_v61 = vld [vmem:[%s10098_s9 + $0x7c0] ss:$16 sps:$4 sm:$0xff]   ;;  %v7385_v43 = vld [vmem:[%s10098_s9 + $0x7c8] ss:$16 sps:$4 sm:$0xff]  }
 0x489   :  { %5207 = vmatpush1.bf16.msra.mxu0 %v7310_v12  ;;  %5371 = vmatpush1.bf16.msra.mxu1 %v7313_v39  ;;  %v7390_v50 = vld [vmem:[%s10098_s9 + $0x7e4] ss:$16 sps:$4 sm:$0xff]   ;;  %v7393_v20 = vld [vmem:[%s10098_s9 + $0x7ec] ss:$16 sps:$4 sm:$0xff]   ;;  %v7388_v44 = vld [vmem:[%s10098_s9 + $0x7e0] ss:$16 sps:$4 sm:$0xff]  }
 0x48a   :  { %5208 = vmatprep.subr.bf16.mxu0 %v7318_v37  ;;  %5372 = vmatprep.subr.bf16.mxu1 %v7321_v58  ;;  %v7391_v36 = vld [vmem:[%s10098_s9 + $0x7e8] ss:$16 sps:$4 sm:$0xff]   ;;  %v7396_v55 = vld [vmem:[%s10100_s11 + $0x4] ss:$8 sps:$4 sm:$0xff]   ;;  %v7399_v40 = vld [vmem:[%s10100_s11 + $0x14] ss:$8 sps:$4 sm:$0xff]  }
 0x48b   :  { %v7394_v7 = vld [vmem:[%s10100_s11] ss:$8 sps:$4 sm:$0xff]   ;;  %v7397_v56 = vld [vmem:[%s10100_s11 + $0x10] ss:$8 sps:$4 sm:$0xff]   ;;  %v7402_v12 = vld [vmem:[%s10100_s11 + $0x24] ss:$8 sps:$4 sm:$0xff]  }
 0x48c   :  { %v7400_v63 = vld [vmem:[%s10100_s11 + $0x20] ss:$8 sps:$4 sm:$0xff]   ;;  %v7405_v39 = vld [vmem:[%s10100_s11 + $0x34] ss:$8 sps:$4 sm:$0xff]   ;;  %v7403_v37 = vld [vmem:[%s10100_s11 + $0x30] ss:$8 sps:$4 sm:$0xff]  }
 0x48d   :  { %5209 = vmatpush1.bf16.msra.mxu0 %v7316_v53  ;;  %5373 = vmatpush1.bf16.msra.mxu1 %v7319_v10  ;;  %v7408_v58 = vld [vmem:[%s10100_s11 + $0x44] ss:$8 sps:$4 sm:$0xff]   ;;  %v7406_v53 = vld [vmem:[%s10100_s11 + $0x40] ss:$8 sps:$4 sm:$0xff]   ;;  %v7411_v10 = vld [vmem:[%s10100_s11 + $0x54] ss:$8 sps:$4 sm:$0xff]  }
 0x48e   :  { %5210 = vmatprep.subr.bf16.mxu0 %v7324_v2  ;;  %5374 = vmatprep.subr.bf16.mxu1 %v7327_v18  ;;  %v7409_v2 = vld [vmem:[%s10100_s11 + $0x50] ss:$8 sps:$4 sm:$0xff]   ;;  %v7414_v18 = vld [vmem:[%s10100_s11 + $0x64] ss:$8 sps:$4 sm:$0xff]  }
 0x491   :  { %5211 = vmatpush1.bf16.msra.mxu0 %v7322_v59  ;;  %5375 = vmatpush1.bf16.msra.mxu1 %v7325_v22  ;;  %v7412_v59 = vld [vmem:[%s10100_s11 + $0x60] ss:$8 sps:$4 sm:$0xff]   ;;  %v7417_v22 = vld [vmem:[%s10100_s11 + $0x74] ss:$8 sps:$4 sm:$0xff]  }
 0x492   :  { %5212 = vmatprep.subr.bf16.mxu0 %v7330_v46  ;;  %5376 = vmatprep.subr.bf16.mxu1 %v7333_v25  ;;  %v7415_v46 = vld [vmem:[%s10100_s11 + $0x70] ss:$8 sps:$4 sm:$0xff]   ;;  %v7420_v25 = vld [vmem:[%s10100_s11 + $0x84] ss:$8 sps:$4 sm:$0xff]  }
 0x495   :  { %5213 = vmatpush1.bf16.msra.mxu0 %v7328_v4  ;;  %5377 = vmatpush1.bf16.msra.mxu1 %v7331_v1  ;;  %v7418_v4 = vld [vmem:[%s10100_s11 + $0x80] ss:$8 sps:$4 sm:$0xff]   ;;  %v7423_v1 = vld [vmem:[%s10100_s11 + $0x94] ss:$8 sps:$4 sm:$0xff]  }
 0x496   :  { %5214 = vmatprep.subr.bf16.mxu0 %v7336_v30  ;;  %5378 = vmatprep.subr.bf16.mxu1 %v7339_v27  ;;  %v7421_v30 = vld [vmem:[%s10100_s11 + $0x90] ss:$8 sps:$4 sm:$0xff]   ;;  %v7426_v27 = vld [vmem:[%s10100_s11 + $0xa4] ss:$8 sps:$4 sm:$0xff]  }
 0x499   :  { %5215 = vmatpush1.bf16.msra.mxu0 %v7334_v5  ;;  %5379 = vmatpush1.bf16.msra.mxu1 %v7337_v47  ;;  %v7424_v5 = vld [vmem:[%s10100_s11 + $0xa0] ss:$8 sps:$4 sm:$0xff]   ;;  %v7429_v47 = vld [vmem:[%s10100_s11 + $0xb4] ss:$8 sps:$4 sm:$0xff]  }
 0x49a   :  { %5216 = vmatprep.subr.bf16.mxu0 %v7342_v8  ;;  %5380 = vmatprep.subr.bf16.mxu1 %v7345_v9  ;;  %v7427_v8 = vld [vmem:[%s10100_s11 + $0xb0] ss:$8 sps:$4 sm:$0xff]   ;;  %v7432_v9 = vld [vmem:[%s10100_s11 + $0xc4] ss:$8 sps:$4 sm:$0xff]  }
 0x49d   :  { %5217 = vmatpush1.bf16.msra.mxu0 %v7340_v13  ;;  %5381 = vmatpush1.bf16.msra.mxu1 %v7343_v16  ;;  %v7430_v13 = vld [vmem:[%s10100_s11 + $0xc0] ss:$8 sps:$4 sm:$0xff]   ;;  %v7435_v16 = vld [vmem:[%s10100_s11 + $0xd4] ss:$8 sps:$4 sm:$0xff]  }
 0x49e   :  { %5218 = vmatprep.subr.bf16.mxu0 %v7348_v14  ;;  %5382 = vmatprep.subr.bf16.mxu1 %v7351_v6  ;;  %v7433_v14 = vld [vmem:[%s10100_s11 + $0xd0] ss:$8 sps:$4 sm:$0xff]   ;;  %v7438_v6 = vld [vmem:[%s10100_s11 + $0xe4] ss:$8 sps:$4 sm:$0xff]  }
 0x4a1   :  { %5219 = vmatpush1.bf16.msra.mxu0 %v7346_v21  ;;  %5383 = vmatpush1.bf16.msra.mxu1 %v7349_v54  ;;  %v7436_v21 = vld [vmem:[%s10100_s11 + $0xe0] ss:$8 sps:$4 sm:$0xff]   ;;  %v7441_v54 = vld [vmem:[%s10100_s11 + $0xf4] ss:$8 sps:$4 sm:$0xff]  }
 0x4a2   :  { %5220 = vmatprep.subr.bf16.mxu0 %v7354_v26  ;;  %5384 = vmatprep.subr.bf16.mxu1 %v7357_v31  ;;  %v7439_v26 = vld [vmem:[%s10100_s11 + $0xf0] ss:$8 sps:$4 sm:$0xff]   ;;  %v7444_v31 = vld [vmem:[%s10100_s11 + $0x104] ss:$8 sps:$4 sm:$0xff]  }
 0x4a5   :  { %5221 = vmatpush1.bf16.msra.mxu0 %v7352_v48  ;;  %5385 = vmatpush1.bf16.msra.mxu1 %v7355_v33  ;;  %v7490_v48 = vld [vmem:[%s10101_s13 + $0x40] sm:$0xff]  }
 0x4a6   :  { %5222 = vmatprep.subr.bf16.mxu0 %v7360_v0  ;;  %5386 = vmatprep.subr.bf16.mxu1 %v7363_v19  ;;  %v7491_v33 = vld [vmem:[%s10101_s13] sm:$0xff]   ;;  %v7492_v0 = vld [vmem:[%s10101_s13 + $0x48] sm:$0xff]  }
 0x4a7   :  { %v7493_v19 = vld [vmem:[%s10101_s13 + $0x8] sm:$0xff]  }
 0x4a9   :  { %5223 = vmatpush1.bf16.msra.mxu0 %v7358_v38  ;;  %5387 = vmatpush1.bf16.msra.mxu1 %v7361_v45  ;;  %v7494_v38 = vld [vmem:[%s10101_s13 + $0x50] sm:$0xff]  }
 0x4aa   :  { %5224 = vmatprep.subr.bf16.mxu0 %v7366_v42  ;;  %5388 = vmatprep.subr.bf16.mxu1 %v7369_v15  ;;  %v7495_v45 = vld [vmem:[%s10101_s13 + $0x10] sm:$0xff]   ;;  %v7496_v42 = vld [vmem:[%s10101_s13 + $0x58] sm:$0xff]  }
 0x4ab   :  { %v7497_v15 = vld [vmem:[%s10101_s13 + $0x18] sm:$0xff]  }
 0x4ad   :  { %5225 = vmatpush1.bf16.msra.mxu0 %v7364_v57  ;;  %5389 = vmatpush1.bf16.msra.mxu1 %v7367_v52  ;;  %v7498_v57 = vld [vmem:[%s10101_s13 + $0x60] sm:$0xff]  }
 0x4ae   :  { %5226 = vmatprep.subr.bf16.mxu0 %v7372_v3  ;;  %5390 = vmatprep.subr.bf16.mxu1 %v7375_v35  ;;  %v7499_v52 = vld [vmem:[%s10101_s13 + $0x20] sm:$0xff]   ;;  %v7500_v3 = vld [vmem:[%s10101_s13 + $0x68] sm:$0xff]  }
 0x4af   :  { %v7501_v35 = vld [vmem:[%s10101_s13 + $0x28] sm:$0xff]  }
 0x4b1   :  { %5227 = vmatpush1.bf16.msra.mxu0 %v7370_v11  ;;  %5391 = vmatpush1.bf16.msra.mxu1 %v7373_v51  ;;  %v9961_v11 = vld [vmem:[%s10102_s10] sm:$0xf] }
 0x4b2   :  { %5228 = vmatprep.subr.bf16.mxu0 %v7378_v34  ;;  %5392 = vmatprep.subr.bf16.mxu1 %v7381_v29  ;;  %v3782_v51 = vrot.slane %v9961_v11, %v7971_v60  ;;  %v3786_v34 = vrot.slane %v9961_v11, %v7979_v62  ;;  %v3794_v29 = vrot.slane %v9961_v11, %v8092_v32  ;;  %v7442_v32 = vld [vmem:[%s10100_s11 + $0x100] ss:$8 sps:$4 sm:$0xff]  }
 0x4b5   :  { %5229 = vmatpush1.bf16.msra.mxu0 %v7376_v17  ;;  %5393 = vmatpush1.bf16.msra.mxu1 %v7379_v41 }
 0x4b6   :  { %5230 = vmatprep.subr.bf16.mxu0 %v7384_v49  ;;  %5394 = vmatprep.subr.bf16.mxu1 %v7387_v24 }
 0x4b9   :  { %5231 = vmatpush1.bf16.msra.mxu0 %v7382_v61  ;;  %5395 = vmatpush1.bf16.msra.mxu1 %v7385_v43 }
 0x4ba   :  { %5232 = vmatprep.subr.bf16.mxu0 %v7390_v50  ;;  %5396 = vmatprep.subr.bf16.mxu1 %v7393_v20 }
 0x4bd   :  { %5233 = vmatpush1.bf16.msra.mxu0 %v7388_v44  ;;  %5397 = vmatpush1.bf16.msra.mxu1 %v7391_v36 }
 0x4be   :  { %5811 = vmatprep.subr.bf16.mxu0 %v7396_v55  ;;  %6734 = vmatprep.subr.bf16.mxu1 %v7490_v48  ;;  %v7486_v48 = vld [vmem:[%s10100_s11 + $0x1e4] ss:$8 sps:$4 sm:$0xff]  }
 0x4c0   :  { %5235 = vmatmul.mubr.bf16.vlgmr.msra.gmra.mrb[40].mxu0 %v3519_v23  ;;  %5399 = vmatmul.mubr.bf16.vlgmr.msra.gmra.mrb[72].mxu1 %v3519_v23 }
 0x4c1   :  { %5812 = vmatpush1.bf16.msra.mxu0 %v7394_v7  ;;  %6735 = vmatpush3.bf16.msra.mxu1 %v7491_v33  ;;  %v7484_v33 = vld [vmem:[%s10100_s11 + $0x1e0] ss:$8 sps:$4 sm:$0xff]  }
 0x4c2   :  { %5813 = vmatprep.subr.bf16.mxu0 %v7399_v40  ;;  %6736 = vmatprep.subr.bf16.mxu1 %v7492_v0 }
 0x4c5   :  { %5814 = vmatpush1.bf16.msra.mxu0 %v7397_v56  ;;  %6737 = vmatpush3.bf16.msra.mxu1 %v7493_v19  ;;  %v7489_v19 = vld [vmem:[%s10100_s11 + $0x1f4] ss:$8 sps:$4 sm:$0xff]  }
 0x4c6   :  { %5815 = vmatprep.subr.bf16.mxu0 %v7402_v12  ;;  %6738 = vmatprep.subr.bf16.mxu1 %v7494_v38 }
 0x4c9   :  { %5816 = vmatpush1.bf16.msra.mxu0 %v7400_v63  ;;  %6739 = vmatpush3.bf16.msra.mxu1 %v7495_v45  ;;  %v7447_v63 = vld [vmem:[%s10100_s11 + $0x114] ss:$8 sps:$4 sm:$0xff]  }
 0x4ca   :  { %5817 = vmatprep.subr.bf16.mxu0 %v7405_v39  ;;  %6740 = vmatprep.subr.bf16.mxu1 %v7496_v42  ;;  %v7502_v42 = vld [vmem:[%s10101_s13 + $0x70] sm:$0xff]  }
 0x4cd   :  { %5818 = vmatpush1.bf16.msra.mxu0 %v7403_v37  ;;  %6741 = vmatpush3.bf16.msra.mxu1 %v7497_v15  ;;  %v7445_v37 = vld [vmem:[%s10100_s11 + $0x110] ss:$8 sps:$4 sm:$0xff]  }
 0x4ce   :  { %5819 = vmatprep.subr.bf16.mxu0 %v7408_v58  ;;  %6742 = vmatprep.subr.bf16.mxu1 %v7498_v57  ;;  %v7450_v58 = vld [vmem:[%s10100_s11 + $0x124] ss:$8 sps:$4 sm:$0xff]   ;;  %v7503_v15 = vld [vmem:[%s10101_s13 + $0x30] sm:$0xff]   ;;  %v7504_v57 = vld [vmem:[%s10101_s13 + $0x78] sm:$0xff]  }
 0x4d1   :  { %5820 = vmatpush1.bf16.msra.mxu0 %v7406_v53  ;;  %6743 = vmatpush3.bf16.msra.mxu1 %v7499_v52  ;;  %v7448_v53 = vld [vmem:[%s10100_s11 + $0x120] ss:$8 sps:$4 sm:$0xff]   ;;  %v7505_v52 = vld [vmem:[%s10101_s13 + $0x38] sm:$0xff]  }
 0x4d2   :  { %5821 = vmatprep.subr.bf16.mxu0 %v7411_v10  ;;  %6744 = vmatprep.subr.bf16.mxu1 %v7500_v3  ;;  %v7453_v10 = vld [vmem:[%s10100_s11 + $0x134] ss:$8 sps:$4 sm:$0xff]   ;;  %v5479_v3 = vld [vmem:[%s10103_s12] sm:$0x3] }
 0x4d5   :  { %5822 = vmatpush1.bf16.msra.mxu0 %v7409_v2  ;;  %6745 = vmatpush3.bf16.msra.mxu1 %v7501_v35  ;;  %v7451_v2 = vld [vmem:[%s10100_s11 + $0x130] ss:$8 sps:$4 sm:$0xff]   ;;  %v5484_v35 = vrot.slane %v5479_v3, %v7971_v60 }
 0x4d6   :  { %5823 = vmatprep.subr.bf16.mxu0 %v7414_v18  ;;  %v7456_v18 = vld [vmem:[%s10100_s11 + $0x144] ss:$8 sps:$4 sm:$0xff]   ;;  %6746 = vmatprep.subr.bf16.mxu1 %v7502_v42 }
 0x4d9   :  { %5824 = vmatpush1.bf16.msra.mxu0 %v7412_v59  ;;  %v7454_v59 = vld [vmem:[%s10100_s11 + $0x140] ss:$8 sps:$4 sm:$0xff]   ;;  %6747 = vmatpush3.bf16.msra.mxu1 %v7503_v15 }
 0x4da   :  { %5825 = vmatprep.subr.bf16.mxu0 %v7417_v22  ;;  %v7459_v22 = vld [vmem:[%s10100_s11 + $0x154] ss:$8 sps:$4 sm:$0xff]   ;;  %6748 = vmatprep.subr.bf16.mxu1 %v7504_v57 }
 0x4dd   :  { %5826 = vmatpush1.bf16.msra.mxu0 %v7415_v46  ;;  %v7457_v46 = vld [vmem:[%s10100_s11 + $0x150] ss:$8 sps:$4 sm:$0xff]   ;;  %6749 = vmatpush3.bf16.msra.mxu1 %v7505_v52 }
 0x4de   :  { %5827 = vmatprep.subr.bf16.mxu0 %v7420_v25  ;;  %v7462_v25 = vld [vmem:[%s10100_s11 + $0x164] ss:$8 sps:$4 sm:$0xff]  }
 0x4e1   :  { %5828 = vmatpush1.bf16.msra.mxu0 %v7418_v4  ;;  %v7460_v4 = vld [vmem:[%s10100_s11 + $0x160] ss:$8 sps:$4 sm:$0xff]  }
 0x4e2   :  { %5829 = vmatprep.subr.bf16.mxu0 %v7423_v1  ;;  %v7465_v1 = vld [vmem:[%s10100_s11 + $0x174] ss:$8 sps:$4 sm:$0xff]  }
 0x4e5   :  { %5830 = vmatpush1.bf16.msra.mxu0 %v7421_v30  ;;  %v7463_v30 = vld [vmem:[%s10100_s11 + $0x170] ss:$8 sps:$4 sm:$0xff]  }
 0x4e6   :  { %5831 = vmatprep.subr.bf16.mxu0 %v7426_v27  ;;  %v7468_v27 = vld [vmem:[%s10100_s11 + $0x184] ss:$8 sps:$4 sm:$0xff]  }
 0x4e9   :  { %5832 = vmatpush1.bf16.msra.mxu0 %v7424_v5  ;;  %v7466_v5 = vld [vmem:[%s10100_s11 + $0x180] ss:$8 sps:$4 sm:$0xff]  }
 0x4ea   :  { %5833 = vmatprep.subr.bf16.mxu0 %v7429_v47  ;;  %v7471_v47 = vld [vmem:[%s10100_s11 + $0x194] ss:$8 sps:$4 sm:$0xff]  }
 0x4ed   :  { %5834 = vmatpush1.bf16.msra.mxu0 %v7427_v8  ;;  %v7469_v8 = vld [vmem:[%s10100_s11 + $0x190] ss:$8 sps:$4 sm:$0xff]  }
 0x4ee   :  { %5835 = vmatprep.subr.bf16.mxu0 %v7432_v9  ;;  %v7474_v9 = vld [vmem:[%s10100_s11 + $0x1a4] ss:$8 sps:$4 sm:$0xff]  }
 0x4f1   :  { %5836 = vmatpush1.bf16.msra.mxu0 %v7430_v13  ;;  %v7472_v13 = vld [vmem:[%s10100_s11 + $0x1a0] ss:$8 sps:$4 sm:$0xff]  }
 0x4f2   :  { %5837 = vmatprep.subr.bf16.mxu0 %v7435_v16  ;;  %v7477_v16 = vld [vmem:[%s10100_s11 + $0x1b4] ss:$8 sps:$4 sm:$0xff]  }
 0x4f5   :  { %5838 = vmatpush1.bf16.msra.mxu0 %v7433_v14  ;;  %v7475_v14 = vld [vmem:[%s10100_s11 + $0x1b0] ss:$8 sps:$4 sm:$0xff]  }
 0x4f6   :  { %5839 = vmatprep.subr.bf16.mxu0 %v7438_v6  ;;  %v7480_v6 = vld [vmem:[%s10100_s11 + $0x1c4] ss:$8 sps:$4 sm:$0xff]  }
 0x4f9   :  { %5840 = vmatpush1.bf16.msra.mxu0 %v7436_v21  ;;  %v7478_v21 = vld [vmem:[%s10100_s11 + $0x1c0] ss:$8 sps:$4 sm:$0xff]  }
 0x4fa   :  { %5841 = vmatprep.subr.bf16.mxu0 %v7441_v54  ;;  %v7483_v54 = vld [vmem:[%s10100_s11 + $0x1d4] ss:$8 sps:$4 sm:$0xff]  }
 0x4fd   :  { %5842 = vmatpush1.bf16.msra.mxu0 %v7439_v26  ;;  %v7481_v26 = vld [vmem:[%s10100_s11 + $0x1d0] ss:$8 sps:$4 sm:$0xff]  }
 0x4fe   :  { %5852 = vmatprep.subr.bf16.mxu0 %v7444_v31  ;;  %v3790_v31 = vrot.slane %v9961_v11, %v8083_v28  ;;  %v7487_v28 = vld [vmem:[%s10100_s11 + $0x1f0] ss:$8 sps:$4 sm:$0xff]   ;;  %v5488_v11 = vrot.slane %v5479_v3, %v7979_v62 }
 0x593   :  { %v5236_v17 = vpop.f32.mrb[40].mxu0  ;;  %v9969_v41 = vpop.f32.mrb[72].mxu1 }
 0x594   :  { %v6854_v49 = vadd.f32 %v5236_v17, %v3782_v51  ;;  %v5238_v24 = vpop.f32.mrb[41].mxu0  ;;  %v5402_v61 = vpop.f32.mrb[73].mxu1  ;;  %v6856_v0 = vadd.f32 %v9969_v41, %v3790_v31 }
 0x595   :  { %v6855_v43 = vadd.f32 %v5238_v24, %v3786_v34  ;;  %v6857_v50 = vadd.f32 %v5402_v61, %v3794_v29  ;;  %v5240_v20 = vpop.f32.mrb[42].mxu0  ;;  %v5404_v44 = vpop.f32.mrb[74].mxu1 }
 0x596   :  { %v5407_v36 = vmax.f32 %v6854_v49, 0.0  ;;  %v5241_v55 = vpop.f32.mrb[43].mxu0  ;;  %v5405_v7 = vpop.f32.mrb[75].mxu1  ;;  %v5409_v38 = vmax.f32 %v6856_v0, 0.0  ;;  %v6700_v44 = vld [vmem:[%s10104_s14] ss:$0 sm:$0xff] }
 0x597   :  { %v5408_v23 = vmax.f32 %v6855_v43, 0.0  ;;  %v5410_v40 = vmax.f32 %v6857_v50, 0.0 }
 0x598   :  { %v5411_v12 = vpack.c.bf16 %v5407_v36, %v5407_v36  ;;  %v5413_v45 = vpack.c.bf16 %v5409_v38, %v5409_v38 }
 0x599   :  { %v5412_v56 = vpack.c.bf16 %v5408_v23, %v5408_v23  ;;  %v5414_v39 = vpack.c.bf16 %v5410_v40, %v5410_v40 }
 0x59b   :  { %5843 = vmatprep.mubr.bf16.mxu0 %v5412_v56 }
 0x59c   :  { %5844 = vmatmul.mubr.bf16.vlgmr.msra.gmra.mrb[44].mxu0 %v5411_v12 }
 0x59d   :  { %5853 = vmatpush1.bf16.msra.mxu0 %v7442_v32  ;;  %5884 = vmatprep.mubr.bf16.mxu0 %v5414_v39 }
 0x59e   :  { %5854 = vmatprep.subr.bf16.mxu0 %v7447_v63 }
 0x5a1   :  { %5855 = vmatpush1.bf16.msra.mxu0 %v7445_v37 }
 0x5a2   :  { %5856 = vmatprep.subr.bf16.mxu0 %v7450_v58 }
 0x5a5   :  { %5857 = vmatpush1.bf16.msra.mxu0 %v7448_v53 }
 0x5a6   :  { %5858 = vmatprep.subr.bf16.mxu0 %v7453_v10 }
 0x5a9   :  { %5859 = vmatpush1.bf16.msra.mxu0 %v7451_v2 }
 0x5aa   :  { %5860 = vmatprep.subr.bf16.mxu0 %v7456_v18 }
 0x5ad   :  { %5861 = vmatpush1.bf16.msra.mxu0 %v7454_v59 }
 0x5ae   :  { %5862 = vmatprep.subr.bf16.mxu0 %v7459_v22 }
 0x5b1   :  { %5863 = vmatpush1.bf16.msra.mxu0 %v7457_v46 }
 0x5b2   :  { %5864 = vmatprep.subr.bf16.mxu0 %v7462_v25 }
 0x5b5   :  { %5865 = vmatpush1.bf16.msra.mxu0 %v7460_v4 }
 0x5b6   :  { %5866 = vmatprep.subr.bf16.mxu0 %v7465_v1 }
 0x5b9   :  { %5867 = vmatpush1.bf16.msra.mxu0 %v7463_v30 }
 0x5ba   :  { %5868 = vmatprep.subr.bf16.mxu0 %v7468_v27 }
 0x5bd   :  { %5869 = vmatpush1.bf16.msra.mxu0 %v7466_v5 }
 0x5be   :  { %5870 = vmatprep.subr.bf16.mxu0 %v7471_v47 }
 0x5c1   :  { %5871 = vmatpush1.bf16.msra.mxu0 %v7469_v8 }
 0x5c2   :  { %5872 = vmatprep.subr.bf16.mxu0 %v7474_v9 }
 0x5c5   :  { %5873 = vmatpush1.bf16.msra.mxu0 %v7472_v13 }
 0x5c6   :  { %5874 = vmatprep.subr.bf16.mxu0 %v7477_v16 }
 0x5c9   :  { %5875 = vmatpush1.bf16.msra.mxu0 %v7475_v14 }
 0x5ca   :  { %5876 = vmatprep.subr.bf16.mxu0 %v7480_v6 }
 0x5cd   :  { %5877 = vmatpush1.bf16.msra.mxu0 %v7478_v21 }
 0x5ce   :  { %5878 = vmatprep.subr.bf16.mxu0 %v7483_v54 }
 0x5d1   :  { %5879 = vmatpush1.bf16.msra.mxu0 %v7481_v26 }
 0x5d2   :  { %5880 = vmatprep.subr.bf16.mxu0 %v7486_v48 }
 0x5d5   :  { %5881 = vmatpush1.bf16.msra.mxu0 %v7484_v33 }
 0x5d6   :  { %5882 = vmatprep.subr.bf16.mxu0 %v7489_v19 }
 0x5d9   :  { %5883 = vmatpush1.bf16.msra.mxu0 %v7487_v28 }
 0x5dc   :  { %5885 = vmatmul.mubr.bf16.vlgmr.msra.gmra.mrb[44].mxu0 %v5413_v45 }
 0x6af   :  { %v5886_v51 = vpop.f32.mrb[44].mxu0 }
 0x6b0   :  { %v6858_v34 = vadd.f32 %v5886_v51, %v5484_v35  ;;  %v5888_v29 = vpop.f32.mrb[45].mxu0 }
 0x6b1   :  { %v6859_v17 = vadd.f32 %v5888_v29, %v5488_v11  ;;  %v5890_v41 = vpop.f32.mrb[46].mxu0 }
 0x6b2   :  { %v5893_v49 = vmax.f32 %v6858_v34, 0.0  ;;  %v5891_v24 = vpop.f32.mrb[47].mxu0 }
 0x6b3   :  { %v5894_v61 = vmax.f32 %v6859_v17, 0.0 }
 0x6b4   :  { %v5895_v50 = vpack.c.bf16 %v5893_v49, %v5893_v49 }
 0x6b5   :  { %v5896_v43 = vpack.c.bf16 %v5894_v61, %v5894_v61 }
 0x6b7   :  { %6064 = vmatprep.mubr.bf16.mxu1 %v5896_v43 }
 0x6b8   :  { %6065 = vmatmul.mubr.bf16.vlgmr.msra.gmra.mrb[76].mxu1 %v5895_v50 }
 0x78b   :  { %v6750_v20 = vpop.f32.mrb[76].mxu1 }
 0x78c   :  { %v6751_v60 = vpop.f32.mrb[77].mxu1 }
 0x78d   :  { %v6752_v36 = vadd.f32 %v6751_v60, %v6750_v20  ;;  %v6753_v62 = vpop.f32.mrb[78].mxu1 }
 0x78e   :  { %v6754_v55 = vpop.f32.mrb[79].mxu1 }
 0x78f   :  { %v6067_v7 = vadd.f32 %v6752_v36, %v6700_v44 }
 0x791   :  { %v6072_v23 = vmax.f32 %v6067_v7, 0.0 }
 0x793   :  { %6073 = vst [vmem:[%s10105_s15] sm:$0xff] %v6072_v23 }

</bundles_post_ra>
